<compile_context>
chip_gen: v7x
topology: tpu7x:2x2x1
jax: 0.10.0
libtpu: 0.0.40
codegen_flags: <defaults>
</compile_context>

<pallas_src>
import functools

import jax
import jax.numpy as jnp
from jax.experimental import pallas as pl
from jax.experimental.pallas import tpu as pltpu

LANE = 128  # TPU lane width: pad output-channel dims to this for unmasked stores.


# ----------------------------------------------------------------------------
# Pallas kernel: fused matmul -> +bias -> (optional ReLU)
# ----------------------------------------------------------------------------
def _matmul_bias_act_kernel(x_ref, w_ref, b_ref, o_ref, *, relu):
    acc = jnp.dot(x_ref[...], w_ref[...], preferred_element_type=jnp.float32)
    acc = acc + b_ref[...]                     # b is (1, N), broadcasts over rows
    if relu:
        acc = jnp.maximum(acc, 0.0)
    o_ref[...] = acc.astype(o_ref.dtype)


def fused_matmul(x, w, b2, *, relu, block_m=512):
    """y = relu_opt(x @ w + b2).  x:(M,K) f32, w:(K,N) f32, b2:(1,N) f32 -> (M,N) f32."""
    M, K = x.shape
    Kw, N = w.shape
    assert K == Kw and b2.shape == (1, N)
    kernel = functools.partial(_matmul_bias_act_kernel, relu=relu)

    if M <= block_m or M % block_m != 0:
        # Single full-array block: fits VMEM comfortably at these sizes; full-array
        # block shapes satisfy the (8,128) rule by definition.
        return pl.pallas_call(
            kernel,
            out_shape=jax.ShapeDtypeStruct((M, N), jnp.float32),
            in_specs=[
                pl.BlockSpec((M, K), lambda: (0, 0)),
                pl.BlockSpec((K, N), lambda: (0, 0)),
                pl.BlockSpec((1, N), lambda: (0, 0)),
            ],
            out_specs=pl.BlockSpec((M, N), lambda: (0, 0)),
        )(x, w, b2)

    # Large batch: tile rows and shard across TensorCores (megacore), also bounding
    # the per-block VMEM footprint. Weights use a constant index_map, so Pallas keeps
    # them resident instead of re-DMAing each step.
    return pl.pallas_call(
        kernel,
        out_shape=jax.ShapeDtypeStruct((M, N), jnp.float32),
        grid=(M // block_m,),
        in_specs=[
            pl.BlockSpec((block_m, K), lambda i: (i, 0)),
            pl.BlockSpec((K, N), lambda i: (0, 0)),
            pl.BlockSpec((1, N), lambda i: (0, 0)),
        ],
        out_specs=pl.BlockSpec((block_m, N), lambda i: (i, 0)),
        compiler_params=pltpu.CompilerParams(dimension_semantics=("parallel",)),
    )(x, w, b2)


# ----------------------------------------------------------------------------
# Pallas kernel: fused tail = conv3 (as GEMM) + policy head + value head
# ----------------------------------------------------------------------------
def _tail_kernel(x_ref, w3_ref, b3_ref, w1_ref, b1_ref, w2_ref, b2_ref, o_ref):
    # conv3 (1x1 spatial output): (m, 1152) @ (1152, 128) + b, ReLU
    h = jnp.dot(x_ref[...], w3_ref[...], preferred_element_type=jnp.float32)
    h = jnp.maximum(h + b3_ref[...], 0.0)
    # concatenated first head layer: (m, 128) @ (128, 1024) + b, ReLU
    h = jnp.dot(h, w1_ref[...], preferred_element_type=jnp.float32)
    h = jnp.maximum(h + b1_ref[...], 0.0)
    # block-diagonal second head layer: (m, 1024) @ (1024, 128) + b
    o = jnp.dot(h, w2_ref[...], preferred_element_type=jnp.float32) + b2_ref[...]
    o_ref[...] = o.astype(o_ref.dtype)


def fused_tail(x, kp, *, block_m=512):
    """x: (N, 3*3*128) f32 -> (N, 128) with [policy logits | value | zero pad]."""
    M, K = x.shape
    args = [x, kp["c3_w"], kp["c3_b"], kp["h1_w"], kp["h1_b"], kp["h2_w"], kp["h2_b"]]

    if M <= block_m or M % block_m != 0:
        in_specs = [pl.BlockSpec(a.shape, lambda: (0, 0)) for a in args]
        return pl.pallas_call(
            _tail_kernel,
            out_shape=jax.ShapeDtypeStruct((M, LANE), jnp.float32),
            in_specs=in_specs,
            out_specs=pl.BlockSpec((M, LANE), lambda: (0, 0)),
        )(*args)

    # Large batch: tile the batch rows, keep all weights resident (constant index_map).
    in_specs = [pl.BlockSpec((block_m, K), lambda i: (i, 0))]
    in_specs += [pl.BlockSpec(a.shape, lambda i: (0, 0)) for a in args[1:]]
    return pl.pallas_call(
        _tail_kernel,
        out_shape=jax.ShapeDtypeStruct((M, LANE), jnp.float32),
        grid=(M // block_m,),
        in_specs=in_specs,
        out_specs=pl.BlockSpec((block_m, LANE), lambda i: (i, 0)),
        compiler_params=pltpu.CompilerParams(dimension_semantics=("parallel",)),
    )(*args)


# ----------------------------------------------------------------------------
# im2col on NHWC activations (XLA glue: strided slices + reshape only)
# ----------------------------------------------------------------------------
def _im2col_nhwc(x, kh, kw, stride):
    """x: (N, H, W, C) -> patches (N*oh*ow, kh*kw*C), column order (kh, kw, C)."""
    n, h, w, c = x.shape
    oh = (h - kh) // stride + 1
    ow = (w - kw) // stride + 1
    cols = []
    for i in range(kh):
        for j in range(kw):
            cols.append(x[:, i:i + stride * oh:stride, j:j + stride * ow:stride, :])
    p = jnp.stack(cols, axis=3)                 # (n, oh, ow, kh*kw, c)
    return p.reshape(n * oh * ow, kh * kw * c), oh, ow


# ----------------------------------------------------------------------------
# Parameters (PyTorch layout) + one-time kernel-layout preparation
# ----------------------------------------------------------------------------
def init_params(key, in_channels, conv_out_size, n_actions):
    ks = jax.random.split(key, 10)
    def w(k, shape, fan_in):
        return (jax.random.normal(k, shape, jnp.float32) / jnp.sqrt(fan_in)).astype(jnp.float32)
    return {
        "c1_w": w(ks[0], (32, in_channels, 8, 8), in_channels * 64),
        "c1_b": jnp.zeros((32,), jnp.float32),
        "c2_w": w(ks[1], (64, 32, 4, 4), 32 * 16),
        "c2_b": jnp.zeros((64,), jnp.float32),
        "c3_w": w(ks[2], (64, 64, 3, 3), 64 * 9),
        "c3_b": jnp.zeros((64,), jnp.float32),
        "p1_w": w(ks[3], (512, conv_out_size), conv_out_size),
        "p1_b": jnp.zeros((512,), jnp.float32),
        "p2_w": w(ks[4], (n_actions, 512), 512),
        "p2_b": jnp.zeros((n_actions,), jnp.float32),
        "v1_w": w(ks[5], (512, conv_out_size), conv_out_size),
        "v1_b": jnp.zeros((512,), jnp.float32),
        "v2_w": w(ks[6], (1, 512), 512),
        "v2_b": jnp.zeros((1,), jnp.float32),
    }


def _pad_cols(a, n):
    pad = n - a.shape[-1]
    if pad <= 0:
        return a
    return jnp.pad(a, [(0, 0)] * (a.ndim - 1) + [(0, pad)])


def _conv_weight_nhwc(w_oihw, cin_pad, cout_pad):
    """OIHW conv weight -> (kh*kw*cin_pad, cout_pad) matmul weight matching NHWC im2col."""
    cout, cin, kh, kw = w_oihw.shape
    wz = jnp.zeros((cout, cin_pad, kh, kw), jnp.float32).at[:, :cin].set(w_oihw)
    wz = wz.transpose(2, 3, 1, 0).reshape(kh * kw * cin_pad, cout)   # rows in (kh,kw,cin) order
    return _pad_cols(wz, cout_pad)


def prepare_params(params, n_actions):
    """One-time repack of PyTorch-layout params into kernel layout (done outside hot path)."""
    P = {}
    # conv1: fold the forward()'s 1/256 input scale into the weights.
    cin1 = params["c1_w"].shape[1]
    P["c1_w"] = _conv_weight_nhwc(params["c1_w"] / 256.0, cin1, LANE)
    P["c1_b"] = _pad_cols(params["c1_b"].reshape(1, -1), LANE)
    # conv2: input channels zero-padded 32 -> 128, output padded 64 -> 128.
    P["c2_w"] = _conv_weight_nhwc(params["c2_w"], LANE, LANE)
    P["c2_b"] = _pad_cols(params["c2_b"].reshape(1, -1), LANE)
    # conv3 (used as a flat GEMM in the fused tail): cin 64 -> 128, cout 64 -> 128.
    P["c3_w"] = _conv_weight_nhwc(params["c3_w"], LANE, LANE)
    P["c3_b"] = _pad_cols(params["c3_b"].reshape(1, -1), LANE)
    # Heads, fused. First layer: concat policy/value (K, 512)+(K, 512) -> (128, 1024).
    conv_out_size = params["p1_w"].shape[1]
    assert conv_out_size <= LANE, "fused tail assumes conv3 output is 1x1 spatial"
    h1 = jnp.concatenate([params["p1_w"].T, params["v1_w"].T], axis=1)   # (K, 1024)
    P["h1_w"] = jnp.zeros((LANE, 1024), jnp.float32).at[:conv_out_size, :].set(h1)
    P["h1_b"] = jnp.concatenate([params["p1_b"], params["v1_b"]]).reshape(1, 1024)
    # Second layer: block-diagonal (1024, 128); cols [0:n_actions]=policy, [n_actions]=value.
    h2 = jnp.zeros((1024, LANE), jnp.float32)
    h2 = h2.at[:512, :n_actions].set(params["p2_w"].T)
    h2 = h2.at[512:, n_actions:n_actions + 1].set(params["v2_w"].T)
    P["h2_w"] = h2
    h2b = jnp.zeros((1, LANE), jnp.float32)
    h2b = h2b.at[0, :n_actions].set(params["p2_b"])
    h2b = h2b.at[0, n_actions].set(params["v2_b"][0])
    P["h2_b"] = h2b
    return P


# ----------------------------------------------------------------------------
# Forward pass
# ----------------------------------------------------------------------------
def atari_a2c_forward(kparams, x, n_actions):
    """x: (N, C, H, W) uint8 (or any numeric). Returns (policy_logits, value)."""
    n = x.shape[0]
    # NCHW -> NHWC once; scale is folded into conv1 weights so no /256 here.
    # TODO(synk): keep the image uint8 all the way into VMEM (cast inside the kernel)
    # to cut DMA bytes 4x; kept f32 here for lowering robustness at this tiny size.
    fx = jnp.transpose(x.astype(jnp.float32), (0, 2, 3, 1))
    # conv1: 8x8 stride 4
    p1, oh1, ow1 = _im2col_nhwc(fx, 8, 8, 4)
    h = fused_matmul(p1, kparams["c1_w"], kparams["c1_b"], relu=True)
    h = h.reshape(n, oh1, ow1, LANE)                   # NHWC, channels padded to 128
    # conv2: 4x4 stride 2
    p2, oh2, ow2 = _im2col_nhwc(h, 4, 4, 2)
    h = fused_matmul(p2, kparams["c2_w"], kparams["c2_b"], relu=True)
    h = h.reshape(n, oh2, ow2, LANE)
    # conv3 (3x3 stride 1) produces 1x1 spatial output here -> fuse with both heads.
    oh3, ow3 = oh2 - 3 + 1, ow2 - 3 + 1
    assert oh3 == 1 and ow3 == 1, "fused tail requires 1x1 conv3 output"
    # TODO(synk): for inputs where conv3 output > 1x1, run conv3 as a separate
    # fused_matmul and permute p1_w/v1_w columns to the NHWC flatten order.
    xt = h.reshape(n, oh2 * ow2 * LANE)                # (n, 1152), (h, w, c) order
    out = fused_tail(xt, kparams)                      # (n, 128) lane-dense
    policy = out[:, :n_actions]
    value = out[:, n_actions:n_actions + 1]
    return policy, value


# ----------------------------------------------------------------------------
# Pure-JAX reference (sanity check only, uses original PyTorch-layout params)
# ----------------------------------------------------------------------------
def _ref_forward(params, x):
    fx = x.astype(jnp.float32) / 256.0
    def conv(h, w, b, s):
        y = jax.lax.conv_general_dilated(h, w, (s, s), "VALID",
                                         dimension_numbers=("NCHW", "OIHW", "NCHW"))
        return jax.nn.relu(y + b[None, :, None, None])
    h = conv(fx, params["c1_w"], params["c1_b"], 4)
    h = conv(h, params["c2_w"], params["c2_b"], 2)
    h = conv(h, params["c3_w"], params["c3_b"], 1)
    co = h.reshape(h.shape[0], -1)
    p = jax.nn.relu(co @ params["p1_w"].T + params["p1_b"]) @ params["p2_w"].T + params["p2_b"]
    v = jax.nn.relu(co @ params["v1_w"].T + params["v1_b"]) @ params["v2_w"].T + params["v2_b"]
    return p, v


if __name__ == "__main__":
    # Batch=2, 4 stacked frames, 36x36 pixels (smallest spatial size the
    # 8/4 -> 4/2 -> 3/1 conv stack admits); conv output: 36 -> 8 -> 3 -> 1.
    N, C, H, W = 2, 4, 36, 36
    n_actions = 4

    key = jax.random.PRNGKey(0)
    kx, kp = jax.random.split(key)
    x = jax.random.randint(kx, (N, C, H, W), 0, 256, dtype=jnp.int32).astype(jnp.uint8)

    conv_out_size = 64 * 1 * 1
    params = init_params(kp, C, conv_out_size, n_actions)
    kparams = prepare_params(params, n_actions)          # one-time weight repack

    fwd = jax.jit(functools.partial(atari_a2c_forward, n_actions=n_actions))
    policy_logits, value = fwd(kparams, x)
    jax.block_until_ready((policy_logits, value))

    assert policy_logits.shape == (N, n_actions)
    assert value.shape == (N, 1)

    ref_p, ref_v = _ref_forward(params, x)
    assert jnp.allclose(policy_logits, ref_p, atol=1e-2, rtol=1e-2)
    assert jnp.allclose(value, ref_v, atol=1e-2, rtol=1e-2)

    print("KERNEL_OK")
</pallas_src>

<mosaic_0001>
module attributes {stable_mosaic.version = 11 : i64} {
  func.func @_matmul_bias_act_kernel(%arg0: memref<128x256xf32, #tpu.memory_space<vmem>>, %arg1: memref<256x128xf32, #tpu.memory_space<vmem>>, %arg2: memref<1x128xf32, #tpu.memory_space<vmem>>, %arg3: memref<128x128xf32, #tpu.memory_space<vmem>>) attributes {dimension_semantics = [], scalar_prefetch = 0 : i64, scratch_operands = 0 : i64, tpu.core_type = #tpu.core_type<tc>} {
    %c0 = arith.constant 0 : index
    %c0_0 = arith.constant 0 : index
    %0 = vector.load %arg0[%c0, %c0_0] : memref<128x256xf32, #tpu.memory_space<vmem>>, vector<128x256xf32>
    %c0_1 = arith.constant 0 : index
    %c0_2 = arith.constant 0 : index
    %1 = vector.load %arg1[%c0_1, %c0_2] : memref<256x128xf32, #tpu.memory_space<vmem>>, vector<256x128xf32>
    %cst = arith.constant dense<0.000000e+00> : vector<128x128xf32>
    %2 = tpu.matmul %0, %1, %cst {dimension_numbers = #tpu.dot_dimension_numbers<[1], [0], [0], [1], [0, 0, 1, 1], [], []>} : vector<128x256xf32>, vector<256x128xf32>, vector<128x128xf32> -> vector<128x128xf32>
    %c0_3 = arith.constant 0 : index
    %c0_4 = arith.constant 0 : index
    %3 = vector.load %arg2[%c0_3, %c0_4] : memref<1x128xf32, #tpu.memory_space<vmem>>, vector<1x128xf32>
    %4 = vector.broadcast %3 : vector<1x128xf32> to vector<128x128xf32>
    %5 = arith.addf %2, %4 : vector<128x128xf32>
    %cst_5 = arith.constant 0.000000e+00 : f32
    %6 = vector.broadcast %cst_5 : f32 to vector<128x128xf32>
    %7 = arith.maximumf %5, %6 : vector<128x128xf32>
    %c0_6 = arith.constant 0 : index
    %c0_7 = arith.constant 0 : index
    %8 = vector.load %arg3[%c0_6, %c0_7] : memref<128x128xf32, #tpu.memory_space<vmem>>, vector<128x128xf32>
    tpu.vector_store %arg3[%c0_6, %c0_7], %7 {strides = array<i32>} : memref<128x128xf32, #tpu.memory_space<vmem>>, vector<128x128xf32>,
    return
  }
}

module attributes {stable_mosaic.version = 11 : i64} {
  func.func @_matmul_bias_act_kernel(%arg0: memref<18x2048xf32, #tpu.memory_space<vmem>>, %arg1: memref<2048x128xf32, #tpu.memory_space<vmem>>, %arg2: memref<1x128xf32, #tpu.memory_space<vmem>>, %arg3: memref<18x128xf32, #tpu.memory_space<vmem>>) attributes {dimension_semantics = [], scalar_prefetch = 0 : i64, scratch_operands = 0 : i64, tpu.core_type = #tpu.core_type<tc>} {
    %c0 = arith.constant 0 : index
    %c0_0 = arith.constant 0 : index
    %0 = vector.load %arg0[%c0, %c0_0] : memref<18x2048xf32, #tpu.memory_space<vmem>>, vector<18x2048xf32>
    %c0_1 = arith.constant 0 : index
    %c0_2 = arith.constant 0 : index
    %1 = vector.load %arg1[%c0_1, %c0_2] : memref<2048x128xf32, #tpu.memory_space<vmem>>, vector<2048x128xf32>
    %cst = arith.constant dense<0.000000e+00> : vector<18x128xf32>
    %2 = tpu.matmul %0, %1, %cst {dimension_numbers = #tpu.dot_dimension_numbers<[1], [0], [0], [1], [0, 0, 1, 1], [], []>} : vector<18x2048xf32>, vector<2048x128xf32>, vector<18x128xf32> -> vector<18x128xf32>
    %c0_3 = arith.constant 0 : index
    %c0_4 = arith.constant 0 : index
    %3 = vector.load %arg2[%c0_3, %c0_4] : memref<1x128xf32, #tpu.memory_space<vmem>>, vector<1x128xf32>
    %4 = vector.broadcast %3 : vector<1x128xf32> to vector<18x128xf32>
    %5 = arith.addf %2, %4 : vector<18x128xf32>
    %cst_5 = arith.constant 0.000000e+00 : f32
    %6 = vector.broadcast %cst_5 : f32 to vector<18x128xf32>
    %7 = arith.maximumf %5, %6 : vector<18x128xf32>
    %c0_6 = arith.constant 0 : index
    %c0_7 = arith.constant 0 : index
    %8 = vector.load %arg3[%c0_6, %c0_7] : memref<18x128xf32, #tpu.memory_space<vmem>>, vector<18x128xf32>
    tpu.vector_store %arg3[%c0_6, %c0_7], %7 {strides = array<i32>} : memref<18x128xf32, #tpu.memory_space<vmem>>, vector<18x128xf32>,
    return
  }
}

module attributes {stable_mosaic.version = 11 : i64} {
  func.func @_tail_kernel(%arg0: memref<2x1152xf32, #tpu.memory_space<vmem>>, %arg1: memref<1152x128xf32, #tpu.memory_space<vmem>>, %arg2: memref<1x128xf32, #tpu.memory_space<vmem>>, %arg3: memref<128x1024xf32, #tpu.memory_space<vmem>>, %arg4: memref<1x1024xf32, #tpu.memory_space<vmem>>, %arg5: memref<1024x128xf32, #tpu.memory_space<vmem>>, %arg6: memref<1x128xf32, #tpu.memory_space<vmem>>, %arg7: memref<2x128xf32, #tpu.memory_space<vmem>>) attributes {dimension_semantics = [], scalar_prefetch = 0 : i64, scratch_operands = 0 : i64, tpu.core_type = #tpu.core_type<tc>} {
    %c0 = arith.constant 0 : index
    %c0_0 = arith.constant 0 : index
    %0 = vector.load %arg0[%c0, %c0_0] : memref<2x1152xf32, #tpu.memory_space<vmem>>, vector<2x1152xf32>
    %c0_1 = arith.constant 0 : index
    %c0_2 = arith.constant 0 : index
    %1 = vector.load %arg1[%c0_1, %c0_2] : memref<1152x128xf32, #tpu.memory_space<vmem>>, vector<1152x128xf32>
    %cst = arith.constant dense<0.000000e+00> : vector<2x128xf32>
    %2 = tpu.matmul %0, %1, %cst {dimension_numbers = #tpu.dot_dimension_numbers<[1], [0], [0], [1], [0, 0, 1, 1], [], []>} : vector<2x1152xf32>, vector<1152x128xf32>, vector<2x128xf32> -> vector<2x128xf32>
    %c0_3 = arith.constant 0 : index
    %c0_4 = arith.constant 0 : index
    %3 = vector.load %arg2[%c0_3, %c0_4] : memref<1x128xf32, #tpu.memory_space<vmem>>, vector<1x128xf32>
    %4 = vector.broadcast %3 : vector<1x128xf32> to vector<2x128xf32>
    %5 = arith.addf %2, %4 : vector<2x128xf32>
    %cst_5 = arith.constant 0.000000e+00 : f32
    %6 = vector.broadcast %cst_5 : f32 to vector<2x128xf32>
    %7 = arith.maximumf %5, %6 : vector<2x128xf32>
    %c0_6 = arith.constant 0 : index
    %c0_7 = arith.constant 0 : index
    %8 = vector.load %arg3[%c0_6, %c0_7] : memref<128x1024xf32, #tpu.memory_space<vmem>>, vector<128x1024xf32>
    %cst_8 = arith.constant dense<0.000000e+00> : vector<2x1024xf32>
    %9 = tpu.matmul %7, %8, %cst_8 {dimension_numbers = #tpu.dot_dimension_numbers<[1], [0], [0], [1], [0, 0, 1, 1], [], []>} : vector<2x128xf32>, vector<128x1024xf32>, vector<2x1024xf32> -> vector<2x1024xf32>
    %c0_9 = arith.constant 0 : index
    %c0_10 = arith.constant 0 : index
    %10 = vector.load %arg4[%c0_9, %c0_10] : memref<1x1024xf32, #tpu.memory_space<vmem>>, vector<1x1024xf32>
    %11 = vector.broadcast %10 : vector<1x1024xf32> to vector<2x1024xf32>
    %12 = arith.addf %9, %11 : vector<2x1024xf32>
    %cst_11 = arith.constant 0.000000e+00 : f32
    %13 = vector.broadcast %cst_11 : f32 to vector<2x1024xf32>
    %14 = arith.maximumf %12, %13 : vector<2x1024xf32>
    %c0_12 = arith.constant 0 : index
    %c0_13 = arith.constant 0 : index
    %15 = vector.load %arg5[%c0_12, %c0_13] : memref<1024x128xf32, #tpu.memory_space<vmem>>, vector<1024x128xf32>
    %cst_14 = arith.constant dense<0.000000e+00> : vector<2x128xf32>
    %16 = tpu.matmul %14, %15, %cst_14 {dimension_numbers = #tpu.dot_dimension_numbers<[1], [0], [0], [1], [0, 0, 1, 1], [], []>} : vector<2x1024xf32>, vector<1024x128xf32>, vector<2x128xf32> -> vector<2x128xf32>
    %c0_15 = arith.constant 0 : index
    %c0_16 = arith.constant 0 : index
    %17 = vector.load %arg6[%c0_15, %c0_16] : memref<1x128xf32, #tpu.memory_space<vmem>>, vector<1x128xf32>
    %18 = vector.broadcast %17 : vector<1x128xf32> to vector<2x128xf32>
    %19 = arith.addf %16, %18 : vector<2x128xf32>
    %c0_17 = arith.constant 0 : index
    %c0_18 = arith.constant 0 : index
    %20 = vector.load %arg7[%c0_17, %c0_18] : memref<2x128xf32, #tpu.memory_space<vmem>>, vector<2x128xf32>
    tpu.vector_store %arg7[%c0_17, %c0_18], %19 {strides = array<i32>} : memref<2x128xf32, #tpu.memory_space<vmem>>, vector<2x128xf32>,
    return
  }
}

</mosaic_0001>

<bundles_post_ra>
// kernel: atari_a2c_forward.3
= control target key start
LH: loop header
LB: loop body
LE: loop exit
PB: predicated region body
PF: predicated region fallthrough
CT: control target
= control target key end

     0   :  { %s676_s1 = inlined_call_operand.vmem [shape: f32[256,128], index: 1, kind: input, shape index: {}]   ;;  %s677_s0 = inlined_call_operand.vmem [shape: f32[128,256], index: 0, kind: input, shape index: {}]   ;;  %s678_s2 = inlined_call_operand.vmem [shape: f32[1,128], index: 2, kind: input, shape index: {}]   ;;  %s679_s3 = inlined_call_operand.vmem [shape: f32[128,128], index: 3, kind: output, shape index: {}]  }
   0x1   :  { %v62_v0 = vld [vmem:[%s676_s1 + $0x80] sm:$0xff]  ;;  %v63_v1 = vld [vmem:[%s676_s1 + $0x88] sm:$0xff]  ;;  %v64_v5 = vld [vmem:[%s676_s1 + $0x90] sm:$0xff] }
   0x2   :  { %v46_v2 = vld [vmem:[%s676_s1] sm:$0xff]  ;;  %v347_v3 = vpack.c.bf16 %v63_v1, %v62_v0  ;;  %v47_v4 = vld [vmem:[%s676_s1 + $0x8] sm:$0xff]  ;;  %v65_v6 = vld [vmem:[%s676_s1 + $0x98] sm:$0xff] }
   0x3   :  { %v349_v7 = vpack.c.bf16 %v47_v4, %v46_v2  ;;  %v351_v8 = vpack.c.bf16 %v65_v6, %v64_v5  ;;  %v48_v9 = vld [vmem:[%s676_s1 + $0x10] sm:$0xff]  ;;  %v49_v10 = vld [vmem:[%s676_s1 + $0x18] sm:$0xff]  ;;  %v66_v11 = vld [vmem:[%s676_s1 + $0xa0] sm:$0xff] }
   0x4   :  { %348 = vmatprep.subr.bf16.mxu0 %v347_v3  ;;  %379 = vmatprep.subr.bf16.mxu1 %v347_v3  ;;  %v67_v12 = vld [vmem:[%s676_s1 + $0xa8] sm:$0xff]  ;;  %v353_v13 = vpack.c.bf16 %v49_v10, %v48_v9  ;;  %v50_v15 = vld [vmem:[%s676_s1 + $0x20] sm:$0xff]  ;;  %v68_v17 = vld [vmem:[%s676_s1 + $0xb0] sm:$0xff] }
   0x5   :  { %350 = vmatpush3.bf16.msra.mxu0 %v349_v7  ;;  %387 = vmatpush3.bf16.msra.mxu1 %v349_v7  ;;  %v355_v14 = vpack.c.bf16 %v67_v12, %v66_v11  ;;  %v51_v16 = vld [vmem:[%s676_s1 + $0x28] sm:$0xff]  ;;  %v69_v18 = vld [vmem:[%s676_s1 + $0xb8] sm:$0xff]  ;;  %v52_v21 = vld [vmem:[%s676_s1 + $0x30] sm:$0xff] }
   0x6   :  { %352 = vmatprep.subr.bf16.mxu0 %v351_v8  ;;  %380 = vmatprep.subr.bf16.mxu1 %v351_v8  ;;  %v357_v19 = vpack.c.bf16 %v51_v16, %v50_v15  ;;  %v359_v20 = vpack.c.bf16 %v69_v18, %v68_v17  ;;  %v53_v22 = vld [vmem:[%s676_s1 + $0x38] sm:$0xff]  ;;  %v70_v23 = vld [vmem:[%s676_s1 + $0xc0] sm:$0xff]  ;;  %v71_v24 = vld [vmem:[%s676_s1 + $0xc8] sm:$0xff] }
   0x7   :  { %v15_v25 = vld [vmem:[%s677_s0 + $0x8] sm:$0xff]  ;;  %v361_v27 = vpack.c.bf16 %v53_v22, %v52_v21  ;;  %v363_v28 = vpack.c.bf16 %v71_v24, %v70_v23  ;;  %v54_v29 = vld [vmem:[%s676_s1 + $0x40] sm:$0xff]  ;;  %v72_v31 = vld [vmem:[%s676_s1 + $0xd0] sm:$0xff] }
   0x8   :  { %149 = vmatprep.mubr.f32.mxu0 %v15_v25  ;;  %v31_v26 = vld [vmem:[%s677_s0 + $0x88] sm:$0xff]  ;;  %v73_v32 = vld [vmem:[%s676_s1 + $0xd8] sm:$0xff]  ;;  %v56_v35 = vld [vmem:[%s676_s1 + $0x50] sm:$0xff] }
   0x9   :  { %354 = vmatpush3.bf16.msra.mxu0 %v353_v13  ;;  %388 = vmatpush3.bf16.msra.mxu1 %v353_v13  ;;  %v55_v30 = vld [vmem:[%s676_s1 + $0x48] sm:$0xff]  ;;  %v367_v34 = vpack.c.bf16 %v73_v32, %v72_v31  ;;  %v57_v36 = vld [vmem:[%s676_s1 + $0x58] sm:$0xff]  ;;  %v74_v37 = vld [vmem:[%s676_s1 + $0xe0] sm:$0xff] }
   0xa   :  { %356 = vmatprep.subr.bf16.mxu0 %v355_v14  ;;  %381 = vmatprep.subr.bf16.mxu1 %v355_v14  ;;  %v365_v33 = vpack.c.bf16 %v55_v30, %v54_v29  ;;  %v75_v38 = vld [vmem:[%s676_s1 + $0xe8] sm:$0xff]  ;;  %v369_v39 = vpack.c.bf16 %v57_v36, %v56_v35  ;;  %v58_v41 = vld [vmem:[%s676_s1 + $0x60] sm:$0xff]  ;;  %v76_v43 = vld [vmem:[%s676_s1 + $0xf0] sm:$0xff] }
   0xb   :  { %189 = vmatprep.mubr.f32.mxu1 %v31_v26  ;;  %v371_v40 = vpack.c.bf16 %v75_v38, %v74_v37  ;;  %v59_v42 = vld [vmem:[%s676_s1 + $0x68] sm:$0xff]  ;;  %v77_v44 = vld [vmem:[%s676_s1 + $0xf8] sm:$0xff]  ;;  %v60_v47 = vld [vmem:[%s676_s1 + $0x70] sm:$0xff] }
   0xc   :  { %v373_v45 = vpack.c.bf16 %v59_v42, %v58_v41  ;;  %v375_v46 = vpack.c.bf16 %v77_v44, %v76_v43  ;;  %v61_v48 = vld [vmem:[%s676_s1 + $0x78] sm:$0xff]  ;;  %v14_v50 = vld [vmem:[%s677_s0] sm:$0xff]  ;;  %v16_v54 = vld [vmem:[%s677_s0 + $0x10] sm:$0xff] }
   0xd   :  { %358 = vmatpush3.bf16.msra.mxu0 %v357_v19  ;;  %389 = vmatpush3.bf16.msra.mxu1 %v357_v19  ;;  %v377_v49 = vpack.c.bf16 %v61_v48, %v60_v47  ;;  %v30_v51 = vld [vmem:[%s677_s0 + $0x80] sm:$0xff]  ;;  %v17_v52 = vld [vmem:[%s677_s0 + $0x18] sm:$0xff]  ;;  %v32_v55 = vld [vmem:[%s677_s0 + $0x90] sm:$0xff] }
   0xe   :  { %360 = vmatprep.subr.bf16.mxu0 %v359_v20  ;;  %382 = vmatprep.subr.bf16.mxu1 %v359_v20  ;;  %v33_v53 = vld [vmem:[%s677_s0 + $0x98] sm:$0xff]  ;;  %v19_v56 = vld [vmem:[%s677_s0 + $0x28] sm:$0xff]  ;;  %v18_v58 = vld [vmem:[%s677_s0 + $0x20] sm:$0xff] }
   0xf   :  { %v35_v57 = vld [vmem:[%s677_s0 + $0xa8] sm:$0xff]  ;;  %v34_v59 = vld [vmem:[%s677_s0 + $0xa0] sm:$0xff]  ;;  %v21_v60 = vld [vmem:[%s677_s0 + $0x38] sm:$0xff] }
  0x10   :  { %v37_v61 = vld [vmem:[%s677_s0 + $0xb8] sm:$0xff]  ;;  %v20_v62 = vld [vmem:[%s677_s0 + $0x30] sm:$0xff]  ;;  %v23_v0 = vld [vmem:[%s677_s0 + $0x48] sm:$0xff] }
  0x11   :  { %362 = vmatpush3.bf16.msra.mxu0 %v361_v27  ;;  %390 = vmatpush3.bf16.msra.mxu1 %v361_v27  ;;  %v36_v63 = vld [vmem:[%s677_s0 + $0xb0] sm:$0xff]  ;;  %v39_v1 = vld [vmem:[%s677_s0 + $0xc8] sm:$0xff]  ;;  %v22_v2 = vld [vmem:[%s677_s0 + $0x40] sm:$0xff] }
  0x12   :  { %364 = vmatprep.subr.bf16.mxu0 %v363_v28  ;;  %383 = vmatprep.subr.bf16.mxu1 %v363_v28  ;;  %v38_v3 = vld [vmem:[%s677_s0 + $0xc0] sm:$0xff]  ;;  %v25_v4 = vld [vmem:[%s677_s0 + $0x58] sm:$0xff]  ;;  %v24_v6 = vld [vmem:[%s677_s0 + $0x50] sm:$0xff] }
  0x13   :  { %v41_v5 = vld [vmem:[%s677_s0 + $0xd8] sm:$0xff]  ;;  %v40_v7 = vld [vmem:[%s677_s0 + $0xd0] sm:$0xff]  ;;  %v27_v8 = vld [vmem:[%s677_s0 + $0x68] sm:$0xff] }
  0x14   :  { %v43_v9 = vld [vmem:[%s677_s0 + $0xe8] sm:$0xff]  ;;  %v26_v10 = vld [vmem:[%s677_s0 + $0x60] sm:$0xff]  ;;  %v29_v12 = vld [vmem:[%s677_s0 + $0x78] sm:$0xff] }
  0x15   :  { %366 = vmatpush3.bf16.msra.mxu0 %v365_v33  ;;  %391 = vmatpush3.bf16.msra.mxu1 %v365_v33  ;;  %v42_v11 = vld [vmem:[%s677_s0 + $0xe0] sm:$0xff]  ;;  %v45_v13 = vld [vmem:[%s677_s0 + $0xf8] sm:$0xff]  ;;  %v28_v14 = vld [vmem:[%s677_s0 + $0x70] sm:$0xff] }
  0x16   :  { %368 = vmatprep.subr.bf16.mxu0 %v367_v34  ;;  %384 = vmatprep.subr.bf16.mxu1 %v367_v34  ;;  %v44_v15 = vld [vmem:[%s677_s0 + $0xf0] sm:$0xff]  ;;  %v610_v18 = vld [vmem:[%s678_s2] ss:$0 sm:$0xff] }
  0x19   :  { %370 = vmatpush3.bf16.msra.mxu0 %v369_v39  ;;  %392 = vmatpush3.bf16.msra.mxu1 %v369_v39 }
  0x1a   :  { %372 = vmatprep.subr.bf16.mxu0 %v371_v40  ;;  %385 = vmatprep.subr.bf16.mxu1 %v371_v40 }
  0x1d   :  { %374 = vmatpush3.bf16.msra.mxu0 %v373_v45  ;;  %393 = vmatpush3.bf16.msra.mxu1 %v373_v45 }
  0x1e   :  { %376 = vmatprep.subr.bf16.mxu0 %v375_v46  ;;  %386 = vmatprep.subr.bf16.mxu1 %v375_v46 }
  0x21   :  { %378 = vmatpush3.bf16.msra.mxu0 %v377_v49  ;;  %394 = vmatpush3.bf16.msra.mxu1 %v377_v49 }
  0x24   :  { %150 = vmatmul.mubr.f32.vlgmr.msra.gmra.mrb[0].mxu0 %v14_v50  ;;  %190 = vmatmul.mubr.f32.vlgmr.msra.gmra.mrb[0].mxu1 %v30_v51 }
  0x25   :  { %154 = vmatprep.mubr.f32.mxu0 %v17_v52  ;;  %194 = vmatprep.mubr.f32.mxu1 %v33_v53 }
  0x28   :  { %155 = vmatmul.mubr.f32.gmra.mrb[2].mxu0 %v16_v54  ;;  %195 = vmatmul.mubr.f32.gmra.mrb[2].mxu1 %v32_v55 }
  0x29   :  { %159 = vmatprep.mubr.f32.mxu0 %v19_v56  ;;  %199 = vmatprep.mubr.f32.mxu1 %v35_v57 }
  0x2c   :  { %160 = vmatmul.mubr.f32.gmra.mrb[4].mxu0 %v18_v58  ;;  %200 = vmatmul.mubr.f32.gmra.mrb[4].mxu1 %v34_v59 }
  0x2d   :  { %164 = vmatprep.mubr.f32.mxu0 %v21_v60  ;;  %204 = vmatprep.mubr.f32.mxu1 %v37_v61 }
  0x30   :  { %165 = vmatmul.mubr.f32.gmra.mrb[6].mxu0 %v20_v62  ;;  %205 = vmatmul.mubr.f32.gmra.mrb[6].mxu1 %v36_v63 }
  0x31   :  { %169 = vmatprep.mubr.f32.mxu0 %v23_v0  ;;  %209 = vmatprep.mubr.f32.mxu1 %v39_v1 }
  0x34   :  { %170 = vmatmul.mubr.f32.gmra.mrb[8].mxu0 %v22_v2  ;;  %210 = vmatmul.mubr.f32.gmra.mrb[8].mxu1 %v38_v3 }
  0x35   :  { %174 = vmatprep.mubr.f32.mxu0 %v25_v4  ;;  %214 = vmatprep.mubr.f32.mxu1 %v41_v5 }
  0x38   :  { %175 = vmatmul.mubr.f32.gmra.mrb[10].mxu0 %v24_v6  ;;  %215 = vmatmul.mubr.f32.gmra.mrb[10].mxu1 %v40_v7 }
  0x39   :  { %179 = vmatprep.mubr.f32.mxu0 %v27_v8  ;;  %219 = vmatprep.mubr.f32.mxu1 %v43_v9 }
  0x3c   :  { %180 = vmatmul.mubr.f32.gmra.mrb[12].mxu0 %v26_v10  ;;  %220 = vmatmul.mubr.f32.gmra.mrb[12].mxu1 %v42_v11 }
  0x3d   :  { %184 = vmatprep.mubr.f32.mxu0 %v29_v12  ;;  %224 = vmatprep.mubr.f32.mxu1 %v45_v13 }
  0x40   :  { %185 = vmatmul.mubr.f32.gmra.mrb[14].mxu0 %v28_v14  ;;  %225 = vmatmul.mubr.f32.gmra.mrb[14].mxu1 %v44_v15 }
  0xf7   :  { %v299_v16 = vpop.f32.mrb[0].mxu0  ;;  %v323_v17 = vpop.f32.mrb[0].mxu1 }
  0xf8   :  { %v300_v19 = vpop.f32.mrb[1].mxu0  ;;  %v324_v20 = vpop.f32.mrb[1].mxu1 }
  0xf9   :  { %v301_v21 = vadd.f32 %v300_v19, %v299_v16  ;;  %v325_v22 = vadd.f32 %v324_v20, %v323_v17 }
  0xfb   :  { %v152_v23 = vadd.f32 %v301_v21, %v610_v18  ;;  %v192_v24 = vadd.f32 %v325_v22, %v610_v18  ;;  %v302_v25 = vpop.f32.mrb[2].mxu0  ;;  %v326_v26 = vpop.f32.mrb[2].mxu1 }
  0xfc   :  { %v303_v27 = vpop.f32.mrb[3].mxu0  ;;  %v327_v28 = vpop.f32.mrb[3].mxu1 }
  0xfd   :  { %v230_v29 = vmax.f32 %v152_v23, 0.0  ;;  %v238_v30 = vmax.f32 %v192_v24, 0.0  ;;  %v304_v31 = vadd.f32 %v303_v27, %v302_v25  ;;  %v328_v32 = vadd.f32 %v327_v28, %v326_v26 }
  0xff   :  { %246 = vst [vmem:[%s679_s3] sm:$0xff] %v230_v29  ;;  %254 = vst [vmem:[%s679_s3 + $0x40] sm:$0xff] %v238_v30  ;;  %v157_v33 = vadd.f32 %v304_v31, %v610_v18  ;;  %v197_v34 = vadd.f32 %v328_v32, %v610_v18  ;;  %v305_v35 = vpop.f32.mrb[4].mxu0  ;;  %v329_v36 = vpop.f32.mrb[4].mxu1 }
 0x100   :  { %v306_v37 = vpop.f32.mrb[5].mxu0  ;;  %v330_v38 = vpop.f32.mrb[5].mxu1 }
 0x101   :  { %v231_v39 = vmax.f32 %v157_v33, 0.0  ;;  %v239_v40 = vmax.f32 %v197_v34, 0.0  ;;  %v307_v41 = vadd.f32 %v306_v37, %v305_v35  ;;  %v331_v42 = vadd.f32 %v330_v38, %v329_v36 }
 0x103   :  { %247 = vst [vmem:[%s679_s3 + $0x8] sm:$0xff] %v231_v39  ;;  %255 = vst [vmem:[%s679_s3 + $0x48] sm:$0xff] %v239_v40  ;;  %v162_v43 = vadd.f32 %v307_v41, %v610_v18  ;;  %v202_v44 = vadd.f32 %v331_v42, %v610_v18  ;;  %v308_v45 = vpop.f32.mrb[6].mxu0  ;;  %v332_v46 = vpop.f32.mrb[6].mxu1 }
 0x104   :  { %v309_v47 = vpop.f32.mrb[7].mxu0  ;;  %v333_v48 = vpop.f32.mrb[7].mxu1 }
 0x105   :  { %v232_v49 = vmax.f32 %v162_v43, 0.0  ;;  %v240_v50 = vmax.f32 %v202_v44, 0.0  ;;  %v310_v51 = vadd.f32 %v309_v47, %v308_v45  ;;  %v334_v52 = vadd.f32 %v333_v48, %v332_v46 }
 0x107   :  { %248 = vst [vmem:[%s679_s3 + $0x10] sm:$0xff] %v232_v49  ;;  %256 = vst [vmem:[%s679_s3 + $0x50] sm:$0xff] %v240_v50  ;;  %v167_v53 = vadd.f32 %v310_v51, %v610_v18  ;;  %v207_v54 = vadd.f32 %v334_v52, %v610_v18  ;;  %v311_v55 = vpop.f32.mrb[8].mxu0  ;;  %v335_v56 = vpop.f32.mrb[8].mxu1 }
 0x108   :  { %v312_v57 = vpop.f32.mrb[9].mxu0  ;;  %v336_v58 = vpop.f32.mrb[9].mxu1 }
 0x109   :  { %v233_v59 = vmax.f32 %v167_v53, 0.0  ;;  %v241_v60 = vmax.f32 %v207_v54, 0.0  ;;  %v313_v61 = vadd.f32 %v312_v57, %v311_v55  ;;  %v337_v62 = vadd.f32 %v336_v58, %v335_v56 }
 0x10b   :  { %249 = vst [vmem:[%s679_s3 + $0x18] sm:$0xff] %v233_v59  ;;  %257 = vst [vmem:[%s679_s3 + $0x58] sm:$0xff] %v241_v60  ;;  %v172_v63 = vadd.f32 %v313_v61, %v610_v18  ;;  %v212_v0 = vadd.f32 %v337_v62, %v610_v18  ;;  %v314_v1 = vpop.f32.mrb[10].mxu0  ;;  %v338_v2 = vpop.f32.mrb[10].mxu1 }
 0x10c   :  { %v315_v3 = vpop.f32.mrb[11].mxu0  ;;  %v339_v4 = vpop.f32.mrb[11].mxu1 }
 0x10d   :  { %v234_v5 = vmax.f32 %v172_v63, 0.0  ;;  %v242_v6 = vmax.f32 %v212_v0, 0.0  ;;  %v316_v7 = vadd.f32 %v315_v3, %v314_v1  ;;  %v340_v8 = vadd.f32 %v339_v4, %v338_v2 }
 0x10f   :  { %250 = vst [vmem:[%s679_s3 + $0x20] sm:$0xff] %v234_v5  ;;  %258 = vst [vmem:[%s679_s3 + $0x60] sm:$0xff] %v242_v6  ;;  %v177_v9 = vadd.f32 %v316_v7, %v610_v18  ;;  %v217_v10 = vadd.f32 %v340_v8, %v610_v18  ;;  %v317_v11 = vpop.f32.mrb[12].mxu0  ;;  %v341_v12 = vpop.f32.mrb[12].mxu1 }
 0x110   :  { %v318_v13 = vpop.f32.mrb[13].mxu0  ;;  %v342_v14 = vpop.f32.mrb[13].mxu1 }
 0x111   :  { %v235_v15 = vmax.f32 %v177_v9, 0.0  ;;  %v243_v16 = vmax.f32 %v217_v10, 0.0  ;;  %v319_v17 = vadd.f32 %v318_v13, %v317_v11  ;;  %v343_v19 = vadd.f32 %v342_v14, %v341_v12 }
 0x113   :  { %251 = vst [vmem:[%s679_s3 + $0x28] sm:$0xff] %v235_v15  ;;  %259 = vst [vmem:[%s679_s3 + $0x68] sm:$0xff] %v243_v16  ;;  %v182_v20 = vadd.f32 %v319_v17, %v610_v18  ;;  %v222_v21 = vadd.f32 %v343_v19, %v610_v18  ;;  %v320_v22 = vpop.f32.mrb[14].mxu0  ;;  %v344_v23 = vpop.f32.mrb[14].mxu1 }
 0x114   :  { %v321_v24 = vpop.f32.mrb[15].mxu0  ;;  %v345_v25 = vpop.f32.mrb[15].mxu1 }
 0x115   :  { %v236_v26 = vmax.f32 %v182_v20, 0.0  ;;  %v244_v27 = vmax.f32 %v222_v21, 0.0  ;;  %v322_v28 = vadd.f32 %v321_v24, %v320_v22  ;;  %v346_v29 = vadd.f32 %v345_v25, %v344_v23 }
 0x117   :  { %252 = vst [vmem:[%s679_s3 + $0x30] sm:$0xff] %v236_v26  ;;  %260 = vst [vmem:[%s679_s3 + $0x70] sm:$0xff] %v244_v27  ;;  %v187_v30 = vadd.f32 %v322_v28, %v610_v18  ;;  %v227_v31 = vadd.f32 %v346_v29, %v610_v18 }
 0x119   :  { %v237_v32 = vmax.f32 %v187_v30, 0.0  ;;  %v245_v33 = vmax.f32 %v227_v31, 0.0 }
 0x11b   :  { %253 = vst [vmem:[%s679_s3 + $0x38] sm:$0xff] %v237_v32  ;;  %261 = vst [vmem:[%s679_s3 + $0x78] sm:$0xff] %v245_v33 }

// kernel: atari_a2c_forward.4
= control target key start
LH: loop header
LB: loop body
LE: loop exit
PB: predicated region body
PF: predicated region fallthrough
CT: control target
= control target key end

     0   :  { %s2504_s1 = inlined_call_operand.vmem [shape: f32[2048,128], index: 1, kind: input, shape index: {}]   ;;  %s2505_s0 = inlined_call_operand.vmem [shape: f32[18,2048], index: 0, kind: input, shape index: {}]   ;;  %s2506_s2 = inlined_call_operand.vmem [shape: f32[1,128], index: 2, kind: input, shape index: {}]   ;;  %s2507_s3 = inlined_call_operand.vmem [shape: f32[18,128], index: 3, kind: output, shape index: {}]  }
   0x1   :  { %v78_v0 = vld [vmem:[%s2504_s1 + $0x80] sm:$0xff]  ;;  %v79_v1 = vld [vmem:[%s2504_s1 + $0x88] sm:$0xff]  ;;  %v80_v11 = vld [vmem:[%s2504_s1 + $0x90] sm:$0xff] }
   0x2   :  { %v62_v2 = vld [vmem:[%s2504_s1] sm:$0xff]  ;;  %v1304_v3 = vpack.c.bf16 %v79_v1, %v78_v0  ;;  %v63_v4 = vld [vmem:[%s2504_s1 + $0x8] sm:$0xff]  ;;  %v81_v13 = vld [vmem:[%s2504_s1 + $0x98] sm:$0xff] }
   0x3   :  { %v110_v5 = vld [vmem:[%s2504_s1 + $0x180] sm:$0xff]  ;;  %v111_v6 = vld [vmem:[%s2504_s1 + $0x188] sm:$0xff]  ;;  %v1306_v7 = vpack.c.bf16 %v63_v4, %v62_v2  ;;  %v64_v14 = vld [vmem:[%s2504_s1 + $0x10] sm:$0xff]  ;;  %v1308_v16 = vpack.c.bf16 %v81_v13, %v80_v11 }
   0x4   :  { %v1336_v8 = vpack.c.bf16 %v111_v6, %v110_v5  ;;  %v94_v9 = vld [vmem:[%s2504_s1 + $0x100] sm:$0xff]  ;;  %v95_v10 = vld [vmem:[%s2504_s1 + $0x108] sm:$0xff]  ;;  %1305 = vmatprep.subr.bf16.mxu0 %v1304_v3  ;;  %v65_v15 = vld [vmem:[%s2504_s1 + $0x18] sm:$0xff] }
   0x5   :  { %v1338_v12 = vpack.c.bf16 %v95_v10, %v94_v9  ;;  %1307 = vmatpush3.bf16.msra.mxu0 %v1306_v7  ;;  %v1310_v17 = vpack.c.bf16 %v65_v15, %v64_v14  ;;  %v112_v18 = vld [vmem:[%s2504_s1 + $0x190] sm:$0xff]  ;;  %v113_v19 = vld [vmem:[%s2504_s1 + $0x198] sm:$0xff]  ;;  %v82_v23 = vld [vmem:[%s2504_s1 + $0xa0] sm:$0xff] }
   0x6   :  { %1337 = vmatprep.subr.bf16.mxu1 %v1336_v8  ;;  %v96_v20 = vld [vmem:[%s2504_s1 + $0x110] sm:$0xff]  ;;  %v1340_v21 = vpack.c.bf16 %v113_v19, %v112_v18  ;;  %v97_v22 = vld [vmem:[%s2504_s1 + $0x118] sm:$0xff]  ;;  %v83_v24 = vld [vmem:[%s2504_s1 + $0xa8] sm:$0xff]  ;;  %1309 = vmatprep.subr.bf16.mxu0 %v1308_v16 }
   0x7   :  { %1339 = vmatpush3.bf16.msra.mxu1 %v1338_v12  ;;  %v1342_v25 = vpack.c.bf16 %v97_v22, %v96_v20  ;;  %v1312_v26 = vpack.c.bf16 %v83_v24, %v82_v23  ;;  %v66_v27 = vld [vmem:[%s2504_s1 + $0x20] sm:$0xff]  ;;  %v67_v28 = vld [vmem:[%s2504_s1 + $0x28] sm:$0xff]  ;;  %v84_v35 = vld [vmem:[%s2504_s1 + $0xb0] sm:$0xff] }
   0x8   :  { %v114_v29 = vld [vmem:[%s2504_s1 + $0x1a0] sm:$0xff]  ;;  %1341 = vmatprep.subr.bf16.mxu1 %v1340_v21  ;;  %v115_v30 = vld [vmem:[%s2504_s1 + $0x1a8] sm:$0xff]  ;;  %v1314_v33 = vpack.c.bf16 %v67_v28, %v66_v27  ;;  %v85_v36 = vld [vmem:[%s2504_s1 + $0xb8] sm:$0xff] }
   0x9   :  { %v98_v31 = vld [vmem:[%s2504_s1 + $0x120] sm:$0xff]  ;;  %v99_v32 = vld [vmem:[%s2504_s1 + $0x128] sm:$0xff]  ;;  %1311 = vmatpush3.bf16.msra.mxu0 %v1310_v17  ;;  %v1344_v34 = vpack.c.bf16 %v115_v30, %v114_v29  ;;  %v68_v37 = vld [vmem:[%s2504_s1 + $0x30] sm:$0xff]  ;;  %v1316_v39 = vpack.c.bf16 %v85_v36, %v84_v35 }
   0xa   :  { %1313 = vmatprep.subr.bf16.mxu0 %v1312_v26  ;;  %v1346_v38 = vpack.c.bf16 %v99_v32, %v98_v31  ;;  %v69_v40 = vld [vmem:[%s2504_s1 + $0x38] sm:$0xff]  ;;  %v116_v41 = vld [vmem:[%s2504_s1 + $0x1b0] sm:$0xff]  ;;  %v86_v46 = vld [vmem:[%s2504_s1 + $0xc0] sm:$0xff] }
   0xb   :  { %1343 = vmatpush3.bf16.msra.mxu1 %v1342_v25  ;;  %v117_v42 = vld [vmem:[%s2504_s1 + $0x1b8] sm:$0xff]  ;;  %v100_v44 = vld [vmem:[%s2504_s1 + $0x130] sm:$0xff]  ;;  %v87_v47 = vld [vmem:[%s2504_s1 + $0xc8] sm:$0xff]  ;;  %v1318_v48 = vpack.c.bf16 %v69_v40, %v68_v37 }
   0xc   :  { %1345 = vmatprep.subr.bf16.mxu1 %v1344_v34  ;;  %v1348_v43 = vpack.c.bf16 %v117_v42, %v116_v41  ;;  %v101_v45 = vld [vmem:[%s2504_s1 + $0x138] sm:$0xff]  ;;  %v118_v49 = vld [vmem:[%s2504_s1 + $0x1c0] sm:$0xff]  ;;  %v119_v50 = vld [vmem:[%s2504_s1 + $0x1c8] sm:$0xff]  ;;  %v1320_v52 = vpack.c.bf16 %v87_v47, %v86_v46 }
   0xd   :  { %1315 = vmatpush3.bf16.msra.mxu0 %v1314_v33  ;;  %v1350_v51 = vpack.c.bf16 %v101_v45, %v100_v44  ;;  %v70_v53 = vld [vmem:[%s2504_s1 + $0x40] sm:$0xff]  ;;  %v71_v54 = vld [vmem:[%s2504_s1 + $0x48] sm:$0xff]  ;;  %v1352_v56 = vpack.c.bf16 %v119_v50, %v118_v49  ;;  %v88_v58 = vld [vmem:[%s2504_s1 + $0xd0] sm:$0xff] }
   0xe   :  { %1317 = vmatprep.subr.bf16.mxu0 %v1316_v39  ;;  %v102_v55 = vld [vmem:[%s2504_s1 + $0x140] sm:$0xff]  ;;  %v103_v57 = vld [vmem:[%s2504_s1 + $0x148] sm:$0xff]  ;;  %v89_v59 = vld [vmem:[%s2504_s1 + $0xd8] sm:$0xff]  ;;  %v1322_v62 = vpack.c.bf16 %v71_v54, %v70_v53 }
   0xf   :  { %1347 = vmatpush3.bf16.msra.mxu1 %v1346_v38  ;;  %v120_v60 = vld [vmem:[%s2504_s1 + $0x1d0] sm:$0xff]  ;;  %v121_v61 = vld [vmem:[%s2504_s1 + $0x1d8] sm:$0xff]  ;;  %v1354_v63 = vpack.c.bf16 %v103_v57, %v102_v55  ;;  %v1324_v0 = vpack.c.bf16 %v89_v59, %v88_v58  ;;  %v90_v6 = vld [vmem:[%s2504_s1 + $0xe0] sm:$0xff] }
  0x10   :  { %1349 = vmatprep.subr.bf16.mxu1 %v1348_v43  ;;  %v72_v1 = vld [vmem:[%s2504_s1 + $0x50] sm:$0xff]  ;;  %v73_v2 = vld [vmem:[%s2504_s1 + $0x58] sm:$0xff]  ;;  %v1356_v4 = vpack.c.bf16 %v121_v61, %v120_v60  ;;  %v91_v7 = vld [vmem:[%s2504_s1 + $0xe8] sm:$0xff] }
  0x11   :  { %1319 = vmatpush3.bf16.msra.mxu0 %v1318_v48  ;;  %v104_v3 = vld [vmem:[%s2504_s1 + $0x150] sm:$0xff]  ;;  %v105_v5 = vld [vmem:[%s2504_s1 + $0x158] sm:$0xff]  ;;  %v122_v8 = vld [vmem:[%s2504_s1 + $0x1e0] sm:$0xff]  ;;  %v1326_v10 = vpack.c.bf16 %v73_v2, %v72_v1  ;;  %v1328_v14 = vpack.c.bf16 %v91_v7, %v90_v6 }
  0x12   :  { %1321 = vmatprep.subr.bf16.mxu0 %v1320_v52  ;;  %v123_v9 = vld [vmem:[%s2504_s1 + $0x1e8] sm:$0xff]  ;;  %v74_v11 = vld [vmem:[%s2504_s1 + $0x60] sm:$0xff]  ;;  %v1358_v13 = vpack.c.bf16 %v105_v5, %v104_v3  ;;  %v92_v19 = vld [vmem:[%s2504_s1 + $0xf0] sm:$0xff] }
  0x13   :  { %1351 = vmatpush3.bf16.msra.mxu1 %v1350_v51  ;;  %v75_v12 = vld [vmem:[%s2504_s1 + $0x68] sm:$0xff]  ;;  %v106_v15 = vld [vmem:[%s2504_s1 + $0x160] sm:$0xff]  ;;  %v1360_v18 = vpack.c.bf16 %v123_v9, %v122_v8  ;;  %v93_v20 = vld [vmem:[%s2504_s1 + $0xf8] sm:$0xff] }
  0x14   :  { %1353 = vmatprep.subr.bf16.mxu1 %v1352_v56  ;;  %v107_v16 = vld [vmem:[%s2504_s1 + $0x168] sm:$0xff]  ;;  %v17_v21 = vld [vmem:[%s2505_s0 + $0x18] sm:$0xff]  ;;  %v124_v22 = vld [vmem:[%s2504_s1 + $0x1f0] sm:$0xff]  ;;  %v1330_v24 = vpack.c.bf16 %v75_v12, %v74_v11  ;;  %v1332_v26 = vpack.c.bf16 %v93_v20, %v92_v19 }
  0x15   :  { %1323 = vmatpush3.bf16.msra.mxu0 %v1322_v62  ;;  %v15_v17 = vld [vmem:[%s2505_s0 + $0x8] sm:$0xff]  ;;  %v125_v23 = vld [vmem:[%s2504_s1 + $0x1f8] sm:$0xff]  ;;  %469 = vmatprep.mubr.f32.mxu1 %v17_v21  ;;  %v1362_v25 = vpack.c.bf16 %v107_v16, %v106_v15  ;;  %v76_v27 = vld [vmem:[%s2504_s1 + $0x70] sm:$0xff] }
  0x16   :  { %1325 = vmatprep.subr.bf16.mxu0 %v1324_v0  ;;  %389 = vmatprep.mubr.f32.mxu0 %v15_v17  ;;  %v77_v28 = vld [vmem:[%s2504_s1 + $0x78] sm:$0xff]  ;;  %v108_v29 = vld [vmem:[%s2504_s1 + $0x170] sm:$0xff]  ;;  %v1364_v30 = vpack.c.bf16 %v125_v23, %v124_v22  ;;  %v142_v32 = vld [vmem:[%s2504_s1 + $0x280] sm:$0xff] }
  0x17   :  { %1355 = vmatpush3.bf16.msra.mxu1 %v1354_v63  ;;  %v109_v31 = vld [vmem:[%s2504_s1 + $0x178] sm:$0xff]  ;;  %v143_v33 = vld [vmem:[%s2504_s1 + $0x288] sm:$0xff]  ;;  %v174_v34 = vld [vmem:[%s2504_s1 + $0x380] sm:$0xff]  ;;  %v1334_v36 = vpack.c.bf16 %v77_v28, %v76_v27 }
  0x18   :  { %1357 = vmatprep.subr.bf16.mxu1 %v1356_v4  ;;  %v175_v35 = vld [vmem:[%s2504_s1 + $0x388] sm:$0xff]  ;;  %v1366_v37 = vpack.c.bf16 %v109_v31, %v108_v29  ;;  %v1368_v38 = vpack.c.bf16 %v143_v33, %v142_v32  ;;  %v126_v39 = vld [vmem:[%s2504_s1 + $0x200] sm:$0xff]  ;;  %v144_v44 = vld [vmem:[%s2504_s1 + $0x290] sm:$0xff] }
  0x19   :  { %1327 = vmatpush3.bf16.msra.mxu0 %v1326_v10  ;;  %v127_v40 = vld [vmem:[%s2504_s1 + $0x208] sm:$0xff]  ;;  %v158_v41 = vld [vmem:[%s2504_s1 + $0x300] sm:$0xff]  ;;  %v1400_v42 = vpack.c.bf16 %v175_v35, %v174_v34  ;;  %v145_v45 = vld [vmem:[%s2504_s1 + $0x298] sm:$0xff] }
  0x1a   :  { %1329 = vmatprep.subr.bf16.mxu0 %v1328_v14  ;;  %v159_v43 = vld [vmem:[%s2504_s1 + $0x308] sm:$0xff]  ;;  %v176_v46 = vld [vmem:[%s2504_s1 + $0x390] sm:$0xff]  ;;  %v177_v47 = vld [vmem:[%s2504_s1 + $0x398] sm:$0xff]  ;;  %v1370_v49 = vpack.c.bf16 %v127_v40, %v126_v39  ;;  %v1372_v52 = vpack.c.bf16 %v145_v45, %v144_v44 }
  0x1b   :  { %1359 = vmatpush3.bf16.msra.mxu1 %v1358_v13  ;;  %v14_v48 = vld [vmem:[%s2505_s0] sm:$0xff]  ;;  %v16_v50 = vld [vmem:[%s2505_s0 + $0x10] sm:$0xff]  ;;  %v1402_v51 = vpack.c.bf16 %v159_v43, %v158_v41  ;;  %v129_v54 = vld [vmem:[%s2504_s1 + $0x218] sm:$0xff]  ;;  %v1404_v56 = vpack.c.bf16 %v177_v47, %v176_v46 }
  0x1c   :  { %1361 = vmatprep.subr.bf16.mxu1 %v1360_v18  ;;  %v128_v53 = vld [vmem:[%s2504_s1 + $0x210] sm:$0xff]  ;;  %v161_v57 = vld [vmem:[%s2504_s1 + $0x318] sm:$0xff]  ;;  %v146_v58 = vld [vmem:[%s2504_s1 + $0x2a0] sm:$0xff] }
  0x1d   :  { %1331 = vmatpush3.bf16.msra.mxu0 %v1330_v24  ;;  %v160_v55 = vld [vmem:[%s2504_s1 + $0x310] sm:$0xff]  ;;  %v147_v59 = vld [vmem:[%s2504_s1 + $0x2a8] sm:$0xff]  ;;  %v178_v60 = vld [vmem:[%s2504_s1 + $0x3a0] sm:$0xff]  ;;  %v1374_v62 = vpack.c.bf16 %v129_v54, %v128_v53 }
  0x1e   :  { %1333 = vmatprep.subr.bf16.mxu0 %v1332_v26  ;;  %v179_v61 = vld [vmem:[%s2504_s1 + $0x3a8] sm:$0xff]  ;;  %v130_v63 = vld [vmem:[%s2504_s1 + $0x220] sm:$0xff]  ;;  %v1406_v0 = vpack.c.bf16 %v161_v57, %v160_v55  ;;  %v1376_v1 = vpack.c.bf16 %v147_v59, %v146_v58  ;;  %v148_v6 = vld [vmem:[%s2504_s1 + $0x2b0] sm:$0xff] }
  0x1f   :  { %1363 = vmatpush3.bf16.msra.mxu1 %v1362_v25  ;;  %v131_v2 = vld [vmem:[%s2504_s1 + $0x228] sm:$0xff]  ;;  %v162_v3 = vld [vmem:[%s2504_s1 + $0x320] sm:$0xff]  ;;  %v1408_v5 = vpack.c.bf16 %v179_v61, %v178_v60  ;;  %v149_v7 = vld [vmem:[%s2504_s1 + $0x2b8] sm:$0xff] }
  0x20   :  { %1365 = vmatprep.subr.bf16.mxu1 %v1364_v30  ;;  %v163_v4 = vld [vmem:[%s2504_s1 + $0x328] sm:$0xff]  ;;  %v180_v9 = vld [vmem:[%s2504_s1 + $0x3b0] sm:$0xff]  ;;  %v181_v10 = vld [vmem:[%s2504_s1 + $0x3b8] sm:$0xff]  ;;  %v1378_v12 = vpack.c.bf16 %v131_v2, %v130_v63  ;;  %v1380_v17 = vpack.c.bf16 %v149_v7, %v148_v6 }
  0x21   :  { %1335 = vmatpush3.bf16.msra.mxu0 %v1334_v36  ;;  %v31_v8 = vld [vmem:[%s2505_s0 + $0x88] sm:$0xff]  ;;  %v30_v11 = vld [vmem:[%s2505_s0 + $0x80] sm:$0xff]  ;;  %v132_v13 = vld [vmem:[%s2504_s1 + $0x230] sm:$0xff]  ;;  %v1410_v16 = vpack.c.bf16 %v163_v4, %v162_v3  ;;  %v1412_v21 = vpack.c.bf16 %v181_v10, %v180_v9 }
  0x22   :  { %1369 = vmatprep.subr.bf16.mxu0 %v1368_v38  ;;  %v133_v14 = vld [vmem:[%s2504_s1 + $0x238] sm:$0xff]  ;;  %v164_v18 = vld [vmem:[%s2504_s1 + $0x330] sm:$0xff]  ;;  %v150_v22 = vld [vmem:[%s2504_s1 + $0x2c0] sm:$0xff] }
  0x23   :  { %1367 = vmatpush3.bf16.msra.mxu1 %v1366_v37  ;;  %v33_v15 = vld [vmem:[%s2505_s0 + $0x98] sm:$0xff]  ;;  %v32_v20 = vld [vmem:[%s2505_s0 + $0x90] sm:$0xff]  ;;  %v151_v23 = vld [vmem:[%s2504_s1 + $0x2c8] sm:$0xff]  ;;  %v1382_v28 = vpack.c.bf16 %v133_v14, %v132_v13 }
  0x24   :  { %1401 = vmatprep.subr.bf16.mxu1 %v1400_v42  ;;  %390 = vmatmul.mubr.f32.vlgmr.msra.gmra.mrb[0].mxu0 %v14_v48  ;;  %v165_v19 = vld [vmem:[%s2504_s1 + $0x338] sm:$0xff]  ;;  %v47_v24 = vld [vmem:[%s2505_s0 + $0x108] sm:$0x3]  ;;  %v182_v25 = vld [vmem:[%s2504_s1 + $0x3c0] sm:$0xff]  ;;  %v1384_v33 = vpack.c.bf16 %v151_v23, %v150_v22 }
  0x25   :  { %1371 = vmatpush3.bf16.msra.mxu0 %v1370_v49  ;;  %394 = vmatprep.mubr.f32.mxu0 %v31_v8  ;;  %v183_v26 = vld [vmem:[%s2504_s1 + $0x3c8] sm:$0xff]  ;;  %v46_v27 = vld [vmem:[%s2505_s0 + $0x100] sm:$0x3]  ;;  %v49_v31 = vld [vmem:[%s2505_s0 + $0x118] sm:$0x3]  ;;  %v1414_v32 = vpack.c.bf16 %v165_v19, %v164_v18 }
  0x26   :  { %470 = vmatmul.mubr.f32.vlgmr.msra.gmra.mrb[0].mxu1 %v16_v50  ;;  %1373 = vmatprep.subr.bf16.mxu0 %v1372_v52  ;;  %v134_v29 = vld [vmem:[%s2504_s1 + $0x240] sm:$0xff]  ;;  %v135_v30 = vld [vmem:[%s2504_s1 + $0x248] sm:$0xff]  ;;  %v48_v36 = vld [vmem:[%s2505_s0 + $0x110] sm:$0x3]  ;;  %v1416_v37 = vpack.c.bf16 %v183_v26, %v182_v25 }
  0x27   :  { %1403 = vmatpush3.bf16.msra.mxu1 %v1402_v51  ;;  %474 = vmatprep.mubr.f32.mxu1 %v33_v15  ;;  %v166_v34 = vld [vmem:[%s2504_s1 + $0x340] sm:$0xff]  ;;  %v167_v35 = vld [vmem:[%s2504_s1 + $0x348] sm:$0xff]  ;;  %v152_v38 = vld [vmem:[%s2504_s1 + $0x2d0] sm:$0xff]  ;;  %v1386_v43 = vpack.c.bf16 %v135_v30, %v134_v29 }
  0x28   :  { %1405 = vmatprep.subr.bf16.mxu1 %v1404_v56  ;;  %395 = vmatmul.mubr.f32.gmra.mrb[2].mxu0 %v30_v11  ;;  %v153_v39 = vld [vmem:[%s2504_s1 + $0x2d8] sm:$0xff]  ;;  %v19_v40 = vld [vmem:[%s2505_s0 + $0x28] sm:$0xff]  ;;  %v184_v41 = vld [vmem:[%s2504_s1 + $0x3d0] sm:$0xff]  ;;  %v1418_v45 = vpack.c.bf16 %v167_v35, %v166_v34 }
  0x29   :  { %1375 = vmatpush3.bf16.msra.mxu0 %v1374_v62  ;;  %399 = vmatprep.mubr.f32.mxu0 %v47_v24  ;;  %v185_v42 = vld [vmem:[%s2504_s1 + $0x3d8] sm:$0xff]  ;;  %v1388_v46 = vpack.c.bf16 %v153_v39, %v152_v38  ;;  %v136_v47 = vld [vmem:[%s2504_s1 + $0x250] sm:$0xff]  ;;  %v154_v52 = vld [vmem:[%s2504_s1 + $0x2e0] sm:$0xff] }
  0x2a   :  { %1377 = vmatprep.subr.bf16.mxu0 %v1376_v1  ;;  %475 = vmatmul.mubr.f32.gmra.mrb[2].mxu1 %v32_v20  ;;  %v21_v44 = vld [vmem:[%s2505_s0 + $0x38] sm:$0xff]  ;;  %v168_v49 = vld [vmem:[%s2504_s1 + $0x350] sm:$0xff]  ;;  %v1420_v50 = vpack.c.bf16 %v185_v42, %v184_v41  ;;  %v155_v53 = vld [vmem:[%s2504_s1 + $0x2e8] sm:$0xff] }
  0x2b   :  { %1407 = vmatpush3.bf16.msra.mxu1 %v1406_v0  ;;  %479 = vmatprep.mubr.f32.mxu1 %v49_v31  ;;  %v137_v48 = vld [vmem:[%s2504_s1 + $0x258] sm:$0xff]  ;;  %v186_v54 = vld [vmem:[%s2504_s1 + $0x3e0] sm:$0xff]  ;;  %v187_v55 = vld [vmem:[%s2504_s1 + $0x3e8] sm:$0xff]  ;;  %v1392_v58 = vpack.c.bf16 %v155_v53, %v154_v52 }
  0x2c   :  { %1409 = vmatprep.subr.bf16.mxu1 %v1408_v5  ;;  %400 = vmatmul.mubr.f32.gmra.mrb[4].mxu0 %v46_v27  ;;  %v169_v51 = vld [vmem:[%s2504_s1 + $0x358] sm:$0xff]  ;;  %v1390_v56 = vpack.c.bf16 %v137_v48, %v136_v47  ;;  %v138_v59 = vld [vmem:[%s2504_s1 + $0x260] sm:$0xff]  ;;  %v139_v60 = vld [vmem:[%s2504_s1 + $0x268] sm:$0xff]  ;;  %v1424_v62 = vpack.c.bf16 %v187_v55, %v186_v54 }
  0x2d   :  { %1379 = vmatpush3.bf16.msra.mxu0 %v1378_v12  ;;  %549 = vmatprep.mubr.f32.mxu0 %v19_v40  ;;  %v1422_v57 = vpack.c.bf16 %v169_v51, %v168_v49  ;;  %v170_v61 = vld [vmem:[%s2504_s1 + $0x360] sm:$0xff]  ;;  %v171_v63 = vld [vmem:[%s2504_s1 + $0x368] sm:$0xff]  ;;  %v156_v0 = vld [vmem:[%s2504_s1 + $0x2f0] sm:$0xff]  ;;  %v1394_v4 = vpack.c.bf16 %v139_v60, %v138_v59 }
  0x2e   :  { %1381 = vmatprep.subr.bf16.mxu0 %v1380_v17  ;;  %480 = vmatmul.mubr.f32.gmra.mrb[4].mxu1 %v48_v36  ;;  %v157_v1 = vld [vmem:[%s2504_s1 + $0x2f8] sm:$0xff]  ;;  %v188_v2 = vld [vmem:[%s2504_s1 + $0x3f0] sm:$0xff]  ;;  %v1426_v5 = vpack.c.bf16 %v171_v63, %v170_v61  ;;  %v206_v12 = vld [vmem:[%s2504_s1 + $0x480] sm:$0xff] }
  0x2f   :  { %1411 = vmatpush3.bf16.msra.mxu1 %v1410_v16  ;;  %629 = vmatprep.mubr.f32.mxu1 %v21_v44  ;;  %v189_v3 = vld [vmem:[%s2504_s1 + $0x3f8] sm:$0xff]  ;;  %v1396_v6 = vpack.c.bf16 %v157_v1, %v156_v0  ;;  %v140_v7 = vld [vmem:[%s2504_s1 + $0x270] sm:$0xff]  ;;  %v207_v13 = vld [vmem:[%s2504_s1 + $0x488] sm:$0xff] }
  0x30   :  { %1413 = vmatprep.subr.bf16.mxu1 %v1412_v21  ;;  %v141_v8 = vld [vmem:[%s2504_s1 + $0x278] sm:$0xff]  ;;  %v172_v9 = vld [vmem:[%s2504_s1 + $0x370] sm:$0xff]  ;;  %v1428_v10 = vpack.c.bf16 %v189_v3, %v188_v2  ;;  %v238_v14 = vld [vmem:[%s2504_s1 + $0x580] sm:$0xff]  ;;  %v1432_v18 = vpack.c.bf16 %v207_v13, %v206_v12 }
  0x31   :  { %1383 = vmatpush3.bf16.msra.mxu0 %v1382_v28  ;;  %v173_v11 = vld [vmem:[%s2504_s1 + $0x378] sm:$0xff]  ;;  %v239_v15 = vld [vmem:[%s2504_s1 + $0x588] sm:$0xff]  ;;  %v1398_v16 = vpack.c.bf16 %v141_v8, %v140_v7  ;;  %v190_v19 = vld [vmem:[%s2504_s1 + $0x400] sm:$0xff] }
  0x32   :  { %1385 = vmatprep.subr.bf16.mxu0 %v1384_v33  ;;  %v1430_v17 = vpack.c.bf16 %v173_v11, %v172_v9  ;;  %v191_v20 = vld [vmem:[%s2504_s1 + $0x408] sm:$0xff]  ;;  %v1464_v21 = vpack.c.bf16 %v239_v15, %v238_v14  ;;  %v222_v22 = vld [vmem:[%s2504_s1 + $0x500] sm:$0xff]  ;;  %v208_v25 = vld [vmem:[%s2504_s1 + $0x490] sm:$0xff] }
  0x33   :  { %1415 = vmatpush3.bf16.msra.mxu1 %v1414_v32  ;;  %v223_v23 = vld [vmem:[%s2504_s1 + $0x508] sm:$0xff]  ;;  %v18_v24 = vld [vmem:[%s2505_s0 + $0x20] sm:$0xff]  ;;  %v209_v26 = vld [vmem:[%s2504_s1 + $0x498] sm:$0xff]  ;;  %v1434_v27 = vpack.c.bf16 %v191_v20, %v190_v19 }
  0x34   :  { %1417 = vmatprep.subr.bf16.mxu1 %v1416_v37  ;;  %v20_v28 = vld [vmem:[%s2505_s0 + $0x30] sm:$0xff]  ;;  %v241_v30 = vld [vmem:[%s2504_s1 + $0x598] sm:$0xff]  ;;  %v1466_v31 = vpack.c.bf16 %v223_v23, %v222_v22  ;;  %v35_v32 = vld [vmem:[%s2505_s0 + $0xa8] sm:$0xff]  ;;  %v1436_v36 = vpack.c.bf16 %v209_v26, %v208_v25 }
  0x35   :  { %1387 = vmatpush3.bf16.msra.mxu0 %v1386_v43  ;;  %v240_v29 = vld [vmem:[%s2504_s1 + $0x590] sm:$0xff]  ;;  %v193_v34 = vld [vmem:[%s2504_s1 + $0x418] sm:$0xff]  ;;  %v34_v35 = vld [vmem:[%s2505_s0 + $0xa0] sm:$0xff] }
  0x36   :  { %1389 = vmatprep.subr.bf16.mxu0 %v1388_v46  ;;  %v192_v33 = vld [vmem:[%s2504_s1 + $0x410] sm:$0xff]  ;;  %v37_v37 = vld [vmem:[%s2505_s0 + $0xb8] sm:$0xff]  ;;  %v1468_v40 = vpack.c.bf16 %v241_v30, %v240_v29  ;;  %v210_v42 = vld [vmem:[%s2504_s1 + $0x4a0] sm:$0xff] }
  0x37   :  { %1419 = vmatpush3.bf16.msra.mxu1 %v1418_v45  ;;  %v224_v38 = vld [vmem:[%s2504_s1 + $0x510] sm:$0xff]  ;;  %v225_v39 = vld [vmem:[%s2504_s1 + $0x518] sm:$0xff]  ;;  %v211_v43 = vld [vmem:[%s2504_s1 + $0x4a8] sm:$0xff]  ;;  %v1438_v44 = vpack.c.bf16 %v193_v34, %v192_v33 }
  0x38   :  { %1421 = vmatprep.subr.bf16.mxu1 %v1420_v50  ;;  %v36_v41 = vld [vmem:[%s2505_s0 + $0xb0] sm:$0xff]  ;;  %v51_v45 = vld [vmem:[%s2505_s0 + $0x128] sm:$0x3]  ;;  %v242_v46 = vld [vmem:[%s2504_s1 + $0x5a0] sm:$0xff]  ;;  %v1470_v48 = vpack.c.bf16 %v225_v39, %v224_v38  ;;  %v1440_v52 = vpack.c.bf16 %v211_v43, %v210_v42 }
  0x39   :  { %1391 = vmatpush3.bf16.msra.mxu0 %v1390_v56  ;;  %v243_v47 = vld [vmem:[%s2504_s1 + $0x5a8] sm:$0xff]  ;;  %v194_v49 = vld [vmem:[%s2504_s1 + $0x420] sm:$0xff]  ;;  %v212_v54 = vld [vmem:[%s2504_s1 + $0x4b0] sm:$0xff] }
  0x3a   :  { %1393 = vmatprep.subr.bf16.mxu0 %v1392_v58  ;;  %v195_v50 = vld [vmem:[%s2504_s1 + $0x428] sm:$0xff]  ;;  %v226_v51 = vld [vmem:[%s2504_s1 + $0x520] sm:$0xff]  ;;  %v213_v55 = vld [vmem:[%s2504_s1 + $0x4b8] sm:$0xff] }
  0x3b   :  { %1423 = vmatpush3.bf16.msra.mxu1 %v1422_v57  ;;  %v227_v53 = vld [vmem:[%s2504_s1 + $0x528] sm:$0xff]  ;;  %v53_v56 = vld [vmem:[%s2505_s0 + $0x138] sm:$0x3]  ;;  %v1472_v57 = vpack.c.bf16 %v243_v47, %v242_v46  ;;  %v244_v58 = vld [vmem:[%s2504_s1 + $0x5b0] sm:$0xff]  ;;  %v1442_v61 = vpack.c.bf16 %v195_v50, %v194_v49  ;;  %v1444_v0 = vpack.c.bf16 %v213_v55, %v212_v54 }
  0x3c   :  { %1425 = vmatprep.subr.bf16.mxu1 %v1424_v62  ;;  %v245_v59 = vld [vmem:[%s2504_s1 + $0x5b8] sm:$0xff]  ;;  %v50_v60 = vld [vmem:[%s2505_s0 + $0x120] sm:$0x3]  ;;  %v52_v62 = vld [vmem:[%s2505_s0 + $0x130] sm:$0x3]  ;;  %v1474_v63 = vpack.c.bf16 %v227_v53, %v226_v51 }
  0x3d   :  { %1395 = vmatpush3.bf16.msra.mxu0 %v1394_v4  ;;  %v196_v1 = vld [vmem:[%s2504_s1 + $0x430] sm:$0xff]  ;;  %v197_v2 = vld [vmem:[%s2504_s1 + $0x438] sm:$0xff]  ;;  %v1476_v4 = vpack.c.bf16 %v245_v59, %v244_v58  ;;  %v215_v7 = vld [vmem:[%s2504_s1 + $0x4c8] sm:$0xff] }
  0x3e   :  { %1397 = vmatprep.subr.bf16.mxu0 %v1396_v6  ;;  %v228_v3 = vld [vmem:[%s2504_s1 + $0x530] sm:$0xff]  ;;  %v214_v6 = vld [vmem:[%s2504_s1 + $0x4c0] sm:$0xff]  ;;  %v247_v9 = vld [vmem:[%s2504_s1 + $0x5c8] sm:$0xff]  ;;  %v1446_v11 = vpack.c.bf16 %v197_v2, %v196_v1 }
  0x3f   :  { %1427 = vmatpush3.bf16.msra.mxu1 %v1426_v5  ;;  %v229_v5 = vld [vmem:[%s2504_s1 + $0x538] sm:$0xff]  ;;  %v246_v8 = vld [vmem:[%s2504_s1 + $0x5c0] sm:$0xff]  ;;  %v1448_v14 = vpack.c.bf16 %v215_v7, %v214_v6  ;;  %v231_v19 = vld [vmem:[%s2504_s1 + $0x548] sm:$0xff] }
  0x40   :  { %1429 = vmatprep.subr.bf16.mxu1 %v1428_v10  ;;  %v23_v10 = vld [vmem:[%s2505_s0 + $0x48] sm:$0xff]  ;;  %v25_v12 = vld [vmem:[%s2505_s0 + $0x58] sm:$0xff]  ;;  %v1478_v13 = vpack.c.bf16 %v229_v5, %v228_v3  ;;  %v198_v15 = vld [vmem:[%s2504_s1 + $0x440] sm:$0xff] }
  0x41   :  { %1399 = vmatpush3.bf16.msra.mxu0 %v1398_v16  ;;  %v199_v16 = vld [vmem:[%s2504_s1 + $0x448] sm:$0xff]  ;;  %v216_v20 = vld [vmem:[%s2504_s1 + $0x4d0] sm:$0xff]  ;;  %v249_v23 = vld [vmem:[%s2504_s1 + $0x5d8] sm:$0xff] }
  0x42   :  { %1433 = vmatprep.subr.bf16.mxu0 %v1432_v18  ;;  %v1480_v18 = vpack.c.bf16 %v247_v9, %v246_v8  ;;  %v248_v22 = vld [vmem:[%s2504_s1 + $0x5d0] sm:$0xff]  ;;  %v219_v33 = vld [vmem:[%s2504_s1 + $0x4e8] sm:$0xff]  ;;  %v250_v34 = vld [vmem:[%s2504_s1 + $0x5e0] sm:$0xff] }
  0x43   :  { %1431 = vmatpush3.bf16.msra.mxu1 %v1430_v17  ;;  %v230_v17 = vld [vmem:[%s2504_s1 + $0x540] sm:$0xff]  ;;  %v232_v29 = vld [vmem:[%s2504_s1 + $0x550] sm:$0xff]  ;;  %v1484_v30 = vpack.c.bf16 %v249_v23, %v248_v22  ;;  %v235_v43 = vld [vmem:[%s2504_s1 + $0x568] sm:$0xff] }
  0x44   :  { %1465 = vmatprep.subr.bf16.mxu1 %v1464_v21  ;;  %550 = vmatmul.mubr.f32.vlgmr.msra.gmra.mrb[6].mxu0 %v18_v24  ;;  %v217_v21 = vld [vmem:[%s2504_s1 + $0x4d8] sm:$0xff]  ;;  %v1450_v24 = vpack.c.bf16 %v199_v16, %v198_v15  ;;  %v1482_v25 = vpack.c.bf16 %v231_v19, %v230_v17  ;;  %v202_v39 = vld [vmem:[%s2504_s1 + $0x460] sm:$0xff]  ;;  %v252_v46 = vld [vmem:[%s2504_s1 + $0x5f0] sm:$0xff] }
  0x45   :  { %1435 = vmatpush3.bf16.msra.mxu0 %v1434_v27  ;;  %554 = vmatprep.mubr.f32.mxu0 %v35_v32  ;;  %v1452_v26 = vpack.c.bf16 %v217_v21, %v216_v20  ;;  %v200_v27 = vld [vmem:[%s2504_s1 + $0x450] sm:$0xff]  ;;  %v218_v32 = vld [vmem:[%s2504_s1 + $0x4e0] sm:$0xff]  ;;  %v253_v47 = vld [vmem:[%s2504_s1 + $0x5f8] sm:$0xff] }
  0x46   :  { %630 = vmatmul.mubr.f32.vlgmr.msra.gmra.mrb[6].mxu1 %v20_v28  ;;  %1437 = vmatprep.subr.bf16.mxu0 %v1436_v36  ;;  %v201_v28 = vld [vmem:[%s2504_s1 + $0x458] sm:$0xff]  ;;  %v1456_v38 = vpack.c.bf16 %v219_v33, %v218_v32  ;;  %v204_v51 = vld [vmem:[%s2504_s1 + $0x470] sm:$0xff]  ;;  %v1492_v54 = vpack.c.bf16 %v253_v47, %v252_v46  ;;  %v302_v58 = vld [vmem:[%s2504_s1 + $0x780] sm:$0xff] }
  0x47   :  { %1467 = vmatpush3.bf16.msra.mxu1 %v1466_v31  ;;  %634 = vmatprep.mubr.f32.mxu1 %v37_v37  ;;  %v233_v31 = vld [vmem:[%s2504_s1 + $0x558] sm:$0xff]  ;;  %v1454_v36 = vpack.c.bf16 %v201_v28, %v200_v27  ;;  %v236_v53 = vld [vmem:[%s2504_s1 + $0x570] sm:$0xff]  ;;  %v303_v59 = vld [vmem:[%s2504_s1 + $0x788] sm:$0xff] }
  0x48   :  { %555 = vmatmul.mubr.f32.gmra.mrb[8].mxu0 %v34_v35  ;;  %1469 = vmatprep.subr.bf16.mxu1 %v1468_v40  ;;  %v251_v35 = vld [vmem:[%s2504_s1 + $0x5e8] sm:$0xff]  ;;  %v1486_v37 = vpack.c.bf16 %v233_v31, %v232_v29  ;;  %v237_v55 = vld [vmem:[%s2504_s1 + $0x578] sm:$0xff]  ;;  %v1528_v1 = vpack.c.bf16 %v303_v59, %v302_v58  ;;  %v286_v2 = vld [vmem:[%s2504_s1 + $0x700] sm:$0xff] }
  0x49   :  { %1439 = vmatpush3.bf16.msra.mxu0 %v1438_v44  ;;  %559 = vmatprep.mubr.f32.mxu0 %v51_v45  ;;  %v203_v40 = vld [vmem:[%s2504_s1 + $0x468] sm:$0xff]  ;;  %v1488_v42 = vpack.c.bf16 %v251_v35, %v250_v34  ;;  %v220_v44 = vld [vmem:[%s2504_s1 + $0x4f0] sm:$0xff]  ;;  %v221_v45 = vld [vmem:[%s2504_s1 + $0x4f8] sm:$0xff] }
  0x4a   :  { %635 = vmatmul.mubr.f32.gmra.mrb[8].mxu1 %v36_v41  ;;  %1441 = vmatprep.subr.bf16.mxu0 %v1440_v52  ;;  %v234_v41 = vld [vmem:[%s2504_s1 + $0x560] sm:$0xff]  ;;  %v1460_v50 = vpack.c.bf16 %v221_v45, %v220_v44  ;;  %v205_v52 = vld [vmem:[%s2504_s1 + $0x478] sm:$0xff]  ;;  %v287_v3 = vld [vmem:[%s2504_s1 + $0x708] sm:$0xff] }
  0x4b   :  { %1471 = vmatpush3.bf16.msra.mxu1 %v1470_v48  ;;  %639 = vmatprep.mubr.f32.mxu1 %v53_v56  ;;  %v1458_v48 = vpack.c.bf16 %v203_v40, %v202_v39  ;;  %v1490_v49 = vpack.c.bf16 %v235_v43, %v234_v41  ;;  %v270_v56 = vld [vmem:[%s2504_s1 + $0x680] sm:$0xff]  ;;  %v272_v5 = vld [vmem:[%s2504_s1 + $0x690] sm:$0xff]  ;;  %v273_v6 = vld [vmem:[%s2504_s1 + $0x698] sm:$0xff] }
  0x4c   :  { %560 = vmatmul.mubr.f32.gmra.mrb[10].mxu0 %v50_v60  ;;  %1473 = vmatprep.subr.bf16.mxu1 %v1472_v57  ;;  %v271_v57 = vld [vmem:[%s2504_s1 + $0x688] sm:$0xff]  ;;  %v1462_v60 = vpack.c.bf16 %v205_v52, %v204_v51  ;;  %v24_v8 = vld [vmem:[%s2505_s0 + $0x50] sm:$0xff]  ;;  %v38_v15 = vld [vmem:[%s2505_s0 + $0xc0] sm:$0xff]  ;;  %v1500_v16 = vpack.c.bf16 %v273_v6, %v272_v5 }
  0x4d   :  { %1443 = vmatpush3.bf16.msra.mxu0 %v1442_v61  ;;  %709 = vmatprep.mubr.f32.mxu0 %v23_v10  ;;  %v1494_v61 = vpack.c.bf16 %v237_v55, %v236_v53  ;;  %v304_v9 = vld [vmem:[%s2504_s1 + $0x790] sm:$0xff]  ;;  %v305_v10 = vld [vmem:[%s2504_s1 + $0x798] sm:$0xff]  ;;  %v274_v22 = vld [vmem:[%s2504_s1 + $0x6a0] sm:$0xff] }
  0x4e   :  { %640 = vmatmul.mubr.f32.gmra.mrb[10].mxu1 %v52_v62  ;;  %1445 = vmatprep.subr.bf16.mxu0 %v1444_v0  ;;  %v1496_v62 = vpack.c.bf16 %v271_v57, %v270_v56  ;;  %v255_v0 = vld [vmem:[%s2504_s1 + $0x608] sm:$0xff]  ;;  %v41_v17 = vld [vmem:[%s2505_s0 + $0xd8] sm:$0xff]  ;;  %v1532_v20 = vpack.c.bf16 %v305_v10, %v304_v9  ;;  %v40_v21 = vld [vmem:[%s2505_s0 + $0xd0] sm:$0xff] }
  0x4f   :  { %1475 = vmatpush3.bf16.msra.mxu1 %v1474_v63  ;;  %789 = vmatprep.mubr.f32.mxu1 %v25_v12  ;;  %v254_v63 = vld [vmem:[%s2504_s1 + $0x600] sm:$0xff]  ;;  %v39_v12 = vld [vmem:[%s2505_s0 + $0xc8] sm:$0xff]  ;;  %v289_v19 = vld [vmem:[%s2504_s1 + $0x718] sm:$0xff] }
  0x50   :  { %1477 = vmatprep.subr.bf16.mxu1 %v1476_v4  ;;  %v22_v4 = vld [vmem:[%s2505_s0 + $0x40] sm:$0xff]  ;;  %v1498_v7 = vpack.c.bf16 %v255_v0, %v254_v63  ;;  %v275_v23 = vld [vmem:[%s2504_s1 + $0x6a8] sm:$0xff]  ;;  %v276_v34 = vld [vmem:[%s2504_s1 + $0x6b0] sm:$0xff] }
  0x51   :  { %1447 = vmatpush3.bf16.msra.mxu0 %v1446_v11  ;;  %v1530_v11 = vpack.c.bf16 %v287_v3, %v286_v2  ;;  %v307_v27 = vld [vmem:[%s2504_s1 + $0x7a8] sm:$0xff]  ;;  %v258_v29 = vld [vmem:[%s2504_s1 + $0x620] sm:$0xff]  ;;  %v1504_v32 = vpack.c.bf16 %v275_v23, %v274_v22  ;;  %v277_v35 = vld [vmem:[%s2504_s1 + $0x6b8] sm:$0xff] }
  0x52   :  { %1449 = vmatprep.subr.bf16.mxu0 %v1448_v14  ;;  %v257_v14 = vld [vmem:[%s2504_s1 + $0x618] sm:$0xff]  ;;  %v290_v31 = vld [vmem:[%s2504_s1 + $0x720] sm:$0xff]  ;;  %v291_v33 = vld [vmem:[%s2504_s1 + $0x728] sm:$0xff]  ;;  %v1508_v44 = vpack.c.bf16 %v277_v35, %v276_v34 }
  0x53   :  { %1479 = vmatpush3.bf16.msra.mxu1 %v1478_v13  ;;  %v256_v13 = vld [vmem:[%s2504_s1 + $0x610] sm:$0xff]  ;;  %v309_v39 = vld [vmem:[%s2504_s1 + $0x7b8] sm:$0xff]  ;;  %v54_v40 = vld [vmem:[%s2505_s0 + $0x140] sm:$0x3]  ;;  %v1538_v43 = vpack.c.bf16 %v291_v33, %v290_v31 }
  0x54   :  { %1481 = vmatprep.subr.bf16.mxu1 %v1480_v18  ;;  %v288_v18 = vld [vmem:[%s2504_s1 + $0x710] sm:$0xff]  ;;  %v261_v46 = vld [vmem:[%s2504_s1 + $0x638] sm:$0xff]  ;;  %v279_v51 = vld [vmem:[%s2504_s1 + $0x6c8] sm:$0xff] }
  0x55   :  { %1451 = vmatpush3.bf16.msra.mxu0 %v1450_v24  ;;  %v1502_v24 = vpack.c.bf16 %v257_v14, %v256_v13  ;;  %v1534_v28 = vpack.c.bf16 %v289_v19, %v288_v18  ;;  %v260_v45 = vld [vmem:[%s2504_s1 + $0x630] sm:$0xff]  ;;  %v310_v52 = vld [vmem:[%s2504_s1 + $0x7c0] sm:$0xff]  ;;  %v311_v53 = vld [vmem:[%s2504_s1 + $0x7c8] sm:$0xff] }
  0x56   :  { %1453 = vmatprep.subr.bf16.mxu0 %v1452_v26  ;;  %v306_v26 = vld [vmem:[%s2504_s1 + $0x7a0] sm:$0xff]  ;;  %v292_v47 = vld [vmem:[%s2504_s1 + $0x730] sm:$0xff]  ;;  %v1510_v55 = vpack.c.bf16 %v261_v46, %v260_v45  ;;  %v29_v56 = vld [vmem:[%s2505_s0 + $0x78] sm:$0xff] }
  0x57   :  { %1483 = vmatpush3.bf16.msra.mxu1 %v1482_v25  ;;  %v55_v25 = vld [vmem:[%s2505_s0 + $0x148] sm:$0x3]  ;;  %v262_v59 = vld [vmem:[%s2504_s1 + $0x640] sm:$0xff]  ;;  %v280_v0 = vld [vmem:[%s2504_s1 + $0x6d0] sm:$0xff] }
  0x58   :  { %1485 = vmatprep.subr.bf16.mxu1 %v1484_v30  ;;  %v259_v30 = vld [vmem:[%s2504_s1 + $0x628] sm:$0xff]  ;;  %v312_v2 = vld [vmem:[%s2504_s1 + $0x7d0] sm:$0xff]  ;;  %v313_v3 = vld [vmem:[%s2504_s1 + $0x7d8] sm:$0xff] }
  0x59   :  { %1455 = vmatpush3.bf16.msra.mxu0 %v1454_v36  ;;  %v57_v36 = vld [vmem:[%s2505_s0 + $0x158] sm:$0x3]  ;;  %v1506_v41 = vpack.c.bf16 %v259_v30, %v258_v29  ;;  %v295_v63 = vld [vmem:[%s2504_s1 + $0x748] sm:$0xff]  ;;  %v296_v9 = vld [vmem:[%s2504_s1 + $0x750] sm:$0xff]  ;;  %v1548_v10 = vpack.c.bf16 %v313_v3, %v312_v2 }
  0x5a   :  { %1457 = vmatprep.subr.bf16.mxu0 %v1456_v38  ;;  %v308_v38 = vld [vmem:[%s2504_s1 + $0x7b0] sm:$0xff]  ;;  %v283_v13 = vld [vmem:[%s2504_s1 + $0x6e8] sm:$0xff]  ;;  %v314_v14 = vld [vmem:[%s2504_s1 + $0x7e0] sm:$0xff] }
  0x5b   :  { %1487 = vmatpush3.bf16.msra.mxu1 %v1486_v37  ;;  %v1536_v37 = vpack.c.bf16 %v307_v27, %v306_v26  ;;  %v266_v19 = vld [vmem:[%s2504_s1 + $0x660] sm:$0xff]  ;;  %v299_v23 = vld [vmem:[%s2504_s1 + $0x768] sm:$0xff]  ;;  %v316_v26 = vld [vmem:[%s2504_s1 + $0x7f0] sm:$0xff] }
  0x5c   :  { %1489 = vmatprep.subr.bf16.mxu1 %v1488_v42  ;;  %v56_v42 = vld [vmem:[%s2505_s0 + $0x150] sm:$0x3]  ;;  %v317_v27 = vld [vmem:[%s2504_s1 + $0x7f8] sm:$0xff]  ;;  %v58_v46 = vld [vmem:[%s2505_s0 + $0x160] sm:$0x3] }
  0x5d   :  { %1459 = vmatpush3.bf16.msra.mxu0 %v1458_v48  ;;  %v1540_v48 = vpack.c.bf16 %v309_v39, %v308_v38  ;;  %v268_v31 = vld [vmem:[%s2504_s1 + $0x670] sm:$0xff]  ;;  %v1556_v33 = vpack.c.bf16 %v317_v27, %v316_v26  ;;  %v301_v35 = vld [vmem:[%s2504_s1 + $0x778] sm:$0xff]  ;;  %v26_v38 = vld [vmem:[%s2505_s0 + $0x60] sm:$0xff] }
  0x5e   :  { %1461 = vmatprep.subr.bf16.mxu0 %v1460_v50  ;;  %v278_v50 = vld [vmem:[%s2504_s1 + $0x6c0] sm:$0xff]  ;;  %v300_v34 = vld [vmem:[%s2504_s1 + $0x770] sm:$0xff]  ;;  %v61_v45 = vld [vmem:[%s2505_s0 + $0x178] sm:$0x3] }
  0x5f   :  { %1491 = vmatpush3.bf16.msra.mxu1 %v1490_v49  ;;  %v293_v49 = vld [vmem:[%s2504_s1 + $0x738] sm:$0xff]  ;;  %v1512_v58 = vpack.c.bf16 %v279_v51, %v278_v50  ;;  %v28_v39 = vld [vmem:[%s2505_s0 + $0x70] sm:$0xff] }
  0x60   :  { %1493 = vmatprep.subr.bf16.mxu1 %v1492_v54  ;;  %v27_v54 = vld [vmem:[%s2505_s0 + $0x68] sm:$0xff]  ;;  %v1542_v57 = vpack.c.bf16 %v293_v49, %v292_v47  ;;  %v60_v47 = vld [vmem:[%s2505_s0 + $0x170] sm:$0x3]  ;;  %v975_v49 = vld [vmem:[%s2506_s2] ss:$0 sm:$0xff] }
  0x61   :  { %1463 = vmatpush3.bf16.msra.mxu0 %v1462_v60  ;;  %v263_v60 = vld [vmem:[%s2504_s1 + $0x648] sm:$0xff] }
  0x62   :  { %1497 = vmatprep.subr.bf16.mxu0 %v1496_v62  ;;  %v1544_v62 = vpack.c.bf16 %v311_v53, %v310_v52 }
  0x63   :  { %1495 = vmatpush3.bf16.msra.mxu1 %v1494_v61  ;;  %v294_v61 = vld [vmem:[%s2504_s1 + $0x740] sm:$0xff] }
  0x64   :  { %1529 = vmatprep.subr.bf16.mxu1 %v1528_v1  ;;  %710 = vmatmul.mubr.f32.vlgmr.msra.gmra.mrb[12].mxu0 %v22_v4  ;;  %v281_v1 = vld [vmem:[%s2504_s1 + $0x6d8] sm:$0xff]  ;;  %v1514_v4 = vpack.c.bf16 %v263_v60, %v262_v59  ;;  %v1546_v5 = vpack.c.bf16 %v295_v63, %v294_v61 }
  0x65   :  { %1499 = vmatpush3.bf16.msra.mxu0 %v1498_v7  ;;  %714 = vmatprep.mubr.f32.mxu0 %v39_v12  ;;  %v1516_v6 = vpack.c.bf16 %v281_v1, %v280_v0  ;;  %v264_v7 = vld [vmem:[%s2504_s1 + $0x650] sm:$0xff]  ;;  %v282_v12 = vld [vmem:[%s2504_s1 + $0x6e0] sm:$0xff] }
  0x66   :  { %790 = vmatmul.mubr.f32.vlgmr.msra.gmra.mrb[12].mxu1 %v24_v8  ;;  %1501 = vmatprep.subr.bf16.mxu0 %v1500_v16  ;;  %v265_v8 = vld [vmem:[%s2504_s1 + $0x658] sm:$0xff]  ;;  %v1520_v18 = vpack.c.bf16 %v283_v13, %v282_v12 }
  0x67   :  { %1531 = vmatpush3.bf16.msra.mxu1 %v1530_v11  ;;  %794 = vmatprep.mubr.f32.mxu1 %v41_v17  ;;  %v297_v11 = vld [vmem:[%s2504_s1 + $0x758] sm:$0xff]  ;;  %v1518_v16 = vpack.c.bf16 %v265_v8, %v264_v7 }
  0x68   :  { %715 = vmatmul.mubr.f32.gmra.mrb[14].mxu0 %v38_v15  ;;  %1533 = vmatprep.subr.bf16.mxu1 %v1532_v20  ;;  %v315_v15 = vld [vmem:[%s2504_s1 + $0x7e8] sm:$0xff]  ;;  %v1550_v17 = vpack.c.bf16 %v297_v11, %v296_v9 }
  0x69   :  { %1503 = vmatpush3.bf16.msra.mxu0 %v1502_v24  ;;  %719 = vmatprep.mubr.f32.mxu0 %v55_v25  ;;  %v267_v20 = vld [vmem:[%s2504_s1 + $0x668] sm:$0xff]  ;;  %v1552_v22 = vpack.c.bf16 %v315_v15, %v314_v14  ;;  %v284_v24 = vld [vmem:[%s2504_s1 + $0x6f0] sm:$0xff]  ;;  %v285_v25 = vld [vmem:[%s2504_s1 + $0x6f8] sm:$0xff] }
  0x6a   :  { %795 = vmatmul.mubr.f32.gmra.mrb[14].mxu1 %v40_v21  ;;  %1505 = vmatprep.subr.bf16.mxu0 %v1504_v32  ;;  %v298_v21 = vld [vmem:[%s2504_s1 + $0x760] sm:$0xff]  ;;  %v1524_v30 = vpack.c.bf16 %v285_v25, %v284_v24  ;;  %v269_v32 = vld [vmem:[%s2504_s1 + $0x678] sm:$0xff] }
  0x6b   :  { %1535 = vmatpush3.bf16.msra.mxu1 %v1534_v28  ;;  %799 = vmatprep.mubr.f32.mxu1 %v57_v36  ;;  %v1522_v28 = vpack.c.bf16 %v267_v20, %v266_v19  ;;  %v1554_v29 = vpack.c.bf16 %v299_v23, %v298_v21  ;;  %v1526_v36 = vpack.c.bf16 %v269_v32, %v268_v31 }
  0x6c   :  { %720 = vmatmul.mubr.f32.gmra.mrb[16].mxu0 %v54_v40  ;;  %1537 = vmatprep.subr.bf16.mxu1 %v1536_v37  ;;  %v1558_v37 = vpack.c.bf16 %v301_v35, %v300_v34  ;;  %v43_v40 = vld [vmem:[%s2505_s0 + $0xe8] sm:$0xff] }
  0x6d   :  { %1507 = vmatpush3.bf16.msra.mxu0 %v1506_v41  ;;  %869 = vmatprep.mubr.f32.mxu0 %v27_v54  ;;  %v45_v41 = vld [vmem:[%s2505_s0 + $0xf8] sm:$0xff] }
  0x6e   :  { %800 = vmatmul.mubr.f32.gmra.mrb[16].mxu1 %v56_v42  ;;  %1509 = vmatprep.subr.bf16.mxu0 %v1508_v44  ;;  %v42_v42 = vld [vmem:[%s2505_s0 + $0xe0] sm:$0xff]  ;;  %v59_v44 = vld [vmem:[%s2505_s0 + $0x168] sm:$0x3] }
  0x6f   :  { %1539 = vmatpush3.bf16.msra.mxu1 %v1538_v43  ;;  %949 = vmatprep.mubr.f32.mxu1 %v29_v56  ;;  %v44_v43 = vld [vmem:[%s2505_s0 + $0xf0] sm:$0xff] }
  0x70   :  { %1541 = vmatprep.subr.bf16.mxu1 %v1540_v48 }
  0x71   :  { %1511 = vmatpush3.bf16.msra.mxu0 %v1510_v55 }
  0x72   :  { %1513 = vmatprep.subr.bf16.mxu0 %v1512_v58 }
  0x73   :  { %1543 = vmatpush3.bf16.msra.mxu1 %v1542_v57 }
  0x74   :  { %1545 = vmatprep.subr.bf16.mxu1 %v1544_v62 }
  0x75   :  { %1515 = vmatpush3.bf16.msra.mxu0 %v1514_v4 }
  0x76   :  { %1517 = vmatprep.subr.bf16.mxu0 %v1516_v6 }
  0x77   :  { %1547 = vmatpush3.bf16.msra.mxu1 %v1546_v5 }
  0x78   :  { %1549 = vmatprep.subr.bf16.mxu1 %v1548_v10 }
  0x79   :  { %1519 = vmatpush3.bf16.msra.mxu0 %v1518_v16 }
  0x7a   :  { %1521 = vmatprep.subr.bf16.mxu0 %v1520_v18 }
  0x7b   :  { %1551 = vmatpush3.bf16.msra.mxu1 %v1550_v17 }
  0x7c   :  { %1553 = vmatprep.subr.bf16.mxu1 %v1552_v22 }
  0x7d   :  { %1523 = vmatpush3.bf16.msra.mxu0 %v1522_v28 }
  0x7e   :  { %1525 = vmatprep.subr.bf16.mxu0 %v1524_v30 }
  0x7f   :  { %1555 = vmatpush3.bf16.msra.mxu1 %v1554_v29 }
  0x80   :  { %1557 = vmatprep.subr.bf16.mxu1 %v1556_v33 }
  0x81   :  { %1527 = vmatpush3.bf16.msra.mxu0 %v1526_v36 }
  0x83   :  { %1559 = vmatpush3.bf16.msra.mxu1 %v1558_v37 }
  0x84   :  { %870 = vmatmul.mubr.f32.vlgmr.msra.gmra.mrb[18].mxu0 %v26_v38 }
  0x85   :  { %874 = vmatprep.mubr.f32.mxu0 %v43_v40 }
  0x86   :  { %950 = vmatmul.mubr.f32.vlgmr.msra.gmra.mrb[18].mxu1 %v28_v39 }
  0x87   :  { %954 = vmatprep.mubr.f32.mxu1 %v45_v41 }
  0x88   :  { %875 = vmatmul.mubr.f32.gmra.mrb[20].mxu0 %v42_v42 }
  0x89   :  { %879 = vmatprep.mubr.f32.mxu0 %v59_v44 }
  0x8a   :  { %955 = vmatmul.mubr.f32.gmra.mrb[20].mxu1 %v44_v43 }
  0x8b   :  { %959 = vmatprep.mubr.f32.mxu1 %v61_v45 }
  0x8c   :  { %880 = vmatmul.mubr.f32.gmra.mrb[22].mxu0 %v58_v46 }
  0x8e   :  { %960 = vmatmul.mubr.f32.gmra.mrb[22].mxu1 %v60_v47 }
  0xf7   :  { %v1008_v48 = vpop.f32.mrb[0].mxu0 }
  0xf8   :  { %v1009_v50 = vpop.f32.mrb[1].mxu0 }
  0xf9   :  { %v1049_v51 = vpop.f32.mrb[0].mxu1  ;;  %v1010_v52 = vadd.f32 %v1009_v50, %v1008_v48 }
  0xfa   :  { %v1050_v53 = vpop.f32.mrb[1].mxu1 }
  0xfb   :  { %v1051_v54 = vadd.f32 %v1050_v53, %v1049_v51  ;;  %v392_v55 = vadd.f32 %v1010_v52, %v975_v49  ;;  %v1011_v57 = vpop.f32.mrb[2].mxu0 }
  0xfc   :  { %v1012_v58 = vpop.f32.mrb[3].mxu0 }
  0xfd   :  { %v472_v56 = vadd.f32 %v1051_v54, %v392_v55  ;;  %v1013_v59 = vadd.f32 %v1012_v58, %v1011_v57  ;;  %v1052_v60 = vpop.f32.mrb[2].mxu1 }
  0xfe   :  { %v1053_v61 = vpop.f32.mrb[3].mxu1 }
  0xff   :  { %v397_v62 = vadd.f32 %v1013_v59, %v975_v49  ;;  %v1054_v63 = vadd.f32 %v1053_v61, %v1052_v60  ;;  %v1014_v0 = vpop.f32.mrb[4].mxu0 }
 0x100   :  { %v1015_v1 = vpop.f32.mrb[5].mxu0 }
 0x101   :  { %v477_v2 = vadd.f32 %v1054_v63, %v397_v62  ;;  %v1016_v3 = vadd.f32 %v1015_v1, %v1014_v0  ;;  %v1055_v4 = vpop.f32.mrb[4].mxu1 }
 0x102   :  { %v1056_v5 = vpop.f32.mrb[5].mxu1 }
 0x103   :  { %v402_v6 = vadd.f32 %v1016_v3, %v975_v49  ;;  %v1057_v7 = vadd.f32 %v1056_v5, %v1055_v4 }
 0x105   :  { %v482_v8 = vadd.f32 %v1057_v7, %v402_v6 }
 0x117   :  { %v1090_v9 = vpop.f32.mrb[6].mxu0 }
 0x118   :  { %v1091_v10 = vpop.f32.mrb[7].mxu0 }
 0x119   :  { %v1131_v11 = vpop.f32.mrb[6].mxu1  ;;  %v1092_v12 = vadd.f32 %v1091_v10, %v1090_v9 }
 0x11a   :  { %v1132_v13 = vpop.f32.mrb[7].mxu1 }
 0x11b   :  { %v1133_v14 = vadd.f32 %v1132_v13, %v1131_v11  ;;  %v552_v15 = vadd.f32 %v1092_v12, %v472_v56  ;;  %v1093_v16 = vpop.f32.mrb[8].mxu0 }
 0x11c   :  { %v1094_v17 = vpop.f32.mrb[9].mxu0 }
 0x11d   :  { %v1134_v18 = vpop.f32.mrb[8].mxu1  ;;  %v632_v19 = vadd.f32 %v1133_v14, %v552_v15  ;;  %v1095_v20 = vadd.f32 %v1094_v17, %v1093_v16 }
 0x11e   :  { %v1135_v21 = vpop.f32.mrb[9].mxu1 }
 0x11f   :  { %v1136_v22 = vadd.f32 %v1135_v21, %v1134_v18  ;;  %v557_v23 = vadd.f32 %v1095_v20, %v477_v2  ;;  %v1096_v24 = vpop.f32.mrb[10].mxu0 }
 0x120   :  { %v1097_v25 = vpop.f32.mrb[11].mxu0 }
 0x121   :  { %v1137_v26 = vpop.f32.mrb[10].mxu1  ;;  %v637_v27 = vadd.f32 %v1136_v22, %v557_v23  ;;  %v1098_v28 = vadd.f32 %v1097_v25, %v1096_v24 }
 0x122   :  { %v1138_v29 = vpop.f32.mrb[11].mxu1 }
 0x123   :  { %v1139_v30 = vadd.f32 %v1138_v29, %v1137_v26  ;;  %v562_v31 = vadd.f32 %v1098_v28, %v482_v8 }
 0x125   :  { %v642_v32 = vadd.f32 %v1139_v30, %v562_v31 }
 0x137   :  { %v1172_v33 = vpop.f32.mrb[12].mxu0 }
 0x138   :  { %v1173_v34 = vpop.f32.mrb[13].mxu0 }
 0x139   :  { %v1213_v35 = vpop.f32.mrb[12].mxu1  ;;  %v1174_v36 = vadd.f32 %v1173_v34, %v1172_v33 }
 0x13a   :  { %v1214_v37 = vpop.f32.mrb[13].mxu1 }
 0x13b   :  { %v1215_v38 = vadd.f32 %v1214_v37, %v1213_v35  ;;  %v712_v39 = vadd.f32 %v1174_v36, %v632_v19  ;;  %v1175_v40 = vpop.f32.mrb[14].mxu0 }
 0x13c   :  { %v1176_v41 = vpop.f32.mrb[15].mxu0 }
 0x13d   :  { %v1216_v42 = vpop.f32.mrb[14].mxu1  ;;  %v792_v43 = vadd.f32 %v1215_v38, %v712_v39  ;;  %v1177_v44 = vadd.f32 %v1176_v41, %v1175_v40 }
 0x13e   :  { %v1217_v45 = vpop.f32.mrb[15].mxu1 }
 0x13f   :  { %v1218_v46 = vadd.f32 %v1217_v45, %v1216_v42  ;;  %v717_v47 = vadd.f32 %v1177_v44, %v637_v27  ;;  %v1178_v48 = vpop.f32.mrb[16].mxu0 }
 0x140   :  { %v1179_v49 = vpop.f32.mrb[17].mxu0 }
 0x141   :  { %v1219_v50 = vpop.f32.mrb[16].mxu1  ;;  %v797_v51 = vadd.f32 %v1218_v46, %v717_v47  ;;  %v1180_v52 = vadd.f32 %v1179_v49, %v1178_v48 }
 0x142   :  { %v1220_v53 = vpop.f32.mrb[17].mxu1 }
 0x143   :  { %v1221_v54 = vadd.f32 %v1220_v53, %v1219_v50  ;;  %v722_v55 = vadd.f32 %v1180_v52, %v642_v32 }
 0x145   :  { %v802_v56 = vadd.f32 %v1221_v54, %v722_v55 }
 0x157   :  { %v1254_v57 = vpop.f32.mrb[18].mxu0 }
 0x158   :  { %v1255_v58 = vpop.f32.mrb[19].mxu0 }
 0x159   :  { %v1295_v59 = vpop.f32.mrb[18].mxu1  ;;  %v1256_v60 = vadd.f32 %v1255_v58, %v1254_v57 }
 0x15a   :  { %v1296_v61 = vpop.f32.mrb[19].mxu1 }
 0x15b   :  { %v1297_v62 = vadd.f32 %v1296_v61, %v1295_v59  ;;  %v872_v63 = vadd.f32 %v1256_v60, %v792_v43  ;;  %v1257_v0 = vpop.f32.mrb[20].mxu0 }
 0x15c   :  { %v1258_v1 = vpop.f32.mrb[21].mxu0 }
 0x15d   :  { %v1298_v2 = vpop.f32.mrb[20].mxu1  ;;  %v952_v3 = vadd.f32 %v1297_v62, %v872_v63  ;;  %v1259_v4 = vadd.f32 %v1258_v1, %v1257_v0 }
 0x15e   :  { %v1299_v5 = vpop.f32.mrb[21].mxu1 }
 0x15f   :  { %v1300_v6 = vadd.f32 %v1299_v5, %v1298_v2  ;;  %v965_v7 = vmax.f32 %v952_v3, 0.0  ;;  %v877_v8 = vadd.f32 %v1259_v4, %v797_v51  ;;  %v1260_v9 = vpop.f32.mrb[22].mxu0 }
 0x160   :  { %v1261_v10 = vpop.f32.mrb[23].mxu0 }
 0x161   :  { %v1301_v11 = vpop.f32.mrb[22].mxu1  ;;  %968 = vst [vmem:[%s2507_s3] sm:$0xff] %v965_v7  ;;  %v957_v12 = vadd.f32 %v1300_v6, %v877_v8  ;;  %v1262_v13 = vadd.f32 %v1261_v10, %v1260_v9 }
 0x162   :  { %v1302_v14 = vpop.f32.mrb[23].mxu1 }
 0x163   :  { %v1303_v15 = vadd.f32 %v1302_v14, %v1301_v11  ;;  %v966_v16 = vmax.f32 %v957_v12, 0.0  ;;  %v882_v17 = vadd.f32 %v1262_v13, %v802_v56 }
 0x165   :  { %969 = vst [vmem:[%s2507_s3 + $0x8] sm:$0xff] %v966_v16  ;;  %v962_v18 = vadd.f32 %v1303_v15, %v882_v17 }
 0x167   :  { %v967_v19 = vmax.f32 %v962_v18, 0.0 }
 0x169   :  { %970 = vst [vmem:[%s2507_s3 + $0x10] sm:$0x3] %v967_v19 }

// kernel: atari_a2c_forward.5
= control target key start
LH: loop header
LB: loop body
LE: loop exit
PB: predicated region body
PF: predicated region fallthrough
CT: control target
= control target key end

     0   :  { %v2215_v43 = vmov 1983009808   ;;  %v187_v45 = vlaneseq  ;;  %vm2217_vm0 = vmmov 0   ;;  %s3528_s1 = inlined_call_operand.vmem [shape: f32[1152,128], index: 1, kind: input, shape index: {}]   ;;  %s3529_s0 = inlined_call_operand.vmem [shape: f32[2,1152], index: 0, kind: input, shape index: {}]   ;;  %s3530_s3 = inlined_call_operand.vmem [shape: f32[128,1024], index: 3, kind: input, shape index: {}]   ;;  %s3531_s2 = inlined_call_operand.vmem [shape: f32[1,128], index: 2, kind: input, shape index: {}]   ;;  %s3532_s5 = inlined_call_operand.vmem [shape: f32[1024,128], index: 5, kind: input, shape index: {}]   ;;  %s3533_s4 = inlined_call_operand.vmem [shape: f32[1,1024], index: 4, kind: input, shape index: {}]   ;;  %s3534_s6 = inlined_call_operand.vmem [shape: f32[1,128], index: 6, kind: input, shape index: {}]   ;;  %s3535_s7 = inlined_call_operand.vmem [shape: f32[2,128], index: 7, kind: output, shape index: {}]  }
   0x1   :  { %v45_v0 = vld [vmem:[%s3528_s1 + $0x80] sm:$0xff]  ;;  %v46_v1 = vld [vmem:[%s3528_s1 + $0x88] sm:$0xff]  ;;  %v47_v11 = vld [vmem:[%s3528_s1 + $0x90] sm:$0xff]  ;;  %v185_v44 = vunpack.c.l.s4 %v2215_v43 }
   0x2   :  { %v29_v2 = vld [vmem:[%s3528_s1] sm:$0xff]  ;;  %v1801_v3 = vpack.c.bf16 %v46_v1, %v45_v0  ;;  %v30_v4 = vld [vmem:[%s3528_s1 + $0x8] sm:$0xff]  ;;  %v48_v13 = vld [vmem:[%s3528_s1 + $0x98] sm:$0xff]  ;;  %v2376_v60 = vshrl.u32 %v187_v45, 7 }
   0x3   :  { %v77_v5 = vld [vmem:[%s3528_s1 + $0x180] sm:$0xff]  ;;  %v78_v6 = vld [vmem:[%s3528_s1 + $0x188] sm:$0xff]  ;;  %v1803_v7 = vpack.c.bf16 %v30_v4, %v29_v2  ;;  %v31_v14 = vld [vmem:[%s3528_s1 + $0x10] sm:$0xff]  ;;  %v1805_v16 = vpack.c.bf16 %v48_v13, %v47_v11  ;;  %v186_v59 = vunpack.c.0.s8 %v185_v44 }
   0x4   :  { %v1833_v8 = vpack.c.bf16 %v78_v6, %v77_v5  ;;  %v61_v9 = vld [vmem:[%s3528_s1 + $0x100] sm:$0xff]  ;;  %v62_v10 = vld [vmem:[%s3528_s1 + $0x108] sm:$0xff]  ;;  %1802 = vmatprep.subr.bf16.mxu0 %v1801_v3  ;;  %v32_v15 = vld [vmem:[%s3528_s1 + $0x18] sm:$0xff] }
   0x5   :  { %v1835_v12 = vpack.c.bf16 %v62_v10, %v61_v9  ;;  %1804 = vmatpush3.bf16.msra.mxu0 %v1803_v7  ;;  %v1807_v17 = vpack.c.bf16 %v32_v15, %v31_v14  ;;  %v79_v18 = vld [vmem:[%s3528_s1 + $0x190] sm:$0xff]  ;;  %v80_v19 = vld [vmem:[%s3528_s1 + $0x198] sm:$0xff]  ;;  %v49_v23 = vld [vmem:[%s3528_s1 + $0xa0] sm:$0xff]  ;;  %v2406_v10 = vsub.s32 %v186_v59, %v2376_v60 }
   0x6   :  { %1834 = vmatprep.subr.bf16.mxu1 %v1833_v8  ;;  %v63_v20 = vld [vmem:[%s3528_s1 + $0x110] sm:$0xff]  ;;  %v1837_v21 = vpack.c.bf16 %v80_v19, %v79_v18  ;;  %v64_v22 = vld [vmem:[%s3528_s1 + $0x118] sm:$0xff]  ;;  %v50_v24 = vld [vmem:[%s3528_s1 + $0xa8] sm:$0xff]  ;;  %1806 = vmatprep.subr.bf16.mxu0 %v1805_v16 }
   0x7   :  { %1836 = vmatpush3.bf16.msra.mxu1 %v1835_v12  ;;  %v1839_v25 = vpack.c.bf16 %v64_v22, %v63_v20  ;;  %v1809_v26 = vpack.c.bf16 %v50_v24, %v49_v23  ;;  %v33_v27 = vld [vmem:[%s3528_s1 + $0x20] sm:$0xff]  ;;  %v34_v28 = vld [vmem:[%s3528_s1 + $0x28] sm:$0xff]  ;;  %v51_v35 = vld [vmem:[%s3528_s1 + $0xb0] sm:$0xff] }
   0x8   :  { %v81_v29 = vld [vmem:[%s3528_s1 + $0x1a0] sm:$0xff]  ;;  %1838 = vmatprep.subr.bf16.mxu1 %v1837_v21  ;;  %v82_v30 = vld [vmem:[%s3528_s1 + $0x1a8] sm:$0xff]  ;;  %v1811_v33 = vpack.c.bf16 %v34_v28, %v33_v27  ;;  %v52_v36 = vld [vmem:[%s3528_s1 + $0xb8] sm:$0xff] }
   0x9   :  { %v65_v31 = vld [vmem:[%s3528_s1 + $0x120] sm:$0xff]  ;;  %v66_v32 = vld [vmem:[%s3528_s1 + $0x128] sm:$0xff]  ;;  %1808 = vmatpush3.bf16.msra.mxu0 %v1807_v17  ;;  %v1841_v34 = vpack.c.bf16 %v82_v30, %v81_v29  ;;  %v35_v37 = vld [vmem:[%s3528_s1 + $0x30] sm:$0xff]  ;;  %v1813_v39 = vpack.c.bf16 %v52_v36, %v51_v35 }
   0xa   :  { %1810 = vmatprep.subr.bf16.mxu0 %v1809_v26  ;;  %v1843_v38 = vpack.c.bf16 %v66_v32, %v65_v31  ;;  %v36_v40 = vld [vmem:[%s3528_s1 + $0x38] sm:$0xff]  ;;  %v83_v41 = vld [vmem:[%s3528_s1 + $0x1b0] sm:$0xff]  ;;  %v53_v49 = vld [vmem:[%s3528_s1 + $0xc0] sm:$0xff] }
   0xb   :  { %1840 = vmatpush3.bf16.msra.mxu1 %v1839_v25  ;;  %v84_v42 = vld [vmem:[%s3528_s1 + $0x1b8] sm:$0xff]  ;;  %v67_v47 = vld [vmem:[%s3528_s1 + $0x130] sm:$0xff]  ;;  %v54_v50 = vld [vmem:[%s3528_s1 + $0xc8] sm:$0xff]  ;;  %v1815_v51 = vpack.c.bf16 %v36_v40, %v35_v37 }
   0xc   :  { %1842 = vmatprep.subr.bf16.mxu1 %v1841_v34  ;;  %v1845_v46 = vpack.c.bf16 %v84_v42, %v83_v41  ;;  %v68_v48 = vld [vmem:[%s3528_s1 + $0x138] sm:$0xff]  ;;  %v85_v52 = vld [vmem:[%s3528_s1 + $0x1c0] sm:$0xff]  ;;  %v86_v53 = vld [vmem:[%s3528_s1 + $0x1c8] sm:$0xff]  ;;  %v1817_v55 = vpack.c.bf16 %v54_v50, %v53_v49 }
   0xd   :  { %1812 = vmatpush3.bf16.msra.mxu0 %v1811_v33  ;;  %v1847_v54 = vpack.c.bf16 %v68_v48, %v67_v47  ;;  %v37_v56 = vld [vmem:[%s3528_s1 + $0x40] sm:$0xff]  ;;  %v38_v57 = vld [vmem:[%s3528_s1 + $0x48] sm:$0xff]  ;;  %v1849_v61 = vpack.c.bf16 %v86_v53, %v85_v52  ;;  %v55_v63 = vld [vmem:[%s3528_s1 + $0xd0] sm:$0xff] }
   0xe   :  { %1814 = vmatprep.subr.bf16.mxu0 %v1813_v39  ;;  %v69_v58 = vld [vmem:[%s3528_s1 + $0x140] sm:$0xff]  ;;  %v70_v62 = vld [vmem:[%s3528_s1 + $0x148] sm:$0xff]  ;;  %v56_v0 = vld [vmem:[%s3528_s1 + $0xd8] sm:$0xff]  ;;  %v1819_v3 = vpack.c.bf16 %v38_v57, %v37_v56 }
   0xf   :  { %1844 = vmatpush3.bf16.msra.mxu1 %v1843_v38  ;;  %v87_v1 = vld [vmem:[%s3528_s1 + $0x1d0] sm:$0xff]  ;;  %v88_v2 = vld [vmem:[%s3528_s1 + $0x1d8] sm:$0xff]  ;;  %v1851_v5 = vpack.c.bf16 %v70_v62, %v69_v58  ;;  %v1821_v6 = vpack.c.bf16 %v56_v0, %v55_v63  ;;  %v57_v12 = vld [vmem:[%s3528_s1 + $0xe0] sm:$0xff] }
  0x10   :  { %1846 = vmatprep.subr.bf16.mxu1 %v1845_v46  ;;  %v39_v4 = vld [vmem:[%s3528_s1 + $0x50] sm:$0xff]  ;;  %v40_v7 = vld [vmem:[%s3528_s1 + $0x58] sm:$0xff]  ;;  %v1853_v11 = vpack.c.bf16 %v88_v2, %v87_v1  ;;  %v58_v13 = vld [vmem:[%s3528_s1 + $0xe8] sm:$0xff] }
  0x11   :  { %1816 = vmatpush3.bf16.msra.mxu0 %v1815_v51  ;;  %v71_v8 = vld [vmem:[%s3528_s1 + $0x150] sm:$0xff]  ;;  %v72_v9 = vld [vmem:[%s3528_s1 + $0x158] sm:$0xff]  ;;  %v89_v14 = vld [vmem:[%s3528_s1 + $0x1e0] sm:$0xff]  ;;  %v1823_v16 = vpack.c.bf16 %v40_v7, %v39_v4  ;;  %v1825_v19 = vpack.c.bf16 %v58_v13, %v57_v12 }
  0x12   :  { %1818 = vmatprep.subr.bf16.mxu0 %v1817_v55  ;;  %v90_v15 = vld [vmem:[%s3528_s1 + $0x1e8] sm:$0xff]  ;;  %v1855_v17 = vpack.c.bf16 %v72_v9, %v71_v8  ;;  %v26_v18 = vld [vmem:[%s3529_s0] sm:$0xff]  ;;  %v59_v27 = vld [vmem:[%s3528_s1 + $0xf0] sm:$0xff] }
  0x13   :  { %1848 = vmatpush3.bf16.msra.mxu1 %v1847_v54  ;;  %v41_v20 = vld [vmem:[%s3528_s1 + $0x60] sm:$0xff]  ;;  %v42_v21 = vld [vmem:[%s3528_s1 + $0x68] sm:$0xff]  ;;  %v190_v23 = vrot.slane %v26_v18, %v2406_v10  ;;  %v183_v24 = vcombine.high %v26_v18, %v26_v18  ;;  %v1857_v25 = vpack.c.bf16 %v90_v15, %v89_v14  ;;  %v60_v28 = vld [vmem:[%s3528_s1 + $0xf8] sm:$0xff] }
  0x14   :  { %1850 = vmatprep.subr.bf16.mxu1 %v1849_v61  ;;  %v73_v22 = vld [vmem:[%s3528_s1 + $0x160] sm:$0xff]  ;;  %v74_v26 = vld [vmem:[%s3528_s1 + $0x168] sm:$0xff]  ;;  %v91_v29 = vld [vmem:[%s3528_s1 + $0x1f0] sm:$0xff]  ;;  %v1827_v33 = vpack.c.bf16 %v42_v21, %v41_v20  ;;  %v1829_v35 = vpack.c.bf16 %v60_v28, %v59_v27 }
  0x15   :  { %1820 = vmatpush3.bf16.msra.mxu0 %v1819_v3  ;;  %v92_v30 = vld [vmem:[%s3528_s1 + $0x1f8] sm:$0xff]  ;;  %v198_v31 = vcombine.high %v190_v23, %v190_v23  ;;  %v197_v32 = vrot.slane %v183_v24, %v2406_v10  ;;  %v1859_v34 = vpack.c.bf16 %v74_v26, %v73_v22  ;;  %v43_v36 = vld [vmem:[%s3528_s1 + $0x70] sm:$0xff]  ;;  %v109_v42 = vld [vmem:[%s3528_s1 + $0x280] sm:$0xff] }
  0x16   :  { %1822 = vmatprep.subr.bf16.mxu0 %v1821_v6  ;;  %v44_v37 = vld [vmem:[%s3528_s1 + $0x78] sm:$0xff]  ;;  %v75_v38 = vld [vmem:[%s3528_s1 + $0x170] sm:$0xff]  ;;  %v1861_v40 = vpack.c.bf16 %v92_v30, %v91_v29  ;;  %v110_v43 = vld [vmem:[%s3528_s1 + $0x288] sm:$0xff] }
  0x17   :  { %1852 = vmatpush3.bf16.msra.mxu1 %v1851_v5  ;;  %v199_v39 = vcombine.high %v197_v32, %v197_v32  ;;  %297 = vmatprep.mubr.f32.mxu0 %v198_v31  ;;  %v76_v41 = vld [vmem:[%s3528_s1 + $0x178] sm:$0xff]  ;;  %v141_v44 = vld [vmem:[%s3528_s1 + $0x380] sm:$0xff]  ;;  %v142_v45 = vld [vmem:[%s3528_s1 + $0x388] sm:$0xff]  ;;  %v1831_v46 = vpack.c.bf16 %v44_v37, %v43_v36  ;;  %v1865_v48 = vpack.c.bf16 %v110_v43, %v109_v42 }
  0x18   :  { %1854 = vmatprep.subr.bf16.mxu1 %v1853_v11  ;;  %v1863_v47 = vpack.c.bf16 %v76_v41, %v75_v38  ;;  %v93_v49 = vld [vmem:[%s3528_s1 + $0x200] sm:$0xff]  ;;  %v94_v50 = vld [vmem:[%s3528_s1 + $0x208] sm:$0xff]  ;;  %v1897_v52 = vpack.c.bf16 %v142_v45, %v141_v44  ;;  %v111_v54 = vld [vmem:[%s3528_s1 + $0x290] sm:$0xff] }
  0x19   :  { %1824 = vmatpush3.bf16.msra.mxu0 %v1823_v16  ;;  %367 = vmatprep.mubr.f32.mxu1 %v199_v39  ;;  %v125_v51 = vld [vmem:[%s3528_s1 + $0x300] sm:$0xff]  ;;  %v126_v53 = vld [vmem:[%s3528_s1 + $0x308] sm:$0xff]  ;;  %v112_v55 = vld [vmem:[%s3528_s1 + $0x298] sm:$0xff]  ;;  %v1867_v58 = vpack.c.bf16 %v94_v50, %v93_v49 }
  0x1a   :  { %1826 = vmatprep.subr.bf16.mxu0 %v1825_v19  ;;  %v143_v56 = vld [vmem:[%s3528_s1 + $0x390] sm:$0xff]  ;;  %v144_v57 = vld [vmem:[%s3528_s1 + $0x398] sm:$0xff]  ;;  %v1899_v59 = vpack.c.bf16 %v126_v53, %v125_v51  ;;  %v1869_v61 = vpack.c.bf16 %v112_v55, %v111_v54  ;;  %v113_v3 = vld [vmem:[%s3528_s1 + $0x2a0] sm:$0xff] }
  0x1b   :  { %1856 = vmatpush3.bf16.msra.mxu1 %v1855_v17  ;;  %v95_v62 = vld [vmem:[%s3528_s1 + $0x210] sm:$0xff]  ;;  %v96_v63 = vld [vmem:[%s3528_s1 + $0x218] sm:$0xff]  ;;  %v1901_v1 = vpack.c.bf16 %v144_v57, %v143_v56  ;;  %v114_v4 = vld [vmem:[%s3528_s1 + $0x2a8] sm:$0xff] }
  0x1c   :  { %1858 = vmatprep.subr.bf16.mxu1 %v1857_v25  ;;  %v127_v0 = vld [vmem:[%s3528_s1 + $0x310] sm:$0xff]  ;;  %v128_v2 = vld [vmem:[%s3528_s1 + $0x318] sm:$0xff]  ;;  %v145_v5 = vld [vmem:[%s3528_s1 + $0x3a0] sm:$0xff]  ;;  %v1871_v7 = vpack.c.bf16 %v96_v63, %v95_v62  ;;  %v1873_v9 = vpack.c.bf16 %v114_v4, %v113_v3 }
  0x1d   :  { %1828 = vmatpush3.bf16.msra.mxu0 %v1827_v33  ;;  %v146_v6 = vld [vmem:[%s3528_s1 + $0x3a8] sm:$0xff]  ;;  %v1903_v8 = vpack.c.bf16 %v128_v2, %v127_v0  ;;  %v97_v11 = vld [vmem:[%s3528_s1 + $0x220] sm:$0xff]  ;;  %v115_v16 = vld [vmem:[%s3528_s1 + $0x2b0] sm:$0xff] }
  0x1e   :  { %1830 = vmatprep.subr.bf16.mxu0 %v1829_v35  ;;  %v98_v12 = vld [vmem:[%s3528_s1 + $0x228] sm:$0xff]  ;;  %v129_v13 = vld [vmem:[%s3528_s1 + $0x320] sm:$0xff]  ;;  %v1905_v14 = vpack.c.bf16 %v146_v6, %v145_v5  ;;  %v116_v17 = vld [vmem:[%s3528_s1 + $0x2b8] sm:$0xff] }
  0x1f   :  { %1860 = vmatpush3.bf16.msra.mxu1 %v1859_v34  ;;  %v130_v15 = vld [vmem:[%s3528_s1 + $0x328] sm:$0xff]  ;;  %v147_v18 = vld [vmem:[%s3528_s1 + $0x3b0] sm:$0xff]  ;;  %v148_v19 = vld [vmem:[%s3528_s1 + $0x3b8] sm:$0xff]  ;;  %v1875_v20 = vpack.c.bf16 %v98_v12, %v97_v11 }
  0x20   :  { %1862 = vmatprep.subr.bf16.mxu1 %v1861_v40  ;;  %v99_v21 = vld [vmem:[%s3528_s1 + $0x230] sm:$0xff]  ;;  %v1907_v22 = vpack.c.bf16 %v130_v15, %v129_v13  ;;  %v100_v24 = vld [vmem:[%s3528_s1 + $0x238] sm:$0xff]  ;;  %v1909_v27 = vpack.c.bf16 %v148_v19, %v147_v18  ;;  %v117_v28 = vld [vmem:[%s3528_s1 + $0x2c0] sm:$0xff] }
  0x21   :  { %1832 = vmatpush3.bf16.msra.mxu0 %v1831_v46  ;;  %v131_v25 = vld [vmem:[%s3528_s1 + $0x330] sm:$0xff]  ;;  %v132_v26 = vld [vmem:[%s3528_s1 + $0x338] sm:$0xff]  ;;  %v118_v29 = vld [vmem:[%s3528_s1 + $0x2c8] sm:$0xff]  ;;  %v1879_v35 = vpack.c.bf16 %v100_v24, %v99_v21  ;;  %v2216_v24 = vmov 0.0|0.0  }
  0x22   :  { %1866 = vmatprep.subr.bf16.mxu0 %v1865_v48  ;;  %v27_v30 = vld [vmem:[%s3529_s0 + $0x8] sm:$0xff]  ;;  %v149_v31 = vld [vmem:[%s3528_s1 + $0x3c0] sm:$0xff]  ;;  %v1911_v36 = vpack.c.bf16 %v132_v26, %v131_v25  ;;  %v1881_v37 = vpack.c.bf16 %v118_v29, %v117_v28  ;;  %v119_v45 = vld [vmem:[%s3528_s1 + $0x2d0] sm:$0xff] }
  0x23   :  { %1864 = vmatpush3.bf16.msra.mxu1 %v1863_v47  ;;  %v2573_v33 = vrot.slane %v27_v30, %v2406_v10  ;;  %v200_v34 = vcombine.high %v27_v30, %v27_v30  ;;  %v101_v38 = vld [vmem:[%s3528_s1 + $0x240] sm:$0xff]  ;;  %v102_v39 = vld [vmem:[%s3528_s1 + $0x248] sm:$0xff]  ;;  %v120_v46 = vld [vmem:[%s3528_s1 + $0x2d8] sm:$0xff]  ;;  %v2218_v30 = vmov 0.0  }
  0x24   :  { %1898 = vmatprep.subr.bf16.mxu1 %v1897_v52  ;;  %298 = vmatmul.mubr.f32.vlgmr.msra.gmra.mrb[0].mxu0 %v190_v23  ;;  %v1877_v23 = vpack.c.bf16 %v116_v17, %v115_v16  ;;  %v133_v40 = vld [vmem:[%s3528_s1 + $0x340] sm:$0xff]  ;;  %v134_v44 = vld [vmem:[%s3528_s1 + $0x348] sm:$0xff]  ;;  %v151_v47 = vld [vmem:[%s3528_s1 + $0x3d0] sm:$0xff]  ;;  %v1883_v49 = vpack.c.bf16 %v102_v39, %v101_v38  ;;  %v1885_v51 = vpack.c.bf16 %v120_v46, %v119_v45 }
  0x25   :  { %1868 = vmatpush3.bf16.msra.mxu0 %v1867_v58  ;;  %v215_v41 = vcombine.high %v2573_v33, %v2573_v33  ;;  %v2587_v42 = vrot.slane %v200_v34, %v2406_v10  ;;  %v152_v10 = vld [vmem:[%s3528_s1 + $0x3d8] sm:$0xff]  ;;  %v1915_v50 = vpack.c.bf16 %v134_v44, %v133_v40  ;;  %v103_v52 = vld [vmem:[%s3528_s1 + $0x250] sm:$0xff]  ;;  %v121_v57 = vld [vmem:[%s3528_s1 + $0x2e0] sm:$0xff] }
  0x26   :  { %368 = vmatmul.mubr.f32.vlgmr.msra.gmra.mrb[0].mxu1 %v197_v32  ;;  %1870 = vmatprep.subr.bf16.mxu0 %v1869_v61  ;;  %v150_v32 = vld [vmem:[%s3528_s1 + $0x3c8] sm:$0xff]  ;;  %v104_v53 = vld [vmem:[%s3528_s1 + $0x258] sm:$0xff]  ;;  %v135_v54 = vld [vmem:[%s3528_s1 + $0x350] sm:$0xff]  ;;  %v1917_v55 = vpack.c.bf16 %v152_v10, %v151_v47 }
  0x27   :  { %1900 = vmatpush3.bf16.msra.mxu1 %v1899_v59  ;;  %v1913_v43 = vpack.c.bf16 %v150_v32, %v149_v31  ;;  %437 = vmatprep.mubr.f32.mxu0 %v215_v41  ;;  %v216_v48 = vcombine.high %v2587_v42, %v2587_v42  ;;  %v136_v56 = vld [vmem:[%s3528_s1 + $0x358] sm:$0xff]  ;;  %v122_v58 = vld [vmem:[%s3528_s1 + $0x2e8] sm:$0xff]  ;;  %v153_v59 = vld [vmem:[%s3528_s1 + $0x3e0] sm:$0xff]  ;;  %v1887_v62 = vpack.c.bf16 %v104_v53, %v103_v52 }
  0x28   :  { %1902 = vmatprep.subr.bf16.mxu1 %v1901_v1  ;;  %v154_v61 = vld [vmem:[%s3528_s1 + $0x3e8] sm:$0xff]  ;;  %v1919_v63 = vpack.c.bf16 %v136_v56, %v135_v54  ;;  %v1889_v0 = vpack.c.bf16 %v122_v58, %v121_v57  ;;  %v105_v1 = vld [vmem:[%s3528_s1 + $0x260] sm:$0xff]  ;;  %v123_v6 = vld [vmem:[%s3528_s1 + $0x2f0] sm:$0xff] }
  0x29   :  { %1872 = vmatpush3.bf16.msra.mxu0 %v1871_v7  ;;  %507 = vmatprep.mubr.f32.mxu1 %v216_v48  ;;  %v106_v2 = vld [vmem:[%s3528_s1 + $0x268] sm:$0xff]  ;;  %v137_v3 = vld [vmem:[%s3528_s1 + $0x360] sm:$0xff]  ;;  %v1921_v4 = vpack.c.bf16 %v154_v61, %v153_v59  ;;  %v124_v7 = vld [vmem:[%s3528_s1 + $0x2f8] sm:$0xff] }
  0x2a   :  { %1874 = vmatprep.subr.bf16.mxu0 %v1873_v9  ;;  %v138_v5 = vld [vmem:[%s3528_s1 + $0x368] sm:$0xff]  ;;  %v156_v9 = vld [vmem:[%s3528_s1 + $0x3f8] sm:$0xff]  ;;  %v1891_v11 = vpack.c.bf16 %v106_v2, %v105_v1  ;;  %v1893_v13 = vpack.c.bf16 %v124_v7, %v123_v6  ;;  %v139_v17 = vld [vmem:[%s3528_s1 + $0x370] sm:$0xff] }
  0x2b   :  { %1904 = vmatpush3.bf16.msra.mxu1 %v1903_v8  ;;  %v155_v8 = vld [vmem:[%s3528_s1 + $0x3f0] sm:$0xff]  ;;  %v1923_v12 = vpack.c.bf16 %v138_v5, %v137_v3  ;;  %v108_v15 = vld [vmem:[%s3528_s1 + $0x278] sm:$0xff]  ;;  %v157_v21 = vld [vmem:[%s3528_s1 + $0x400] sm:$0xff] }
  0x2c   :  { %1906 = vmatprep.subr.bf16.mxu1 %v1905_v14  ;;  %v107_v14 = vld [vmem:[%s3528_s1 + $0x270] sm:$0xff]  ;;  %v1925_v16 = vpack.c.bf16 %v156_v9, %v155_v8  ;;  %v140_v18 = vld [vmem:[%s3528_s1 + $0x378] sm:$0xff]  ;;  %v161_v28 = vld [vmem:[%s3528_s1 + $0x420] sm:$0xff] }
  0x2d   :  { %1876 = vmatpush3.bf16.msra.mxu0 %v1875_v20  ;;  %v1895_v19 = vpack.c.bf16 %v108_v15, %v107_v14  ;;  %v1927_v20 = vpack.c.bf16 %v140_v18, %v139_v17  ;;  %v159_v25 = vld [vmem:[%s3528_s1 + $0x410] sm:$0xff]  ;;  %v160_v26 = vld [vmem:[%s3528_s1 + $0x418] sm:$0xff]  ;;  %v162_v29 = vld [vmem:[%s3528_s1 + $0x428] sm:$0xff] }
  0x2e   :  { %1878 = vmatprep.subr.bf16.mxu0 %v1877_v23  ;;  %v1936_v31 = vpack.c.bf16 %v162_v29, %v161_v28  ;;  %v163_v32 = vld [vmem:[%s3528_s1 + $0x430] sm:$0xff]  ;;  %v168_v39 = vld [vmem:[%s3528_s1 + $0x458] sm:$0xff]  ;;  %v169_v41 = vld [vmem:[%s3528_s1 + $0x460] sm:$0xff] }
  0x2f   :  { %1908 = vmatpush3.bf16.msra.mxu1 %v1907_v22  ;;  %v158_v22 = vld [vmem:[%s3528_s1 + $0x408] sm:$0xff]  ;;  %v167_v38 = vld [vmem:[%s3528_s1 + $0x450] sm:$0xff]  ;;  %v172_v45 = vld [vmem:[%s3528_s1 + $0x478] sm:$0xff] }
  0x30   :  { %1910 = vmatprep.subr.bf16.mxu1 %v1909_v27  ;;  %v1930_v23 = vpack.c.bf16 %v158_v22, %v157_v21  ;;  %v1933_v27 = vpack.c.bf16 %v160_v26, %v159_v25  ;;  %v1945_v40 = vpack.c.bf16 %v168_v39, %v167_v38  ;;  %v171_v44 = vld [vmem:[%s3528_s1 + $0x470] sm:$0xff]  ;;  %v585_v10 = vld [vmem:[%s3530_s3 + $0x8] sm:$0xff]  ;;  %v584_v52 = vld [vmem:[%s3530_s3] sm:$0xff] }
  0x31   :  { %1880 = vmatpush3.bf16.msra.mxu0 %v1879_v35  ;;  %v165_v35 = vld [vmem:[%s3528_s1 + $0x440] sm:$0xff]  ;;  %v1951_v46 = vpack.c.bf16 %v172_v45, %v171_v44  ;;  %v1467_v47 = vld.sshfl [vmem:[%s3529_s0 + $0x10] sm:$0x3 pattern:$0x76325410]  ;;  %v593_v48 = vld [vmem:[%s3530_s3 + $0x48] sm:$0xff] }
  0x32   :  { %1882 = vmatprep.subr.bf16.mxu0 %v1881_v37  ;;  %v592_v53 = vld [vmem:[%s3530_s3 + $0x40] sm:$0xff]  ;;  %v586_v56 = vld [vmem:[%s3530_s3 + $0x10] sm:$0xff]  ;;  %v601_v59 = vld [vmem:[%s3530_s3 + $0x88] sm:$0xff] }
  0x33   :  { %1912 = vmatpush3.bf16.msra.mxu1 %v1911_v36  ;;  %v166_v36 = vld [vmem:[%s3528_s1 + $0x448] sm:$0xff]  ;;  %v594_v57 = vld [vmem:[%s3530_s3 + $0x50] sm:$0xff]  ;;  %v600_v1 = vld [vmem:[%s3530_s3 + $0x80] sm:$0xff] }
  0x34   :  { %1914 = vmatprep.subr.bf16.mxu1 %v1913_v43  ;;  %v1942_v37 = vpack.c.bf16 %v166_v36, %v165_v35  ;;  %v1987_v58 = vpack.c.bf16 %v594_v57, %v586_v56  ;;  %v609_v61 = vld [vmem:[%s3530_s3 + $0xc8] sm:$0xff]  ;;  %v608_v2 = vld [vmem:[%s3530_s3 + $0xc0] sm:$0xff]  ;;  %v602_v5 = vld [vmem:[%s3530_s3 + $0x90] sm:$0xff] }
  0x35   :  { %1884 = vmatpush3.bf16.msra.mxu0 %v1883_v49  ;;  %v587_v49 = vld [vmem:[%s3530_s3 + $0x18] sm:$0xff]  ;;  %v610_v6 = vld [vmem:[%s3530_s3 + $0xd0] sm:$0xff]  ;;  %v617_v7 = vld [vmem:[%s3530_s3 + $0x108] sm:$0xff] }
  0x36   :  { %1886 = vmatprep.subr.bf16.mxu0 %v1885_v51  ;;  %v595_v51 = vld [vmem:[%s3530_s3 + $0x58] sm:$0xff]  ;;  %v1991_v8 = vpack.c.bf16 %v610_v6, %v602_v5  ;;  %v625_v9 = vld [vmem:[%s3530_s3 + $0x148] sm:$0xff]  ;;  %v616_v15 = vld [vmem:[%s3530_s3 + $0x100] sm:$0xff] }
  0x37   :  { %1916 = vmatpush3.bf16.msra.mxu1 %v1915_v50  ;;  %v1953_v50 = vpack.c.bf16 %v593_v48, %v585_v10  ;;  %v1985_v54 = vpack.c.bf16 %v595_v51, %v587_v49  ;;  %v618_v17 = vld [vmem:[%s3530_s3 + $0x110] sm:$0xff]  ;;  %v641_v21 = vld [vmem:[%s3530_s3 + $0x1c8] sm:$0xff]  ;;  %v643_v25 = vld [vmem:[%s3530_s3 + $0x1d8] sm:$0xff] }
  0x38   :  { %1918 = vmatprep.subr.bf16.mxu1 %v1917_v55  ;;  %v1955_v55 = vpack.c.bf16 %v592_v53, %v584_v52  ;;  %v632_v26 = vld [vmem:[%s3530_s3 + $0x180] sm:$0xff]  ;;  %v634_v29 = vld [vmem:[%s3530_s3 + $0x190] sm:$0xff]  ;;  %v659_v36 = vld [vmem:[%s3530_s3 + $0x258] sm:$0xff] }
  0x39   :  { %1888 = vmatpush3.bf16.msra.mxu0 %v1887_v62  ;;  %v603_v62 = vld [vmem:[%s3530_s3 + $0x98] sm:$0xff]  ;;  %v640_v28 = vld [vmem:[%s3530_s3 + $0x1c0] sm:$0xff]  ;;  %v665_v44 = vld [vmem:[%s3530_s3 + $0x288] sm:$0xff] }
  0x3a   :  { %1890 = vmatprep.subr.bf16.mxu0 %v1889_v0  ;;  %v611_v0 = vld [vmem:[%s3530_s3 + $0xd8] sm:$0xff]  ;;  %v1967_v35 = vpack.c.bf16 %v640_v28, %v632_v26  ;;  %v648_v39 = vld [vmem:[%s3530_s3 + $0x200] sm:$0xff]  ;;  %v673_v45 = vld [vmem:[%s3530_s3 + $0x2c8] sm:$0xff] }
  0x3b   :  { %1920 = vmatpush3.bf16.msra.mxu1 %v1919_v63  ;;  %v1957_v63 = vpack.c.bf16 %v609_v61, %v601_v59  ;;  %v1989_v3 = vpack.c.bf16 %v611_v0, %v603_v62  ;;  %v1973_v49 = vpack.c.bf16 %v673_v45, %v665_v44  ;;  %v672_v51 = vld [vmem:[%s3530_s3 + $0x2c0] sm:$0xff]  ;;  %v666_v52 = vld [vmem:[%s3530_s3 + $0x290] sm:$0xff]  ;;  %v689_v56 = vld [vmem:[%s3530_s3 + $0x348] sm:$0xff] }
  0x3c   :  { %1922 = vmatprep.subr.bf16.mxu1 %v1921_v4  ;;  %v1959_v4 = vpack.c.bf16 %v608_v2, %v600_v1  ;;  %v683_v57 = vld [vmem:[%s3530_s3 + $0x318] sm:$0xff]  ;;  %v688_v0 = vld [vmem:[%s3530_s3 + $0x340] sm:$0xff]  ;;  %v682_v2 = vld [vmem:[%s3530_s3 + $0x310] sm:$0xff] }
  0x3d   :  { %1892 = vmatpush3.bf16.msra.mxu0 %v1891_v11  ;;  %v619_v11 = vld [vmem:[%s3530_s3 + $0x118] sm:$0xff]  ;;  %v697_v6 = vld [vmem:[%s3530_s3 + $0x388] sm:$0xff]  ;;  %v1466_v26 = vld [vmem:[%s3531_s2] ss:$0 sm:$0xff] }
  0x3e   :  { %1894 = vmatprep.subr.bf16.mxu0 %v1893_v13  ;;  %v1961_v13 = vpack.c.bf16 %v625_v9, %v617_v7  ;;  %v705_v7 = vld [vmem:[%s3530_s3 + $0x3c8] sm:$0xff]  ;;  %v596_v44 = vld [vmem:[%s3530_s3 + $0x60] sm:$0xff]  ;;  %v590_v45 = vld [vmem:[%s3530_s3 + $0x30] sm:$0xff] }
  0x3f   :  { %1924 = vmatpush3.bf16.msra.mxu1 %v1923_v12  ;;  %v627_v12 = vld [vmem:[%s3530_s3 + $0x158] sm:$0xff]  ;;  %v1981_v9 = vpack.c.bf16 %v705_v7, %v697_v6  ;;  %v628_v6 = vld [vmem:[%s3530_s3 + $0x160] sm:$0xff] }
  0x40   :  { %1926 = vmatprep.subr.bf16.mxu1 %v1925_v16  ;;  %v1993_v14 = vpack.c.bf16 %v627_v12, %v619_v11  ;;  %v624_v16 = vld [vmem:[%s3530_s3 + $0x140] sm:$0xff]  ;;  %v707_v11 = vld [vmem:[%s3530_s3 + $0x3d8] sm:$0xff] }
  0x41   :  { %1896 = vmatpush3.bf16.msra.mxu0 %v1895_v19  ;;  %v1963_v18 = vpack.c.bf16 %v624_v16, %v616_v15  ;;  %v626_v19 = vld [vmem:[%s3530_s3 + $0x150] sm:$0xff]  ;;  %v696_v12 = vld [vmem:[%s3530_s3 + $0x380] sm:$0xff] }
  0x42   :  { %1929 = vmatprep.subr.bf16.mxu0 %v2216_v24  ;;  %v1995_v22 = vpack.c.bf16 %v626_v19, %v618_v17  ;;  %v698_v16 = vld [vmem:[%s3530_s3 + $0x390] sm:$0xff]  ;;  %v589_v19 = vld [vmem:[%s3530_s3 + $0x28] sm:$0xff] }
  0x43   :  { %1928 = vmatpush3.bf16.msra.mxu1 %v1927_v20  ;;  %v633_v20 = vld [vmem:[%s3530_s3 + $0x188] sm:$0xff]  ;;  %v706_v17 = vld [vmem:[%s3530_s3 + $0x3d0] sm:$0xff] }
  0x44   :  { %438 = vmatmul.mubr.f32.vlgmr.msra.gmra.mrb[2].mxu0 %v2573_v33  ;;  %v164_v33 = vld [vmem:[%s3528_s1 + $0x438] sm:$0xff]  ;;  %1954 = vmatprep.subr.bf16.mxu1 %v1953_v50  ;;  %v664_v50 = vld [vmem:[%s3530_s3 + $0x280] sm:$0xff] }
  0x45   :  { %1931 = vmatpush3.bf16.msra.mxu0 %v1930_v23  ;;  %1798 = vmatprep.mubr.msk.f32.mxu0 %vm2217_vm0, %v2218_v30  ;;  %v1939_v34 = vpack.c.bf16 %v164_v33, %v163_v32  ;;  %v1965_v23 = vpack.c.bf16 %v641_v21, %v633_v20  ;;  %v649_v32 = vld [vmem:[%s3530_s3 + $0x208] sm:$0xff]  ;;  %v1975_v59 = vpack.c.bf16 %v672_v51, %v664_v50  ;;  %v591_v21 = vld [vmem:[%s3530_s3 + $0x38] sm:$0xff] }
  0x46   :  { %508 = vmatmul.mubr.f32.vlgmr.msra.gmra.mrb[2].mxu1 %v2587_v42  ;;  %1932 = vmatprep.subr.bf16.mxu0 %v2216_v24  ;;  %v170_v42 = vld [vmem:[%s3528_s1 + $0x468] sm:$0xff]  ;;  %v615_v50 = vld [vmem:[%s3530_s3 + $0xf8] sm:$0xff] }
  0x47   :  { %818 = vmatprep.mubr.f32.mxu1 %v2218_v30  ;;  %v1948_v43 = vpack.c.bf16 %v170_v42, %v169_v41  ;;  %1956 = vmatpush1.bf16.msra.mxu1 %v1955_v55  ;;  %v657_v33 = vld [vmem:[%s3530_s3 + $0x248] sm:$0xff]  ;;  %v650_v41 = vld [vmem:[%s3530_s3 + $0x210] sm:$0xff] }
  0x48   :  { %1958 = vmatprep.subr.bf16.mxu1 %v1957_v63  ;;  %v1969_v38 = vpack.c.bf16 %v657_v33, %v649_v32  ;;  %v681_v55 = vld [vmem:[%s3530_s3 + $0x308] sm:$0xff]  ;;  %v680_v63 = vld [vmem:[%s3530_s3 + $0x300] sm:$0xff] }
  0x49   :  { %1934 = vmatpush3.bf16.msra.mxu0 %v1933_v27  ;;  %v1977_v62 = vpack.c.bf16 %v689_v56, %v681_v55  ;;  %v597_v20 = vld [vmem:[%s3530_s3 + $0x68] sm:$0xff]  ;;  %v604_v55 = vld [vmem:[%s3530_s3 + $0xa0] sm:$0xff] }
  0x4a   :  { %1935 = vmatprep.subr.bf16.mxu0 %v2216_v24  ;;  %v612_v56 = vld [vmem:[%s3530_s3 + $0xe0] sm:$0xff] }
  0x4b   :  { %1960 = vmatpush1.bf16.msra.mxu1 %v1959_v4  ;;  %v1979_v4 = vpack.c.bf16 %v688_v0, %v680_v63  ;;  %v621_v63 = vld [vmem:[%s3530_s3 + $0x128] sm:$0xff] }
  0x4c   :  { %1962 = vmatprep.subr.bf16.mxu1 %v1961_v13  ;;  %v704_v13 = vld [vmem:[%s3530_s3 + $0x3c0] sm:$0xff]  ;;  %v629_v0 = vld [vmem:[%s3530_s3 + $0x168] sm:$0xff] }
  0x4d   :  { %1937 = vmatpush3.bf16.msra.mxu0 %v1936_v31  ;;  %v642_v31 = vld [vmem:[%s3530_s3 + $0x1d0] sm:$0xff]  ;;  %v1983_v15 = vpack.c.bf16 %v704_v13, %v696_v12  ;;  %v2025_v7 = vpack.c.bf16 %v629_v0, %v621_v63  ;;  %v637_v12 = vld [vmem:[%s3530_s3 + $0x1a8] sm:$0xff]  ;;  %v703_v63 = vld [vmem:[%s3530_s3 + $0x3b8] sm:$0xff] }
  0x4e   :  { %1938 = vmatprep.subr.bf16.mxu0 %v2216_v24  ;;  %v645_v13 = vld [vmem:[%s3530_s3 + $0x1e8] sm:$0xff]  ;;  %v711_v0 = vld [vmem:[%s3530_s3 + $0x3f8] sm:$0xff] }
  0x4f   :  { %1964 = vmatpush1.bf16.msra.mxu1 %v1963_v18  ;;  %v2015_v18 = vpack.c.bf16 %v706_v17, %v698_v16 }
  0x50   :  { %1966 = vmatprep.subr.bf16.mxu1 %v1965_v23  ;;  %v599_v23 = vld [vmem:[%s3530_s3 + $0x78] sm:$0xff] }
  0x51   :  { %1940 = vmatpush3.bf16.msra.mxu0 %v1939_v34  ;;  %v651_v34 = vld [vmem:[%s3530_s3 + $0x218] sm:$0xff] }
  0x52   :  { %1941 = vmatprep.subr.bf16.mxu0 %v2216_v24  ;;  %v2001_v42 = vpack.c.bf16 %v659_v36, %v651_v34 }
  0x53   :  { %1968 = vmatpush1.bf16.msra.mxu1 %v1967_v35 }
  0x54   :  { %1970 = vmatprep.subr.bf16.mxu1 %v1969_v38 }
  0x55   :  { %1943 = vmatpush3.bf16.msra.mxu0 %v1942_v37  ;;  %v1999_v37 = vpack.c.bf16 %v642_v31, %v634_v29 }
  0x56   :  { %1944 = vmatprep.subr.bf16.mxu0 %v2216_v24 }
  0x59   :  { %1946 = vmatpush3.bf16.msra.mxu0 %v1945_v40  ;;  %v656_v40 = vld [vmem:[%s3530_s3 + $0x240] sm:$0xff] }
  0x5a   :  { %1947 = vmatprep.subr.bf16.mxu0 %v2216_v24  ;;  %v1971_v10 = vpack.c.bf16 %v656_v40, %v648_v39 }
  0x5c   :  { %1972 = vmatpush1.bf16.msra.mxu1 %v1971_v10 }
  0x5d   :  { %1949 = vmatpush3.bf16.msra.mxu0 %v1948_v43  ;;  %v658_v43 = vld [vmem:[%s3530_s3 + $0x250] sm:$0xff]  ;;  %1974 = vmatprep.subr.bf16.mxu1 %v1973_v49  ;;  %v607_v49 = vld [vmem:[%s3530_s3 + $0xb8] sm:$0xff] }
  0x5e   :  { %1950 = vmatprep.subr.bf16.mxu0 %v2216_v24  ;;  %v635_v24 = vld [vmem:[%s3530_s3 + $0x198] sm:$0xff]  ;;  %v2003_v48 = vpack.c.bf16 %v658_v43, %v650_v41  ;;  %v588_v43 = vld [vmem:[%s3530_s3 + $0x20] sm:$0xff] }
  0x5f   :  { %v1997_v27 = vpack.c.bf16 %v643_v25, %v635_v24  ;;  %v2049_v24 = vpack.c.bf16 %v599_v23, %v591_v21  ;;  %v653_v23 = vld [vmem:[%s3530_s3 + $0x228] sm:$0xff] }
  0x60   :  { %1976 = vmatpush1.bf16.msra.mxu1 %v1975_v59  ;;  %v2053_v59 = vpack.c.bf16 %v615_v50, %v607_v49  ;;  %v687_v49 = vld [vmem:[%s3530_s3 + $0x338] sm:$0xff] }
  0x61   :  { %1952 = vmatpush3.bf16.msra.mxu0 %v1951_v46  ;;  %v667_v46 = vld [vmem:[%s3530_s3 + $0x298] sm:$0xff]  ;;  %1978 = vmatprep.subr.bf16.mxu1 %v1977_v62  ;;  %v614_v62 = vld [vmem:[%s3530_s3 + $0xf0] sm:$0xff] }
  0x62   :  { %1986 = vmatprep.subr.bf16.mxu0 %v1985_v54  ;;  %v674_v54 = vld [vmem:[%s3530_s3 + $0x2d0] sm:$0xff]  ;;  %v695_v50 = vld [vmem:[%s3530_s3 + $0x378] sm:$0xff] }
  0x63   :  { %v2007_v61 = vpack.c.bf16 %v674_v54, %v666_v52 }
  0x64   :  { %1799 = vmatmul.mubr.f32.vlgmr.msra.gmra.mrb[4].mxu0 %v1467_v47  ;;  %v675_v47 = vld [vmem:[%s3530_s3 + $0x2d8] sm:$0xff]  ;;  %1980 = vmatpush1.bf16.msra.mxu1 %v1979_v4 }
  0x65   :  { %889 = vmatprep.mubr.f32.mxu0 %v2218_v30  ;;  %1988 = vmatpush1.bf16.msra.mxu0 %v1987_v58  ;;  %v2005_v53 = vpack.c.bf16 %v675_v47, %v667_v46  ;;  %v691_v58 = vld [vmem:[%s3530_s3 + $0x358] sm:$0xff]  ;;  %v598_v46 = vld [vmem:[%s3530_s3 + $0x70] sm:$0xff]  ;;  %v605_v47 = vld [vmem:[%s3530_s3 + $0xa8] sm:$0xff] }
  0x66   :  { %1990 = vmatprep.subr.bf16.mxu0 %v1989_v3  ;;  %v2009_v1 = vpack.c.bf16 %v691_v58, %v683_v57  ;;  %v690_v3 = vld [vmem:[%s3530_s3 + $0x350] sm:$0xff]  ;;  %1982 = vmatprep.subr.bf16.mxu1 %v1981_v9  ;;  %v2051_v54 = vpack.c.bf16 %v598_v46, %v590_v45 }
  0x67   :  { %v2011_v5 = vpack.c.bf16 %v690_v3, %v682_v2  ;;  %v631_v2 = vld [vmem:[%s3530_s3 + $0x178] sm:$0xff]  ;;  %v2023_v3 = vpack.c.bf16 %v612_v56, %v604_v55  ;;  %v622_v9 = vld [vmem:[%s3530_s3 + $0x130] sm:$0xff]  ;;  %v2073_v56 = vpack.c.bf16 %v695_v50, %v687_v49 }
  0x68   :  { %1984 = vmatpush1.bf16.msra.mxu1 %v1983_v15  ;;  %v647_v15 = vld [vmem:[%s3530_s3 + $0x1f8] sm:$0xff]  ;;  %v670_v46 = vld [vmem:[%s3530_s3 + $0x2b0] sm:$0xff] }
  0x69   :  { %1992 = vmatpush1.bf16.msra.mxu0 %v1991_v8  ;;  %v699_v8 = vld [vmem:[%s3530_s3 + $0x398] sm:$0xff]  ;;  %v1052_v50 = vld [vmem:[%s3532_s5 + $0x30] sm:$0xff] }
  0x6a   :  { %1994 = vmatprep.subr.bf16.mxu0 %v1993_v14  ;;  %v2013_v14 = vpack.c.bf16 %v707_v11, %v699_v8  ;;  %v630_v11 = vld [vmem:[%s3530_s3 + $0x170] sm:$0xff] }
  0x6b   :  { %v2059_v17 = vpack.c.bf16 %v630_v11, %v622_v9  ;;  %v1062_v9 = vld [vmem:[%s3532_s5 + $0x80] sm:$0xff]  ;;  %v1063_v11 = vld [vmem:[%s3532_s5 + $0x88] sm:$0xff] }
  0x6d   :  { %1996 = vmatpush1.bf16.msra.mxu0 %v1995_v22  ;;  %v2017_v22 = vpack.c.bf16 %v597_v20, %v589_v19  ;;  %v644_v19 = vld [vmem:[%s3530_s3 + $0x1e0] sm:$0xff]  ;;  %v2029_v20 = vpack.c.bf16 %v645_v13, %v637_v12  ;;  %v1095_v13 = vld [vmem:[%s3532_s5 + $0x188] sm:$0xff] }
  0x6e   :  { %1998 = vmatprep.subr.bf16.mxu0 %v1997_v27  ;;  %v1094_v12 = vld [vmem:[%s3532_s5 + $0x180] sm:$0xff] }
  0x6f   :  { %2018 = vmatprep.subr.bf16.mxu1 %v2017_v22  ;;  %v646_v22 = vld [vmem:[%s3530_s3 + $0x1f0] sm:$0xff] }
  0x71   :  { %2000 = vmatpush1.bf16.msra.mxu0 %v1999_v37 }
  0x72   :  { %2002 = vmatprep.subr.bf16.mxu0 %v2001_v42 }
  0x75   :  { %2004 = vmatpush1.bf16.msra.mxu0 %v2003_v48  ;;  %v613_v48 = vld [vmem:[%s3530_s3 + $0xe8] sm:$0xff] }
  0x76   :  { %2006 = vmatprep.subr.bf16.mxu0 %v2005_v53  ;;  %v2019_v53 = vpack.c.bf16 %v596_v44, %v588_v43  ;;  %v2021_v58 = vpack.c.bf16 %v613_v48, %v605_v47  ;;  %v676_v43 = vld [vmem:[%s3530_s3 + $0x2e0] sm:$0xff]  ;;  %v678_v47 = vld [vmem:[%s3530_s3 + $0x2f0] sm:$0xff]  ;;  %v693_v48 = vld [vmem:[%s3530_s3 + $0x368] sm:$0xff] }
  0x79   :  { %2008 = vmatpush1.bf16.msra.mxu0 %v2007_v61  ;;  %v606_v61 = vld [vmem:[%s3530_s3 + $0xb0] sm:$0xff] }
  0x7a   :  { %2010 = vmatprep.subr.bf16.mxu0 %v2009_v1  ;;  %v623_v1 = vld [vmem:[%s3530_s3 + $0x138] sm:$0xff]  ;;  %v2055_v4 = vpack.c.bf16 %v614_v62, %v606_v61  ;;  %v701_v61 = vld [vmem:[%s3530_s3 + $0x3a8] sm:$0xff] }
  0x7b   :  { %v2057_v8 = vpack.c.bf16 %v631_v2, %v623_v1  ;;  %v709_v62 = vld [vmem:[%s3530_s3 + $0x3e8] sm:$0xff] }
  0x7d   :  { %2012 = vmatpush1.bf16.msra.mxu0 %v2011_v5  ;;  %v620_v5 = vld [vmem:[%s3530_s3 + $0x120] sm:$0xff] }
  0x7e   :  { %2014 = vmatprep.subr.bf16.mxu0 %v2013_v14  ;;  %v639_v14 = vld [vmem:[%s3530_s3 + $0x1b8] sm:$0xff]  ;;  %v2027_v16 = vpack.c.bf16 %v628_v6, %v620_v5  ;;  %v2045_v5 = vpack.c.bf16 %v709_v62, %v701_v61  ;;  %v2077_v6 = vpack.c.bf16 %v711_v0, %v703_v63  ;;  %v1103_v61 = vld [vmem:[%s3532_s5 + $0x1c8] sm:$0xff]  ;;  %v1054_v0 = vld [vmem:[%s3532_s5 + $0x40] sm:$0xff] }
  0x7f   :  { %v2061_v21 = vpack.c.bf16 %v647_v15, %v639_v14 }
  0x81   :  { %2016 = vmatpush1.bf16.msra.mxu0 %v2015_v18  ;;  %v636_v18 = vld [vmem:[%s3530_s3 + $0x1a0] sm:$0xff] }
  0x82   :  { %2050 = vmatprep.subr.bf16.mxu0 %v2049_v24  ;;  %v661_v24 = vld [vmem:[%s3530_s3 + $0x268] sm:$0xff] }
  0xf7   :  { %v1501_v25 = vpop.f32.mrb[0].mxu0 }
  0xf8   :  { %v1502_v27 = vpop.f32.mrb[1].mxu0 }
  0xf9   :  { %v1536_v28 = vpop.f32.mrb[0].mxu1  ;;  %v1503_v29 = vadd.f32 %v1502_v27, %v1501_v25  ;;  %v655_v25 = vld [vmem:[%s3530_s3 + $0x238] sm:$0xff]  ;;  %v2031_v27 = vpack.c.bf16 %v644_v19, %v636_v18  ;;  %v2081_v18 = vpack.c.bf16 %v1063_v11, %v1062_v9  ;;  %v2113_v19 = vpack.c.bf16 %v1095_v13, %v1094_v12  ;;  %v1056_v13 = vld [vmem:[%s3532_s5 + $0x50] sm:$0xff] }
  0xfa   :  { %v1537_v31 = vpop.f32.mrb[1].mxu1  ;;  %v1105_v9 = vld [vmem:[%s3532_s5 + $0x1d8] sm:$0xff] }
  0xfb   :  { %v1538_v32 = vadd.f32 %v1537_v31, %v1536_v28  ;;  %v300_v33 = vadd.f32 %v1503_v29, %v1466_v26  ;;  %v663_v26 = vld [vmem:[%s3530_s3 + $0x278] sm:$0xff]  ;;  %v652_v29 = vld [vmem:[%s3530_s3 + $0x220] sm:$0xff] }
  0xfc   :  { %v660_v31 = vld [vmem:[%s3530_s3 + $0x260] sm:$0xff] }
  0xfd   :  { %v370_v34 = vadd.f32 %v1538_v32, %v300_v33  ;;  %v2033_v32 = vpack.c.bf16 %v661_v24, %v653_v23  ;;  %v2065_v33 = vpack.c.bf16 %v663_v26, %v655_v25  ;;  %v1096_v23 = vld [vmem:[%s3532_s5 + $0x190] sm:$0xff]  ;;  %v1097_v24 = vld [vmem:[%s3532_s5 + $0x198] sm:$0xff] }
 0x117   :  { %v1571_v35 = vpop.f32.mrb[2].mxu0 }
 0x118   :  { %v1572_v36 = vpop.f32.mrb[3].mxu0 }
 0x119   :  { %v1606_v37 = vpop.f32.mrb[2].mxu1  ;;  %v1573_v38 = vadd.f32 %v1572_v36, %v1571_v35  ;;  %v662_v35 = vld [vmem:[%s3530_s3 + $0x270] sm:$0xff]  ;;  %v669_v36 = vld [vmem:[%s3530_s3 + $0x2a8] sm:$0xff] }
 0x11a   :  { %v1607_v39 = vpop.f32.mrb[3].mxu1 }
 0x11b   :  { %v1608_v40 = vadd.f32 %v1607_v39, %v1606_v37  ;;  %v440_v41 = vadd.f32 %v1573_v38, %v370_v34  ;;  %v654_v34 = vld [vmem:[%s3530_s3 + $0x230] sm:$0xff]  ;;  %v677_v37 = vld [vmem:[%s3530_s3 + $0x2e8] sm:$0xff]  ;;  %v671_v38 = vld [vmem:[%s3530_s3 + $0x2b8] sm:$0xff] }
 0x11c   :  { %v679_v39 = vld [vmem:[%s3530_s3 + $0x2f8] sm:$0xff]  ;;  %v2037_v44 = vpack.c.bf16 %v677_v37, %v669_v36  ;;  %v1098_v36 = vld [vmem:[%s3532_s5 + $0x1a0] sm:$0xff]  ;;  %v1099_v37 = vld [vmem:[%s3532_s5 + $0x1a8] sm:$0xff] }
 0x11d   :  { %v510_v42 = vadd.f32 %v1608_v40, %v440_v41  ;;  %v2035_v40 = vpack.c.bf16 %v660_v31, %v652_v29  ;;  %v2067_v41 = vpack.c.bf16 %v662_v35, %v654_v34  ;;  %v2069_v45 = vpack.c.bf16 %v679_v39, %v671_v38  ;;  %v1066_v34 = vld [vmem:[%s3532_s5 + $0xa0] sm:$0xff]  ;;  %v1067_v35 = vld [vmem:[%s3532_s5 + $0xa8] sm:$0xff] }
 0x11e   :  { %v2117_v31 = vpack.c.bf16 %v1097_v24, %v1096_v23  ;;  %v1058_v24 = vld [vmem:[%s3532_s5 + $0x60] sm:$0xff] }
 0x137   :  { %v579_v10 = vpop.f32.mrb[4].mxu0 }
 0x138   :  { %v580_v51 = vadd.f32 %v579_v10, %v510_v42  ;;  %v1800_v52 = vpop.f32.mrb[5].mxu0  ;;  %v668_v42 = vld [vmem:[%s3530_s3 + $0x2a0] sm:$0xff]  ;;  %v685_v10 = vld [vmem:[%s3530_s3 + $0x328] sm:$0xff] }
 0x139   :  { %v2071_v52 = vpack.c.bf16 %v678_v47, %v670_v46  ;;  %v2041_v55 = vpack.c.bf16 %v693_v48, %v685_v10  ;;  %v1069_v46 = vld [vmem:[%s3532_s5 + $0xb8] sm:$0xff]  ;;  %v1100_v47 = vld [vmem:[%s3532_s5 + $0x1b0] sm:$0xff] }
 0x13a   :  { %v2959_v57 = vmax.f32 %v580_v51, 0.0  ;;  %v2039_v51 = vpack.c.bf16 %v676_v43, %v668_v42  ;;  %v2089_v42 = vpack.c.bf16 %v1067_v35, %v1066_v34  ;;  %v2121_v43 = vpack.c.bf16 %v1099_v37, %v1098_v36  ;;  %v1101_v10 = vld [vmem:[%s3532_s5 + $0x1b8] sm:$0xff]  ;;  %v1108_v35 = vld [vmem:[%s3532_s5 + $0x1f0] sm:$0xff] }
 0x13b   :  { %v1077_v34 = vld [vmem:[%s3532_s5 + $0xf8] sm:$0xff] }
 0x13c   :  { %819 = vmatmul.mubr.f32.vlgmr.msra.gmra.mrb[4].mxu1 %v2959_v57  ;;  %890 = vmatmul.mubr.f32.vlgmr.msra.gmra.mrb[6].mxu0 %v2959_v57  ;;  %v1109_v37 = vld [vmem:[%s3532_s5 + $0x1f8] sm:$0xff] }
 0x13d   :  { %2020 = vmatpush1.bf16.msra.mxu1 %v2019_v53  ;;  %2052 = vmatpush1.bf16.msra.mxu0 %v2051_v54  ;;  %v684_v53 = vld [vmem:[%s3530_s3 + $0x320] sm:$0xff] }
 0x13e   :  { %2022 = vmatprep.subr.bf16.mxu1 %v2021_v58  ;;  %2054 = vmatprep.subr.bf16.mxu0 %v2053_v59  ;;  %v692_v54 = vld [vmem:[%s3530_s3 + $0x360] sm:$0xff]  ;;  %v686_v58 = vld [vmem:[%s3530_s3 + $0x330] sm:$0xff] }
 0x13f   :  { %960 = vmatprep.mubr.f32.mxu1 %v2218_v30  ;;  %1031 = vmatprep.mubr.f32.mxu0 %v2218_v30  ;;  %v638_v30 = vld [vmem:[%s3530_s3 + $0x1b0] sm:$0xff]  ;;  %v2043_v1 = vpack.c.bf16 %v692_v54, %v684_v53  ;;  %v2125_v53 = vpack.c.bf16 %v1101_v10, %v1100_v47  ;;  %v1159_v10 = vld [vmem:[%s3532_s5 + $0x388] sm:$0xff] }
 0x140   :  { %v2063_v28 = vpack.c.bf16 %v646_v22, %v638_v30  ;;  %v694_v59 = vld [vmem:[%s3530_s3 + $0x370] sm:$0xff]  ;;  %v1065_v22 = vld [vmem:[%s3532_s5 + $0x98] sm:$0xff] }
 0x141   :  { %2024 = vmatpush1.bf16.msra.mxu1 %v2023_v3  ;;  %2056 = vmatpush1.bf16.msra.mxu0 %v2055_v4  ;;  %v2075_v2 = vpack.c.bf16 %v694_v59, %v686_v58  ;;  %v700_v3 = vld [vmem:[%s3530_s3 + $0x3a0] sm:$0xff]  ;;  %v1064_v30 = vld [vmem:[%s3532_s5 + $0x90] sm:$0xff]  ;;  %v1071_v58 = vld [vmem:[%s3532_s5 + $0xc8] sm:$0xff] }
 0x142   :  { %2026 = vmatprep.subr.bf16.mxu1 %v2025_v7  ;;  %2058 = vmatprep.subr.bf16.mxu0 %v2057_v8  ;;  %v708_v4 = vld [vmem:[%s3530_s3 + $0x3e0] sm:$0xff]  ;;  %v702_v7 = vld [vmem:[%s3530_s3 + $0x3b0] sm:$0xff]  ;;  %v2085_v29 = vpack.c.bf16 %v1065_v22, %v1064_v30  ;;  %v1107_v30 = vld [vmem:[%s3532_s5 + $0x1e8] sm:$0xff] }
 0x143   :  { %v710_v8 = vld [vmem:[%s3530_s3 + $0x3f0] sm:$0xff]  ;;  %v2047_v14 = vpack.c.bf16 %v708_v4, %v700_v3  ;;  %v1102_v59 = vld [vmem:[%s3532_s5 + $0x1c0] sm:$0xff] }
 0x144   :  { %v2079_v15 = vpack.c.bf16 %v710_v8, %v702_v7  ;;  %v1084_v54 = vld [vmem:[%s3532_s5 + $0x130] sm:$0xff]  ;;  %v2129_v3 = vpack.c.bf16 %v1103_v61, %v1102_v59  ;;  %v1086_v4 = vld [vmem:[%s3532_s5 + $0x140] sm:$0xff]  ;;  %v1073_v7 = vld [vmem:[%s3532_s5 + $0xd8] sm:$0xff] }
 0x145   :  { %2028 = vmatpush1.bf16.msra.mxu1 %v2027_v16  ;;  %2060 = vmatpush1.bf16.msra.mxu0 %v2059_v17  ;;  %v1046_v16 = vld [vmem:[%s3532_s5] sm:$0xff]  ;;  %v1047_v17 = vld [vmem:[%s3532_s5 + $0x8] sm:$0xff]  ;;  %v1104_v8 = vld [vmem:[%s3532_s5 + $0x1d0] sm:$0xff] }
 0x146   :  { %2030 = vmatprep.subr.bf16.mxu1 %v2029_v20  ;;  %2062 = vmatprep.subr.bf16.mxu0 %v2061_v21  ;;  %v1078_v20 = vld [vmem:[%s3532_s5 + $0x100] sm:$0xff]  ;;  %v1079_v21 = vld [vmem:[%s3532_s5 + $0x108] sm:$0xff]  ;;  %v2083_v25 = vpack.c.bf16 %v1047_v17, %v1046_v16  ;;  %v2133_v16 = vpack.c.bf16 %v1105_v9, %v1104_v8  ;;  %v1088_v17 = vld [vmem:[%s3532_s5 + $0x150] sm:$0xff] }
 0x147   :  { %v2115_v26 = vpack.c.bf16 %v1079_v21, %v1078_v20  ;;  %v1075_v20 = vld [vmem:[%s3532_s5 + $0xe8] sm:$0xff]  ;;  %v1106_v21 = vld [vmem:[%s3532_s5 + $0x1e0] sm:$0xff]  ;;  %v1129_v9 = vld [vmem:[%s3532_s5 + $0x298] sm:$0xff] }
 0x149   :  { %2032 = vmatpush1.bf16.msra.mxu1 %v2031_v27  ;;  %2064 = vmatpush1.bf16.msra.mxu0 %v2063_v28  ;;  %v1048_v27 = vld [vmem:[%s3532_s5 + $0x10] sm:$0xff]  ;;  %v1049_v28 = vld [vmem:[%s3532_s5 + $0x18] sm:$0xff] }
 0x14a   :  { %2034 = vmatprep.subr.bf16.mxu1 %v2033_v32  ;;  %2066 = vmatprep.subr.bf16.mxu0 %v2065_v33  ;;  %v1080_v32 = vld [vmem:[%s3532_s5 + $0x110] sm:$0xff]  ;;  %v1081_v33 = vld [vmem:[%s3532_s5 + $0x118] sm:$0xff]  ;;  %v2087_v38 = vpack.c.bf16 %v1049_v28, %v1048_v27  ;;  %v1059_v27 = vld [vmem:[%s3532_s5 + $0x68] sm:$0xff] }
 0x14b   :  { %v2119_v39 = vpack.c.bf16 %v1081_v33, %v1080_v32  ;;  %v1090_v28 = vld [vmem:[%s3532_s5 + $0x160] sm:$0xff]  ;;  %v1076_v33 = vld [vmem:[%s3532_s5 + $0xf0] sm:$0xff] }
 0x14c   :  { %v2109_v36 = vpack.c.bf16 %v1077_v34, %v1076_v33 }
 0x14d   :  { %2036 = vmatpush1.bf16.msra.mxu1 %v2035_v40  ;;  %2068 = vmatpush1.bf16.msra.mxu0 %v2067_v41  ;;  %v1050_v40 = vld [vmem:[%s3532_s5 + $0x20] sm:$0xff]  ;;  %v1051_v41 = vld [vmem:[%s3532_s5 + $0x28] sm:$0xff] }
 0x14e   :  { %2038 = vmatprep.subr.bf16.mxu1 %v2037_v44  ;;  %2070 = vmatprep.subr.bf16.mxu0 %v2069_v45  ;;  %v1083_v44 = vld [vmem:[%s3532_s5 + $0x128] sm:$0xff]  ;;  %v1068_v45 = vld [vmem:[%s3532_s5 + $0xb0] sm:$0xff]  ;;  %v2091_v48 = vpack.c.bf16 %v1051_v41, %v1050_v40  ;;  %v2141_v40 = vpack.c.bf16 %v1109_v37, %v1108_v35  ;;  %v1146_v35 = vld [vmem:[%s3532_s5 + $0x320] sm:$0xff] }
 0x14f   :  { %v1132_v37 = vld [vmem:[%s3532_s5 + $0x2b0] sm:$0xff] }
 0x151   :  { %2040 = vmatpush1.bf16.msra.mxu1 %v2039_v51  ;;  %2072 = vmatpush1.bf16.msra.mxu0 %v2071_v52  ;;  %v1053_v51 = vld [vmem:[%s3532_s5 + $0x38] sm:$0xff]  ;;  %v2093_v52 = vpack.c.bf16 %v1069_v46, %v1068_v45  ;;  %v1127_v45 = vld [vmem:[%s3532_s5 + $0x288] sm:$0xff]  ;;  %v1158_v46 = vld [vmem:[%s3532_s5 + $0x380] sm:$0xff] }
 0x152   :  { %2042 = vmatprep.subr.bf16.mxu1 %v2041_v55  ;;  %2074 = vmatprep.subr.bf16.mxu0 %v2073_v56  ;;  %v1085_v55 = vld [vmem:[%s3532_s5 + $0x138] sm:$0xff]  ;;  %v1070_v56 = vld [vmem:[%s3532_s5 + $0xc0] sm:$0xff]  ;;  %v2095_v62 = vpack.c.bf16 %v1053_v51, %v1052_v50  ;;  %v724_v50 = vsub.s32 2, %v2376_v60 }
 0x153   :  { %v2127_v63 = vpack.c.bf16 %v1085_v55, %v1084_v54  ;;  %v3326_v51 = vld [vmem:[%s3533_s4] sm:$0xff] }
 0x154   :  { %v725_v55 = vrot.slane %v3326_v51, %v724_v50  ;;  %v1167_v50 = vld [vmem:[%s3532_s5 + $0x3c8] sm:$0xff] }
 0x155   :  { %2044 = vmatpush1.bf16.msra.mxu1 %v2043_v1  ;;  %2076 = vmatpush1.bf16.msra.mxu0 %v2075_v2  ;;  %v1055_v1 = vld [vmem:[%s3532_s5 + $0x48] sm:$0xff]  ;;  %v2097_v2 = vpack.c.bf16 %v1071_v58, %v1070_v56 }
 0x156   :  { %2046 = vmatprep.subr.bf16.mxu1 %v2045_v5  ;;  %2078 = vmatprep.subr.bf16.mxu0 %v2077_v6  ;;  %v1087_v5 = vld [vmem:[%s3532_s5 + $0x148] sm:$0xff]  ;;  %v1072_v6 = vld [vmem:[%s3532_s5 + $0xd0] sm:$0xff]  ;;  %v2099_v11 = vpack.c.bf16 %v1055_v1, %v1054_v0 }
 0x157   :  { %v2131_v12 = vpack.c.bf16 %v1087_v5, %v1086_v4  ;;  %v1142_v4 = vld [vmem:[%s3532_s5 + $0x300] sm:$0xff]  ;;  %v1143_v5 = vld [vmem:[%s3532_s5 + $0x308] sm:$0xff] }
 0x159   :  { %2048 = vmatpush1.bf16.msra.mxu1 %v2047_v14  ;;  %2080 = vmatpush1.bf16.msra.mxu0 %v2079_v15  ;;  %v1057_v14 = vld [vmem:[%s3532_s5 + $0x58] sm:$0xff]  ;;  %v2101_v15 = vpack.c.bf16 %v1073_v7, %v1072_v6  ;;  %v1128_v6 = vld [vmem:[%s3532_s5 + $0x290] sm:$0xff] }
 0x15a   :  { %2082 = vmatprep.subr.bf16.mxu1 %v2081_v18  ;;  %2114 = vmatprep.subr.bf16.mxu0 %v2113_v19  ;;  %v1089_v18 = vld [vmem:[%s3532_s5 + $0x158] sm:$0xff]  ;;  %v1074_v19 = vld [vmem:[%s3532_s5 + $0xe0] sm:$0xff]  ;;  %v2103_v22 = vpack.c.bf16 %v1057_v14, %v1056_v13 }
 0x15b   :  { %v2135_v23 = vpack.c.bf16 %v1089_v18, %v1088_v17  ;;  %v1112_v17 = vld [vmem:[%s3532_s5 + $0x210] sm:$0xff]  ;;  %v1113_v18 = vld [vmem:[%s3532_s5 + $0x218] sm:$0xff] }
 0x15c   :  { %961 = vmatmul.mubr.f32.vlgmr.msra.gmra.mrb[6].mxu1 %v2959_v57  ;;  %1032 = vmatmul.mubr.f32.vlgmr.msra.gmra.mrb[8].mxu0 %v2959_v57  ;;  %v1082_v57 = vld [vmem:[%s3532_s5 + $0x120] sm:$0xff] }
 0x15d   :  { %2084 = vmatpush3.bf16.msra.mxu1 %v2083_v25  ;;  %2116 = vmatpush3.bf16.msra.mxu0 %v2115_v26  ;;  %v2123_v49 = vpack.c.bf16 %v1083_v44, %v1082_v57  ;;  %v2105_v25 = vpack.c.bf16 %v1075_v20, %v1074_v19  ;;  %v2137_v26 = vpack.c.bf16 %v1107_v30, %v1106_v21  ;;  %v1126_v44 = vld [vmem:[%s3532_s5 + $0x280] sm:$0xff] }
 0x15e   :  { %2086 = vmatprep.subr.bf16.mxu1 %v2085_v29  ;;  %2118 = vmatprep.subr.bf16.mxu0 %v2117_v31  ;;  %v1091_v29 = vld [vmem:[%s3532_s5 + $0x168] sm:$0xff]  ;;  %v2107_v31 = vpack.c.bf16 %v1059_v27, %v1058_v24  ;;  %v2145_v47 = vpack.c.bf16 %v1127_v45, %v1126_v44  ;;  %v2149_v21 = vpack.c.bf16 %v1129_v9, %v1128_v6  ;;  %v1130_v24 = vld [vmem:[%s3532_s5 + $0x2a0] sm:$0xff]  ;;  %v1153_v9 = vld [vmem:[%s3532_s5 + $0x358] sm:$0xff] }
 0x15f   :  { %v2139_v32 = vpack.c.bf16 %v1091_v29, %v1090_v28  ;;  %v1163_v27 = vld [vmem:[%s3532_s5 + $0x3a8] sm:$0xff]  ;;  %v2151_v28 = vpack.c.bf16 %v1113_v18, %v1112_v17  ;;  %v732_v17 = vsub.s32 4, %v2376_v60  ;;  %v1122_v18 = vld [vmem:[%s3532_s5 + $0x260] sm:$0xff] }
 0x161   :  { %2088 = vmatpush3.bf16.msra.mxu1 %v2087_v38  ;;  %2120 = vmatpush3.bf16.msra.mxu0 %v2119_v39  ;;  %v1060_v38 = vld [vmem:[%s3532_s5 + $0x70] sm:$0xff]  ;;  %v1061_v39 = vld [vmem:[%s3532_s5 + $0x78] sm:$0xff] }
 0x162   :  { %2090 = vmatprep.subr.bf16.mxu1 %v2089_v42  ;;  %2122 = vmatprep.subr.bf16.mxu0 %v2121_v43  ;;  %v2111_v41 = vpack.c.bf16 %v1061_v39, %v1060_v38  ;;  %v1092_v42 = vld [vmem:[%s3532_s5 + $0x170] sm:$0xff]  ;;  %v1093_v43 = vld [vmem:[%s3532_s5 + $0x178] sm:$0xff] }
 0x163   :  { %v2143_v57 = vpack.c.bf16 %v1093_v43, %v1092_v42  ;;  %v1133_v38 = vld [vmem:[%s3532_s5 + $0x2b8] sm:$0xff]  ;;  %v1164_v39 = vld [vmem:[%s3532_s5 + $0x3b0] sm:$0xff] }
 0x164   :  { %v1116_v43 = vld [vmem:[%s3532_s5 + $0x230] sm:$0xff]  ;;  %v2157_v44 = vpack.c.bf16 %v1133_v38, %v1132_v37  ;;  %v1125_v37 = vld [vmem:[%s3532_s5 + $0x278] sm:$0xff] }
 0x165   :  { %2092 = vmatpush3.bf16.msra.mxu1 %v2091_v48  ;;  %2124 = vmatpush3.bf16.msra.mxu0 %v2123_v49  ;;  %v2177_v48 = vpack.c.bf16 %v1159_v10, %v1158_v46  ;;  %v716_v49 = vsub.s32 0, %v2376_v60  ;;  %v1148_v46 = vld [vmem:[%s3532_s5 + $0x330] sm:$0xff]  ;;  %v1134_v10 = vld [vmem:[%s3532_s5 + $0x2c0] sm:$0xff] }
 0x166   :  { %2094 = vmatprep.subr.bf16.mxu1 %v2093_v52  ;;  %2126 = vmatprep.subr.bf16.mxu0 %v2125_v53  ;;  %v720_v52 = vsub.s32 1, %v2376_v60  ;;  %v728_v53 = vsub.s32 3, %v2376_v60  ;;  %v1156_v38 = vld [vmem:[%s3532_s5 + $0x370] sm:$0xff] }
 0x167   :  { %v717_v54 = vrot.slane %v3326_v51, %v716_v49  ;;  %v1166_v49 = vld [vmem:[%s3532_s5 + $0x3c0] sm:$0xff] }
 0x168   :  { %v721_v56 = vrot.slane %v3326_v51, %v720_v52  ;;  %v729_v58 = vrot.slane %v3326_v51, %v728_v53 }
 0x169   :  { %2096 = vmatpush3.bf16.msra.mxu1 %v2095_v62  ;;  %2128 = vmatpush3.bf16.msra.mxu0 %v2127_v63  ;;  %v1110_v62 = vld [vmem:[%s3532_s5 + $0x200] sm:$0xff]  ;;  %v1111_v63 = vld [vmem:[%s3532_s5 + $0x208] sm:$0xff] }
 0x16a   :  { %2098 = vmatprep.subr.bf16.mxu1 %v2097_v2  ;;  %2130 = vmatprep.subr.bf16.mxu0 %v2129_v3 }
 0x16d   :  { %2100 = vmatpush3.bf16.msra.mxu1 %v2099_v11  ;;  %2132 = vmatpush3.bf16.msra.mxu0 %v2131_v12  ;;  %v1160_v11 = vld [vmem:[%s3532_s5 + $0x390] sm:$0xff]  ;;  %v1161_v12 = vld [vmem:[%s3532_s5 + $0x398] sm:$0xff] }
 0x16e   :  { %2102 = vmatprep.subr.bf16.mxu1 %v2101_v15  ;;  %2134 = vmatprep.subr.bf16.mxu0 %v2133_v16  ;;  %v2147_v15 = vpack.c.bf16 %v1111_v63, %v1110_v62  ;;  %v2179_v16 = vpack.c.bf16 %v1143_v5, %v1142_v4  ;;  %v2181_v30 = vpack.c.bf16 %v1161_v12, %v1160_v11  ;;  %v1136_v62 = vld [vmem:[%s3532_s5 + $0x2d0] sm:$0xff]  ;;  %v1137_v63 = vld [vmem:[%s3532_s5 + $0x2d8] sm:$0xff]  ;;  %v1138_v11 = vld [vmem:[%s3532_s5 + $0x2e0] sm:$0xff] }
 0x16f   :  { %v1120_v4 = vld [vmem:[%s3532_s5 + $0x250] sm:$0xff]  ;;  %v1121_v5 = vld [vmem:[%s3532_s5 + $0x258] sm:$0xff]  ;;  %v2165_v6 = vpack.c.bf16 %v1137_v63, %v1136_v62  ;;  %v1139_v12 = vld [vmem:[%s3532_s5 + $0x2e8] sm:$0xff] }
 0x171   :  { %2104 = vmatpush3.bf16.msra.mxu1 %v2103_v22  ;;  %2136 = vmatpush3.bf16.msra.mxu0 %v2135_v23  ;;  %v1144_v22 = vld [vmem:[%s3532_s5 + $0x310] sm:$0xff]  ;;  %v1145_v23 = vld [vmem:[%s3532_s5 + $0x318] sm:$0xff] }
 0x172   :  { %2106 = vmatprep.subr.bf16.mxu1 %v2105_v25  ;;  %2138 = vmatprep.subr.bf16.mxu0 %v2137_v26  ;;  %v1131_v25 = vld [vmem:[%s3532_s5 + $0x2a8] sm:$0xff]  ;;  %v1162_v26 = vld [vmem:[%s3532_s5 + $0x3a0] sm:$0xff]  ;;  %v2183_v29 = vpack.c.bf16 %v1145_v23, %v1144_v22 }
 0x173   :  { %v2153_v33 = vpack.c.bf16 %v1131_v25, %v1130_v24  ;;  %v2185_v34 = vpack.c.bf16 %v1163_v27, %v1162_v26  ;;  %v1154_v22 = vld [vmem:[%s3532_s5 + $0x360] sm:$0xff]  ;;  %v1155_v23 = vld [vmem:[%s3532_s5 + $0x368] sm:$0xff]  ;;  %v1140_v24 = vld [vmem:[%s3532_s5 + $0x2f0] sm:$0xff]  ;;  %v736_v25 = vsub.s32 5, %v2376_v60  ;;  %v744_v26 = vsub.s32 7, %v2376_v60 }
 0x174   :  { %v1141_v27 = vld [vmem:[%s3532_s5 + $0x2f8] sm:$0xff] }
 0x175   :  { %2108 = vmatpush3.bf16.msra.mxu1 %v2107_v31  ;;  %2140 = vmatpush3.bf16.msra.mxu0 %v2139_v32  ;;  %v1114_v31 = vld [vmem:[%s3532_s5 + $0x220] sm:$0xff]  ;;  %v1115_v32 = vld [vmem:[%s3532_s5 + $0x228] sm:$0xff] }
 0x176   :  { %2110 = vmatprep.subr.bf16.mxu1 %v2109_v36  ;;  %2142 = vmatprep.subr.bf16.mxu0 %v2141_v40  ;;  %v1147_v36 = vld [vmem:[%s3532_s5 + $0x328] sm:$0xff]  ;;  %v1165_v40 = vld [vmem:[%s3532_s5 + $0x3b8] sm:$0xff] }
 0x177   :  { %v2187_v42 = vpack.c.bf16 %v1147_v36, %v1146_v35  ;;  %v2189_v45 = vpack.c.bf16 %v1165_v40, %v1164_v39  ;;  %v2173_v35 = vpack.c.bf16 %v1141_v27, %v1140_v24  ;;  %v1157_v39 = vld [vmem:[%s3532_s5 + $0x378] sm:$0xff]  ;;  %v737_v40 = vrot.slane %v3326_v51, %v736_v25 }
 0x179   :  { %2112 = vmatpush3.bf16.msra.mxu1 %v2111_v41  ;;  %2144 = vmatpush3.bf16.msra.mxu0 %v2143_v57  ;;  %v2155_v41 = vpack.c.bf16 %v1115_v32, %v1114_v31  ;;  %v1117_v57 = vld [vmem:[%s3532_s5 + $0x238] sm:$0xff]  ;;  %v733_v31 = vrot.slane %v3326_v51, %v732_v17 }
 0x17a   :  { %2146 = vmatprep.subr.bf16.mxu1 %v2145_v47  ;;  %2178 = vmatprep.subr.bf16.mxu0 %v2177_v48  ;;  %v1149_v47 = vld [vmem:[%s3532_s5 + $0x338] sm:$0xff]  ;;  %v1135_v48 = vld [vmem:[%s3532_s5 + $0x2c8] sm:$0xff]  ;;  %v2159_v52 = vpack.c.bf16 %v1117_v57, %v1116_v43 }
 0x17b   :  { %v2191_v53 = vpack.c.bf16 %v1149_v47, %v1148_v46 }
 0x20f   :  { %v820_v59 = vpop.f32.mrb[4].mxu1  ;;  %v891_v61 = vpop.f32.mrb[6].mxu0 }
 0x210   :  { %v821_v0 = vadd.f32 %v820_v59, %v717_v54  ;;  %v892_v1 = vadd.f32 %v891_v61, %v725_v55  ;;  %v822_v2 = vpop.f32.mrb[5].mxu1  ;;  %v893_v3 = vpop.f32.mrb[7].mxu0  ;;  %v1118_v54 = vld [vmem:[%s3532_s5 + $0x240] sm:$0xff]  ;;  %v1119_v55 = vld [vmem:[%s3532_s5 + $0x248] sm:$0xff] }
 0x211   :  { %v823_v7 = vadd.f32 %v822_v2, %v721_v56  ;;  %v894_v8 = vadd.f32 %v893_v3, %v729_v58  ;;  %v2161_v56 = vpack.c.bf16 %v1135_v48, %v1134_v10  ;;  %v2193_v58 = vpack.c.bf16 %v1167_v50, %v1166_v49  ;;  %v1150_v59 = vld [vmem:[%s3532_s5 + $0x340] sm:$0xff]  ;;  %v1151_v61 = vld [vmem:[%s3532_s5 + $0x348] sm:$0xff] }
 0x212   :  { %v1038_v19 = vmax.f32 %v821_v0, 0.0  ;;  %v1040_v20 = vmax.f32 %v892_v1, 0.0  ;;  %v1168_v0 = vld [vmem:[%s3532_s5 + $0x3d0] sm:$0xff]  ;;  %v1169_v1 = vld [vmem:[%s3532_s5 + $0x3d8] sm:$0xff]  ;;  %v2163_v2 = vpack.c.bf16 %v1119_v55, %v1118_v54  ;;  %v2195_v3 = vpack.c.bf16 %v1151_v61, %v1150_v59 }
 0x213   :  { %v1039_v13 = vmax.f32 %v823_v7, 0.0  ;;  %v1041_v14 = vmax.f32 %v894_v8, 0.0  ;;  %v2197_v7 = vpack.c.bf16 %v1169_v1, %v1168_v0  ;;  %v1152_v8 = vld [vmem:[%s3532_s5 + $0x350] sm:$0xff] }
 0x215   :  { %1245 = vmatprep.mubr.f32.mxu1 %v1039_v13  ;;  %1315 = vmatprep.mubr.f32.mxu0 %v1041_v14  ;;  %v1170_v13 = vld [vmem:[%s3532_s5 + $0x3e0] sm:$0xff]  ;;  %v1171_v14 = vld [vmem:[%s3532_s5 + $0x3e8] sm:$0xff] }
 0x216   :  { %1246 = vmatmul.mubr.f32.vlgmr.msra.gmra.mrb[8].mxu1 %v1038_v19  ;;  %1316 = vmatmul.mubr.f32.vlgmr.msra.gmra.mrb[10].mxu0 %v1040_v20  ;;  %v1123_v19 = vld [vmem:[%s3532_s5 + $0x268] sm:$0xff]  ;;  %v2169_v20 = vpack.c.bf16 %v1139_v12, %v1138_v11 }
 0x217   :  { %2148 = vmatpush3.bf16.msra.mxu1 %v2147_v15  ;;  %2180 = vmatpush3.bf16.msra.mxu0 %v2179_v16  ;;  %v2167_v15 = vpack.c.bf16 %v1121_v5, %v1120_v4  ;;  %v2199_v16 = vpack.c.bf16 %v1153_v9, %v1152_v8  ;;  %v2171_v32 = vpack.c.bf16 %v1123_v19, %v1122_v18 }
 0x218   :  { %2150 = vmatprep.subr.bf16.mxu1 %v2149_v21  ;;  %2182 = vmatprep.subr.bf16.mxu0 %v2181_v30  ;;  %v2201_v21 = vpack.c.bf16 %v1171_v14, %v1170_v13  ;;  %v740_v30 = vsub.s32 6, %v2376_v60  ;;  %v1124_v60 = vld [vmem:[%s3532_s5 + $0x270] sm:$0xff] }
 0x219   :  { %v2175_v57 = vpack.c.bf16 %v1125_v37, %v1124_v60 }
 0x21b   :  { %2152 = vmatpush3.bf16.msra.mxu1 %v2151_v28  ;;  %2184 = vmatpush3.bf16.msra.mxu0 %v2183_v29  ;;  %v1172_v28 = vld [vmem:[%s3532_s5 + $0x3f0] sm:$0xff]  ;;  %v1173_v29 = vld [vmem:[%s3532_s5 + $0x3f8] sm:$0xff] }
 0x21c   :  { %2154 = vmatprep.subr.bf16.mxu1 %v2153_v33  ;;  %2186 = vmatprep.subr.bf16.mxu0 %v2185_v34  ;;  %v2203_v33 = vpack.c.bf16 %v1155_v23, %v1154_v22  ;;  %v741_v34 = vrot.slane %v3326_v51, %v740_v30  ;;  %v2205_v36 = vpack.c.bf16 %v1173_v29, %v1172_v28 }
 0x21f   :  { %2156 = vmatpush3.bf16.msra.mxu1 %v2155_v41  ;;  %2188 = vmatpush3.bf16.msra.mxu0 %v2187_v42  ;;  %v745_v41 = vrot.slane %v3326_v51, %v744_v26 }
 0x220   :  { %2158 = vmatprep.subr.bf16.mxu1 %v2157_v44  ;;  %2190 = vmatprep.subr.bf16.mxu0 %v2189_v45  ;;  %v2207_v44 = vpack.c.bf16 %v1157_v39, %v1156_v38 }
 0x223   :  { %2160 = vmatpush3.bf16.msra.mxu1 %v2159_v52  ;;  %2192 = vmatpush3.bf16.msra.mxu0 %v2191_v53 }
 0x224   :  { %2162 = vmatprep.subr.bf16.mxu1 %v2161_v56  ;;  %2194 = vmatprep.subr.bf16.mxu0 %v2193_v58  ;;  %v1468_v56 = vld [vmem:[%s3534_s6] ss:$0 sm:$0xff] }
 0x227   :  { %2164 = vmatpush3.bf16.msra.mxu1 %v2163_v2  ;;  %2196 = vmatpush3.bf16.msra.mxu0 %v2195_v3 }
 0x228   :  { %2166 = vmatprep.subr.bf16.mxu1 %v2165_v6  ;;  %2198 = vmatprep.subr.bf16.mxu0 %v2197_v7 }
 0x22b   :  { %2168 = vmatpush3.bf16.msra.mxu1 %v2167_v15  ;;  %2200 = vmatpush3.bf16.msra.mxu0 %v2199_v16 }
 0x22c   :  { %2170 = vmatprep.subr.bf16.mxu1 %v2169_v20  ;;  %2202 = vmatprep.subr.bf16.mxu0 %v2201_v21 }
 0x22f   :  { %v962_v42 = vpop.f32.mrb[6].mxu1  ;;  %v1033_v43 = vpop.f32.mrb[8].mxu0  ;;  %2172 = vmatpush3.bf16.msra.mxu1 %v2171_v32  ;;  %2204 = vmatpush3.bf16.msra.mxu0 %v2203_v33 }
 0x230   :  { %v963_v45 = vadd.f32 %v962_v42, %v733_v31  ;;  %v1034_v46 = vadd.f32 %v1033_v43, %v741_v34  ;;  %v964_v47 = vpop.f32.mrb[7].mxu1  ;;  %v1035_v10 = vpop.f32.mrb[9].mxu0  ;;  %2174 = vmatprep.subr.bf16.mxu1 %v2173_v35  ;;  %2206 = vmatprep.subr.bf16.mxu0 %v2205_v36 }
 0x231   :  { %v965_v48 = vadd.f32 %v964_v47, %v737_v40  ;;  %v1036_v49 = vadd.f32 %v1035_v10, %v745_v41 }
 0x232   :  { %v1042_v53 = vmax.f32 %v963_v45, 0.0  ;;  %v1044_v51 = vmax.f32 %v1034_v46, 0.0 }
 0x233   :  { %v1043_v50 = vmax.f32 %v965_v48, 0.0  ;;  %v1045_v52 = vmax.f32 %v1036_v49, 0.0  ;;  %2176 = vmatpush3.bf16.msra.mxu1 %v2175_v57  ;;  %2208 = vmatpush3.bf16.msra.mxu0 %v2207_v44 }
 0x235   :  { %1385 = vmatprep.mubr.f32.mxu1 %v1043_v50  ;;  %1455 = vmatprep.mubr.f32.mxu0 %v1045_v52 }
 0x236   :  { %1386 = vmatmul.mubr.f32.vlgmr.msra.gmra.mrb[10].mxu1 %v1042_v53  ;;  %1456 = vmatmul.mubr.f32.vlgmr.msra.gmra.mrb[12].mxu0 %v1044_v51 }
 0x2e9   :  { %v1658_v54 = vpop.f32.mrb[8].mxu1  ;;  %v1693_v55 = vpop.f32.mrb[10].mxu0 }
 0x2ea   :  { %v1659_v58 = vpop.f32.mrb[9].mxu1  ;;  %v1694_v59 = vpop.f32.mrb[11].mxu0 }
 0x2eb   :  { %v1660_v61 = vadd.f32 %v1659_v58, %v1658_v54  ;;  %v1695_v62 = vadd.f32 %v1694_v59, %v1693_v55 }
 0x2ed   :  { %v1248_v63 = vadd.f32 %v1660_v61, %v1468_v56 }
 0x2ef   :  { %v1318_v0 = vadd.f32 %v1695_v62, %v1248_v63 }
 0x309   :  { %v1728_v1 = vpop.f32.mrb[10].mxu1  ;;  %v1763_v2 = vpop.f32.mrb[12].mxu0 }
 0x30a   :  { %v1729_v3 = vpop.f32.mrb[11].mxu1  ;;  %v1764_v4 = vpop.f32.mrb[13].mxu0 }
 0x30b   :  { %v1730_v5 = vadd.f32 %v1729_v3, %v1728_v1  ;;  %v1765_v6 = vadd.f32 %v1764_v4, %v1763_v2 }
 0x30d   :  { %v1388_v7 = vadd.f32 %v1730_v5, %v1318_v0 }
 0x30f   :  { %v1458_v8 = vadd.f32 %v1765_v6, %v1388_v7 }
 0x311   :  { %1461 = vst [vmem:[%s3535_s7] sm:$0x3] %v1458_v8 }

</bundles_post_ra>
